<compile_context>
chip_gen: v7x
topology: tpu7x:2x2x1
jax: 0.10.0
libtpu: 0.0.40
codegen_flags: <defaults>
</compile_context>

<pallas_src>
import functools

import jax
import jax.numpy as jnp
from jax import lax
from jax.experimental import pallas as pl
from jax.experimental.pallas import tpu as pltpu


def get_valid_num_groups(channels):
    for g in [8, 4, 2, 1]:
        if channels % g == 0:
            return g
    return 1


def _vmem_limit_bytes():
    # Use most of physical VMEM (128 MiB on v5e/v6e, 64 MiB on v7x), leaving headroom
    # for the compiler's internal scratch.  Falls back to a safe default if the query
    # is unavailable.
    try:
        cap = int(pltpu.get_tpu_info().vmem_capacity_bytes)
        if cap <= 0:
            raise ValueError
    except Exception:
        cap = 128 * 1024 * 1024
    return max(32 * 1024 * 1024, (cap * 3) // 4)


# ----------------------------------------------------------------------------
# Fused MaxPool2x2 -> [Conv3x3(pad=1) -> GroupNorm -> ReLU] x 2 kernel
# ----------------------------------------------------------------------------
def _down_kernel(x_ref, w1_ref, b1_ref, g1_ref, be1_ref,
                 w2_ref, b2_ref, g2_ref, be2_ref, gsum_ref, gbc_ref,
                 o_ref, xpad1_ref, xpad2_ref, *, H, W, CIN, COUT):
    # x_ref  : (1, 2H, W, 2*CIN) bf16 -- even/odd horizontal neighbours pre-paired on lanes
    # w*_ref : (9, Cin_stage, COUT) bf16 -- tap index t = dy*3 + dx
    # b/g/be : (1, COUT) f32
    # gsum   : (COUT, G) f32 one-hot / (Cg*H*W);  gbc : (G, COUT) f32 one-hot
    # o_ref  : (1, H, W*COUT) f32 -- lane-dense writeback
    # xpad*  : VMEM (H+2, W+2, C) bf16 zero-padded activation scratch
    f32 = jnp.float32

    # ---- fused 2x2 max-pool (pure VPU, no strided gathers) ----
    x = x_ref[0]                                       # (2H, W, 2*CIN)
    x = jnp.maximum(x[:, :, :CIN], x[:, :, CIN:])      # horizontal pairwise max
    x = x.reshape(H, 2, W, CIN)                        # split leading (major) dim only
    x = jnp.maximum(x[:, 0], x[:, 1])                  # vertical pairwise max -> (H, W, CIN)

    def zero_halo(pad_ref, c):
        # Zero only the 1-wide halo; the interior is fully rewritten below.  Done each
        # step (cheap) so it is correct even when the parallel batch axis is sharded
        # across TensorCores (each core has its own scratch instance).
        dt = pad_ref.dtype
        pad_ref[0:1, :, :] = jnp.zeros((1, W + 2, c), dt)
        pad_ref[H + 1:H + 2, :, :] = jnp.zeros((1, W + 2, c), dt)
        pad_ref[:, 0:1, :] = jnp.zeros((H + 2, 1, c), dt)
        pad_ref[:, W + 1:W + 2, :] = jnp.zeros((H + 2, 1, c), dt)

    def conv3x3(pad_ref, w_ref, cin, bias):
        # "Same" 3x3 conv = 9 accumulated MXU matmuls (bf16 x bf16 -> f32 acc) on
        # statically shifted views of the padded scratch.  No im2col buffer, no
        # unaligned lane-offset packing stores.
        acc = None
        for dy in range(3):
            for dx in range(3):
                tap = pad_ref[dy:dy + H, dx:dx + W, :]                    # (H, W, cin)
                part = jnp.dot(tap.reshape(H * W, cin), w_ref[dy * 3 + dx],
                               preferred_element_type=f32)                # (H*W, COUT)
                acc = part if acc is None else acc + part
        return acc + bias                                                 # bias: (1, COUT)

    def gn_relu(acc, gamma, beta):
        # GroupNorm stats from the f32 accumulator; the per-group reductions for mean
        # and E[x^2] are collapsed into one small matmul chain on a stacked operand.
        s = jnp.sum(acc, axis=0, keepdims=True)                           # (1, COUT)
        ss = jnp.sum(acc * acc, axis=0, keepdims=True)                    # (1, COUT)
        stats = jnp.concatenate([s, ss], axis=0)                          # (2, COUT)
        grp = jnp.dot(stats, gsum_ref[...], preferred_element_type=f32)   # (2, G)
        bc = jnp.dot(grp, gbc_ref[...], preferred_element_type=f32)       # (2, COUT)
        mean, msq = bc[0:1, :], bc[1:2, :]
        var = jnp.maximum(msq - mean * mean, 0.0)                         # clamp E[x^2]-E[x]^2
        inv = lax.rsqrt(var + 1e-5)
        return jnp.maximum((acc - mean) * (inv * gamma) + beta, 0.0)

    # ---- stage 1: conv1 -> GN1 -> ReLU (stays in VMEM) ----
    zero_halo(xpad1_ref, CIN)
    xpad1_ref[1:H + 1, 1:W + 1, :] = x.astype(xpad1_ref.dtype)
    y1 = gn_relu(conv3x3(xpad1_ref, w1_ref, CIN, b1_ref[...]),
                 g1_ref[...], be1_ref[...])

    # ---- stage 2: conv2 -> GN2 -> ReLU (intermediate kept in bf16 VMEM scratch) ----
    zero_halo(xpad2_ref, COUT)
    xpad2_ref[1:H + 1, 1:W + 1, :] = y1.astype(xpad2_ref.dtype).reshape(H, W, COUT)
    y2 = gn_relu(conv3x3(xpad2_ref, w2_ref, COUT, b2_ref[...]),
                 g2_ref[...], be2_ref[...])

    # ---- lane-dense writeback: pack the W pixels of a row onto the lane dim ----
    # Built with sublane-slices + a lane concatenate (well-supported ops) instead of a
    # generic sublane->lane reshape; gives unmasked (W*COUT)-lane stores vs COUT-lane.
    y3 = y2.reshape(H, W, COUT)
    row = jnp.concatenate([y3[:, j, :] for j in range(W)], axis=-1)       # (H, W*COUT)
    o_ref[0] = row.astype(o_ref.dtype)


# ----------------------------------------------------------------------------
# Down.forward (NCHW in / NCHW out, matching the PyTorch module)
# ----------------------------------------------------------------------------
def _torch_weight_to_taps(w_oihw):
    # (Cout, Cin, 3, 3) -> (9, Cin, Cout) bf16, tap index t = dy*3 + dx
    cout, cin, kh, kw = w_oihw.shape
    w = jnp.transpose(w_oihw, (2, 3, 1, 0)).reshape(kh * kw, cin, cout)
    return w.astype(jnp.bfloat16)


def down_forward(x_nchw, params):
    n, cin, hin, win = x_nchw.shape
    cout = params["w1"].shape[0]
    groups = get_valid_num_groups(cout)
    h, w = hin // 2, win // 2        # torch MaxPool2d(2) floors odd sizes

    # NCHW -> NHWC, crop to even spatial extent, pre-pair even/odd columns on the lane
    # dim (a free row-major regroup), and cast to bf16 (halves the input DMA; max-pool
    # commutes with the monotone bf16 cast).
    x = jnp.transpose(x_nchw, (0, 2, 3, 1))[:, :2 * h, :2 * w, :]
    x_in = x.reshape(n, 2 * h, w, 2 * cin).astype(jnp.bfloat16)

    # GroupNorm helper matrices (one-hot; 1/(Cg*H*W) folded into gsum).
    cg = cout // groups
    gid = jnp.arange(cout) // cg
    onehot = (gid[:, None] == jnp.arange(groups)[None, :]).astype(jnp.float32)
    gsum = onehot / float(cg * h * w)      # (COUT, G): channel sums -> per-group mean
    gbc = onehot.T                          # (G, COUT): broadcast back to channels

    def vec(p):
        return p.reshape(1, cout).astype(jnp.float32)

    kernel = functools.partial(_down_kernel, H=h, W=w, CIN=cin, COUT=cout)
    out = pl.pallas_call(
        kernel,
        out_shape=jax.ShapeDtypeStruct((n, h, w * cout), jnp.float32),
        grid=(n,),
        in_specs=[
            pl.BlockSpec((1, 2 * h, w, 2 * cin), lambda i: (i, 0, 0, 0)),
            pl.BlockSpec((9, cin, cout), lambda i: (0, 0, 0)),
            pl.BlockSpec((1, cout), lambda i: (0, 0)),
            pl.BlockSpec((1, cout), lambda i: (0, 0)),
            pl.BlockSpec((1, cout), lambda i: (0, 0)),
            pl.BlockSpec((9, cout, cout), lambda i: (0, 0, 0)),
            pl.BlockSpec((1, cout), lambda i: (0, 0)),
            pl.BlockSpec((1, cout), lambda i: (0, 0)),
            pl.BlockSpec((1, cout), lambda i: (0, 0)),
            pl.BlockSpec((cout, groups), lambda i: (0, 0)),
            pl.BlockSpec((groups, cout), lambda i: (0, 0)),
        ],
        out_specs=pl.BlockSpec((1, h, w * cout), lambda i: (i, 0, 0)),
        scratch_shapes=[
            pltpu.VMEM((h + 2, w + 2, cin), jnp.bfloat16),     # padded pooled input
            pltpu.VMEM((h + 2, w + 2, cout), jnp.bfloat16),    # padded stage-1 activation
        ],
        compiler_params=pltpu.CompilerParams(
            dimension_semantics=("parallel",),
            vmem_limit_bytes=_vmem_limit_bytes()),
    )(x_in,
      _torch_weight_to_taps(params["w1"]), vec(params["b1"]), vec(params["g1"]), vec(params["be1"]),
      _torch_weight_to_taps(params["w2"]), vec(params["b2"]), vec(params["g2"]), vec(params["be2"]),
      gsum, gbc)

    out = out.reshape(n, h, w, cout)           # free row-major un-flatten of W*COUT lanes
    return jnp.transpose(out, (0, 3, 1, 2))    # NHWC -> NCHW


# ----------------------------------------------------------------------------
# Pure-JAX reference (mirrors the PyTorch forward; emulates the kernel's deliberate
# bf16-MXU-operand / f32-accumulate precision so the check can be tight)
# ----------------------------------------------------------------------------
def _ref_down(x_nchw, p, groups):
    def q(a):  # bf16 operand quantization (mirrors MXU inputs; accumulation stays f32)
        return a.astype(jnp.bfloat16).astype(jnp.float32)

    def conv(x, w, b):
        y = lax.conv_general_dilated(q(x), q(w), window_strides=(1, 1),
                                     padding=((1, 1), (1, 1)),
                                     dimension_numbers=("NCHW", "OIHW", "NCHW"),
                                     precision=lax.Precision.HIGHEST)
        return y + b[None, :, None, None]

    def gn(x, gamma, beta, g):
        n, c, h, w = x.shape
        xg = x.reshape(n, g, -1)
        mean = xg.mean(-1, keepdims=True)
        var = jnp.mean((xg - mean) ** 2, -1, keepdims=True)
        xn = ((xg - mean) * lax.rsqrt(var + 1e-5)).reshape(n, c, h, w)
        return xn * gamma[None, :, None, None] + beta[None, :, None, None]

    n, c, h, w = x_nchw.shape
    x = x_nchw[:, :, :h - h % 2, :w - w % 2]
    x = x.reshape(n, c, h // 2, 2, w // 2, 2).max(axis=(3, 5))
    x = jax.nn.relu(gn(conv(x, p["w1"], p["b1"]), p["g1"], p["be1"], groups))
    x = jax.nn.relu(gn(conv(x, p["w2"], p["b2"]), p["g2"], p["be2"], groups))
    return x


if __name__ == "__main__":
    N, CIN, H, W = 2, 4, 16, 16
    COUT = 8

    key = jax.random.PRNGKey(0)
    ks = jax.random.split(key, 9)
    x = jax.random.normal(ks[0], (N, CIN, H, W), jnp.float32)
    params = {
        "w1": 0.2 * jax.random.normal(ks[1], (COUT, CIN, 3, 3), jnp.float32),
        "b1": 0.1 * jax.random.normal(ks[2], (COUT,), jnp.float32),
        "g1": 1.0 + 0.1 * jax.random.normal(ks[3], (COUT,), jnp.float32),
        "be1": 0.1 * jax.random.normal(ks[4], (COUT,), jnp.float32),
        "w2": 0.2 * jax.random.normal(ks[5], (COUT, COUT, 3, 3), jnp.float32),
        "b2": 0.1 * jax.random.normal(ks[6], (COUT,), jnp.float32),
        "g2": 1.0 + 0.1 * jax.random.normal(ks[7], (COUT,), jnp.float32),
        "be2": 0.1 * jax.random.normal(ks[8], (COUT,), jnp.float32),
    }

    out = jax.block_until_ready(down_forward(x, params))
    assert out.shape == (N, COUT, H // 2, W // 2), out.shape

    ref = jax.block_until_ready(_ref_down(x, params, get_valid_num_groups(COUT)))
    max_err = float(jnp.max(jnp.abs(out - ref)))
    if not bool(jnp.allclose(out, ref, rtol=2e-2, atol=2e-2)):
        raise AssertionError(f"Pallas output does not match JAX reference (max abs err {max_err})")

    print("KERNEL_OK")
</pallas_src>

<mosaic_0001>
module attributes {stable_mosaic.version = 11 : i64} {
  func.func @_down_kernel(%arg0: i32, %arg1: memref<1x16x8x8xbf16, #tpu.memory_space<vmem>>, %arg2: memref<9x4x8xbf16, #tpu.memory_space<vmem>>, %arg3: memref<1x8xf32, #tpu.memory_space<vmem>>, %arg4: memref<1x8xf32, #tpu.memory_space<vmem>>, %arg5: memref<1x8xf32, #tpu.memory_space<vmem>>, %arg6: memref<9x8x8xbf16, #tpu.memory_space<vmem>>, %arg7: memref<1x8xf32, #tpu.memory_space<vmem>>, %arg8: memref<1x8xf32, #tpu.memory_space<vmem>>, %arg9: memref<1x8xf32, #tpu.memory_space<vmem>>, %arg10: memref<8x8xf32, #tpu.memory_space<vmem>>, %arg11: memref<8x8xf32, #tpu.memory_space<vmem>>, %arg12: memref<1x8x64xf32, #tpu.memory_space<vmem>>, %arg13: memref<10x10x4xbf16, #tpu.memory_space<vmem>>, %arg14: memref<10x10x8xbf16, #tpu.memory_space<vmem>>) attributes {dimension_semantics = [#tpu.dimension_semantics<parallel>], iteration_bounds = array<i64: 2>, scalar_prefetch = 0 : i64, scratch_operands = 2 : i64, tpu.core_type = #tpu.core_type<tc>, window_params = [{transform_indices = @transform_0, window_bounds = array<i64: 1, 16, 8, 8>}, {pipeline_mode = #tpu.pipeline_mode<synchronous>, transform_indices = @transform_1, window_bounds = array<i64: 9, 4, 8>}, {pipeline_mode = #tpu.pipeline_mode<synchronous>, transform_indices = @transform_2, window_bounds = array<i64: 1, 8>}, {pipeline_mode = #tpu.pipeline_mode<synchronous>, transform_indices = @transform_3, window_bounds = array<i64: 1, 8>}, {pipeline_mode = #tpu.pipeline_mode<synchronous>, transform_indices = @transform_4, window_bounds = array<i64: 1, 8>}, {pipeline_mode = #tpu.pipeline_mode<synchronous>, transform_indices = @transform_5, window_bounds = array<i64: 9, 8, 8>}, {pipeline_mode = #tpu.pipeline_mode<synchronous>, transform_indices = @transform_6, window_bounds = array<i64: 1, 8>}, {pipeline_mode = #tpu.pipeline_mode<synchronous>, transform_indices = @transform_7, window_bounds = array<i64: 1, 8>}, {pipeline_mode = #tpu.pipeline_mode<synchronous>, transform_indices = @transform_8, window_bounds = array<i64: 1, 8>}, {pipeline_mode = #tpu.pipeline_mode<synchronous>, transform_indices = @transform_9, window_bounds = array<i64: 8, 8>}, {pipeline_mode = #tpu.pipeline_mode<synchronous>, transform_indices = @transform_10, window_bounds = array<i64: 8, 8>}, {transform_indices = @transform_11, window_bounds = array<i64: 1, 8, 64>}]} {
    %c0 = arith.constant 0 : index
    %c0_0 = arith.constant 0 : index
    %c0_1 = arith.constant 0 : index
    %c0_2 = arith.constant 0 : index
    %0 = vector.load %arg1[%c0, %c0_0, %c0_1, %c0_2] : memref<1x16x8x8xbf16, #tpu.memory_space<vmem>>, vector<1x16x8x8xbf16>
    %1 = vector.shape_cast %0 : vector<1x16x8x8xbf16> to vector<16x8x8xbf16>
    %2 = vector.extract_strided_slice %1 {offsets = [0, 0, 0], sizes = [16, 8, 4], strides = [1, 1, 1]} : vector<16x8x8xbf16> to vector<16x8x4xbf16>
    %3 = vector.extract_strided_slice %1 {offsets = [0, 0, 4], sizes = [16, 8, 4], strides = [1, 1, 1]} : vector<16x8x8xbf16> to vector<16x8x4xbf16>
    %4 = arith.maximumf %2, %3 : vector<16x8x4xbf16>
    %5 = vector.shape_cast %4 : vector<16x8x4xbf16> to vector<8x2x8x4xbf16>
    %6 = vector.extract_strided_slice %5 {offsets = [0, 0, 0, 0], sizes = [8, 1, 8, 4], strides = [1, 1, 1, 1]} : vector<8x2x8x4xbf16> to vector<8x1x8x4xbf16>
    %7 = vector.shape_cast %6 : vector<8x1x8x4xbf16> to vector<8x8x4xbf16>
    %8 = vector.extract_strided_slice %5 {offsets = [0, 1, 0, 0], sizes = [8, 1, 8, 4], strides = [1, 1, 1, 1]} : vector<8x2x8x4xbf16> to vector<8x1x8x4xbf16>
    %9 = vector.shape_cast %8 : vector<8x1x8x4xbf16> to vector<8x8x4xbf16>
    %10 = arith.maximumf %7, %9 : vector<8x8x4xbf16>
    %cst = arith.constant 0.000000e+00 : bf16
    %11 = vector.broadcast %cst : bf16 to vector<1x10x4xbf16>
    %c0_3 = arith.constant 0 : index
    %c0_4 = arith.constant 0 : index
    %c0_5 = arith.constant 0 : index
    %12 = vector.load %arg13[%c0_3, %c0_4, %c0_5] : memref<10x10x4xbf16, #tpu.memory_space<vmem>>, vector<1x10x4xbf16>
    tpu.vector_store %arg13[%c0_3, %c0_4, %c0_5], %11 {strides = array<i32>} : memref<10x10x4xbf16, #tpu.memory_space<vmem>>, vector<1x10x4xbf16>,
    %cst_6 = arith.constant 0.000000e+00 : bf16
    %13 = vector.broadcast %cst_6 : bf16 to vector<1x10x4xbf16>
    %c9 = arith.constant 9 : index
    %c0_7 = arith.constant 0 : index
    %c0_8 = arith.constant 0 : index
    %14 = vector.load %arg13[%c9, %c0_7, %c0_8] : memref<10x10x4xbf16, #tpu.memory_space<vmem>>, vector<1x10x4xbf16>
    tpu.vector_store %arg13[%c9, %c0_7, %c0_8], %13 {strides = array<i32>} : memref<10x10x4xbf16, #tpu.memory_space<vmem>>, vector<1x10x4xbf16>,
    %cst_9 = arith.constant 0.000000e+00 : bf16
    %15 = vector.broadcast %cst_9 : bf16 to vector<10x1x4xbf16>
    %c0_10 = arith.constant 0 : index
    %c0_11 = arith.constant 0 : index
    %c0_12 = arith.constant 0 : index
    %16 = vector.load %arg13[%c0_10, %c0_11, %c0_12] : memref<10x10x4xbf16, #tpu.memory_space<vmem>>, vector<10x1x4xbf16>
    tpu.vector_store %arg13[%c0_10, %c0_11, %c0_12], %15 {strides = array<i32>} : memref<10x10x4xbf16, #tpu.memory_space<vmem>>, vector<10x1x4xbf16>,
    %cst_13 = arith.constant 0.000000e+00 : bf16
    %17 = vector.broadcast %cst_13 : bf16 to vector<10x1x4xbf16>
    %c0_14 = arith.constant 0 : index
    %c9_15 = arith.constant 9 : index
    %c0_16 = arith.constant 0 : index
    %18 = vector.load %arg13[%c0_14, %c9_15, %c0_16] : memref<10x10x4xbf16, #tpu.memory_space<vmem>>, vector<10x1x4xbf16>
    tpu.vector_store %arg13[%c0_14, %c9_15, %c0_16], %17 {strides = array<i32>} : memref<10x10x4xbf16, #tpu.memory_space<vmem>>, vector<10x1x4xbf16>,
    %c1 = arith.constant 1 : index
    %c1_17 = arith.constant 1 : index
    %c0_18 = arith.constant 0 : index
    %19 = vector.load %arg13[%c1, %c1_17, %c0_18] : memref<10x10x4xbf16, #tpu.memory_space<vmem>>, vector<8x8x4xbf16>
    tpu.vector_store %arg13[%c1, %c1_17, %c0_18], %10 {strides = array<i32>} : memref<10x10x4xbf16, #tpu.memory_space<vmem>>, vector<8x8x4xbf16>,
    %c0_19 = arith.constant 0 : index
    %c0_20 = arith.constant 0 : index
    %20 = vector.load %arg3[%c0_19, %c0_20] : memref<1x8xf32, #tpu.memory_space<vmem>>, vector<1x8xf32>
    %c0_21 = arith.constant 0 : index
    %c0_22 = arith.constant 0 : index
    %c0_23 = arith.constant 0 : index
    %21 = vector.load %arg13[%c0_21, %c0_22, %c0_23] : memref<10x10x4xbf16, #tpu.memory_space<vmem>>, vector<8x8x4xbf16>
    %22 = vector.shape_cast %21 : vector<8x8x4xbf16> to vector<64x4xbf16>
    %c0_24 = arith.constant 0 : index
    %c0_25 = arith.constant 0 : index
    %c0_26 = arith.constant 0 : index
    %23 = vector.load %arg2[%c0_24, %c0_25, %c0_26] : memref<9x4x8xbf16, #tpu.memory_space<vmem>>, vector<1x4x8xbf16>
    %24 = vector.shape_cast %23 : vector<1x4x8xbf16> to vector<4x8xbf16>
    %cst_27 = arith.constant dense<0.000000e+00> : vector<64x8xf32>
    %25 = tpu.matmul %22, %24, %cst_27 {dimension_numbers = #tpu.dot_dimension_numbers<[1], [0], [0], [1], [0, 0, 1, 1], [], []>} : vector<64x4xbf16>, vector<4x8xbf16>, vector<64x8xf32> -> vector<64x8xf32>
    %c0_28 = arith.constant 0 : index
    %c1_29 = arith.constant 1 : index
    %c0_30 = arith.constant 0 : index
    %26 = vector.load %arg13[%c0_28, %c1_29, %c0_30] : memref<10x10x4xbf16, #tpu.memory_space<vmem>>, vector<8x8x4xbf16>
    %27 = vector.shape_cast %26 : vector<8x8x4xbf16> to vector<64x4xbf16>
    %c1_31 = arith.constant 1 : index
    %c0_32 = arith.constant 0 : index
    %c0_33 = arith.constant 0 : index
    %28 = vector.load %arg2[%c1_31, %c0_32, %c0_33] : memref<9x4x8xbf16, #tpu.memory_space<vmem>>, vector<1x4x8xbf16>
    %29 = vector.shape_cast %28 : vector<1x4x8xbf16> to vector<4x8xbf16>
    %cst_34 = arith.constant dense<0.000000e+00> : vector<64x8xf32>
    %30 = tpu.matmul %27, %29, %cst_34 {dimension_numbers = #tpu.dot_dimension_numbers<[1], [0], [0], [1], [0, 0, 1, 1], [], []>} : vector<64x4xbf16>, vector<4x8xbf16>, vector<64x8xf32> -> vector<64x8xf32>
    %31 = arith.addf %25, %30 : vector<64x8xf32>
    %c0_35 = arith.constant 0 : index
    %c2 = arith.constant 2 : index
    %c0_36 = arith.constant 0 : index
    %32 = vector.load %arg13[%c0_35, %c2, %c0_36] : memref<10x10x4xbf16, #tpu.memory_space<vmem>>, vector<8x8x4xbf16>
    %33 = vector.shape_cast %32 : vector<8x8x4xbf16> to vector<64x4xbf16>
    %c2_37 = arith.constant 2 : index
    %c0_38 = arith.constant 0 : index
    %c0_39 = arith.constant 0 : index
    %34 = vector.load %arg2[%c2_37, %c0_38, %c0_39] : memref<9x4x8xbf16, #tpu.memory_space<vmem>>, vector<1x4x8xbf16>
    %35 = vector.shape_cast %34 : vector<1x4x8xbf16> to vector<4x8xbf16>
    %cst_40 = arith.constant dense<0.000000e+00> : vector<64x8xf32>
    %36 = tpu.matmul %33, %35, %cst_40 {dimension_numbers = #tpu.dot_dimension_numbers<[1], [0], [0], [1], [0, 0, 1, 1], [], []>} : vector<64x4xbf16>, vector<4x8xbf16>, vector<64x8xf32> -> vector<64x8xf32>
    %37 = arith.addf %31, %36 : vector<64x8xf32>
    %c1_41 = arith.constant 1 : index
    %c0_42 = arith.constant 0 : index
    %c0_43 = arith.constant 0 : index
    %38 = vector.load %arg13[%c1_41, %c0_42, %c0_43] : memref<10x10x4xbf16, #tpu.memory_space<vmem>>, vector<8x8x4xbf16>
    %39 = vector.shape_cast %38 : vector<8x8x4xbf16> to vector<64x4xbf16>
    %c3 = arith.constant 3 : index
    %c0_44 = arith.constant 0 : index
    %c0_45 = arith.constant 0 : index
    %40 = vector.load %arg2[%c3, %c0_44, %c0_45] : memref<9x4x8xbf16, #tpu.memory_space<vmem>>, vector<1x4x8xbf16>
    %41 = vector.shape_cast %40 : vector<1x4x8xbf16> to vector<4x8xbf16>
    %cst_46 = arith.constant dense<0.000000e+00> : vector<64x8xf32>
    %42 = tpu.matmul %39, %41, %cst_46 {dimension_numbers = #tpu.dot_dimension_numbers<[1], [0], [0], [1], [0, 0, 1, 1], [], []>} : vector<64x4xbf16>, vector<4x8xbf16>, vector<64x8xf32> -> vector<64x8xf32>
    %43 = arith.addf %37, %42 : vector<64x8xf32>
    %c1_47 = arith.constant 1 : index
    %c1_48 = arith.constant 1 : index
    %c0_49 = arith.constant 0 : index
    %44 = vector.load %arg13[%c1_47, %c1_48, %c0_49] : memref<10x10x4xbf16, #tpu.memory_space<vmem>>, vector<8x8x4xbf16>
    %45 = vector.shape_cast %44 : vector<8x8x4xbf16> to vector<64x4xbf16>
    %c4 = arith.constant 4 : index
    %c0_50 = arith.constant 0 : index
    %c0_51 = arith.constant 0 : index
    %46 = vector.load %arg2[%c4, %c0_50, %c0_51] : memref<9x4x8xbf16, #tpu.memory_space<vmem>>, vector<1x4x8xbf16>
    %47 = vector.shape_cast %46 : vector<1x4x8xbf16> to vector<4x8xbf16>
    %cst_52 = arith.constant dense<0.000000e+00> : vector<64x8xf32>
    %48 = tpu.matmul %45, %47, %cst_52 {dimension_numbers = #tpu.dot_dimension_numbers<[1], [0], [0], [1], [0, 0, 1, 1], [], []>} : vector<64x4xbf16>, vector<4x8xbf16>, vector<64x8xf32> -> vector<64x8xf32>
    %49 = arith.addf %43, %48 : vector<64x8xf32>
    %c1_53 = arith.constant 1 : index
    %c2_54 = arith.constant 2 : index
    %c0_55 = arith.constant 0 : index
    %50 = vector.load %arg13[%c1_53, %c2_54, %c0_55] : memref<10x10x4xbf16, #tpu.memory_space<vmem>>, vector<8x8x4xbf16>
    %51 = vector.shape_cast %50 : vector<8x8x4xbf16> to vector<64x4xbf16>
    %c5 = arith.constant 5 : index
    %c0_56 = arith.constant 0 : index
    %c0_57 = arith.constant 0 : index
    %52 = vector.load %arg2[%c5, %c0_56, %c0_57] : memref<9x4x8xbf16, #tpu.memory_space<vmem>>, vector<1x4x8xbf16>
    %53 = vector.shape_cast %52 : vector<1x4x8xbf16> to vector<4x8xbf16>
    %cst_58 = arith.constant dense<0.000000e+00> : vector<64x8xf32>
    %54 = tpu.matmul %51, %53, %cst_58 {dimension_numbers = #tpu.dot_dimension_numbers<[1], [0], [0], [1], [0, 0, 1, 1], [], []>} : vector<64x4xbf16>, vector<4x8xbf16>, vector<64x8xf32> -> vector<64x8xf32>
    %55 = arith.addf %49, %54 : vector<64x8xf32>
    %c2_59 = arith.constant 2 : index
    %c0_60 = arith.constant 0 : index
    %c0_61 = arith.constant 0 : index
    %56 = vector.load %arg13[%c2_59, %c0_60, %c0_61] : memref<10x10x4xbf16, #tpu.memory_space<vmem>>, vector<8x8x4xbf16>
    %57 = vector.shape_cast %56 : vector<8x8x4xbf16> to vector<64x4xbf16>
    %c6 = arith.constant 6 : index
    %c0_62 = arith.constant 0 : index
    %c0_63 = arith.constant 0 : index
    %58 = vector.load %arg2[%c6, %c0_62, %c0_63] : memref<9x4x8xbf16, #tpu.memory_space<vmem>>, vector<1x4x8xbf16>
    %59 = vector.shape_cast %58 : vector<1x4x8xbf16> to vector<4x8xbf16>
    %cst_64 = arith.constant dense<0.000000e+00> : vector<64x8xf32>
    %60 = tpu.matmul %57, %59, %cst_64 {dimension_numbers = #tpu.dot_dimension_numbers<[1], [0], [0], [1], [0, 0, 1, 1], [], []>} : vector<64x4xbf16>, vector<4x8xbf16>, vector<64x8xf32> -> vector<64x8xf32>
    %61 = arith.addf %55, %60 : vector<64x8xf32>
    %c2_65 = arith.constant 2 : index
    %c1_66 = arith.constant 1 : index
    %c0_67 = arith.constant 0 : index
    %62 = vector.load %arg13[%c2_65, %c1_66, %c0_67] : memref<10x10x4xbf16, #tpu.memory_space<vmem>>, vector<8x8x4xbf16>
    %63 = vector.shape_cast %62 : vector<8x8x4xbf16> to vector<64x4xbf16>
    %c7 = arith.constant 7 : index
    %c0_68 = arith.constant 0 : index
    %c0_69 = arith.constant 0 : index
    %64 = vector.load %arg2[%c7, %c0_68, %c0_69] : memref<9x4x8xbf16, #tpu.memory_space<vmem>>, vector<1x4x8xbf16>
    %65 = vector.shape_cast %64 : vector<1x4x8xbf16> to vector<4x8xbf16>
    %cst_70 = arith.constant dense<0.000000e+00> : vector<64x8xf32>
    %66 = tpu.matmul %63, %65, %cst_70 {dimension_numbers = #tpu.dot_dimension_numbers<[1], [0], [0], [1], [0, 0, 1, 1], [], []>} : vector<64x4xbf16>, vector<4x8xbf16>, vector<64x8xf32> -> vector<64x8xf32>
    %67 = arith.addf %61, %66 : vector<64x8xf32>
    %c2_71 = arith.constant 2 : index
    %c2_72 = arith.constant 2 : index
    %c0_73 = arith.constant 0 : index
    %68 = vector.load %arg13[%c2_71, %c2_72, %c0_73] : memref<10x10x4xbf16, #tpu.memory_space<vmem>>, vector<8x8x4xbf16>
    %69 = vector.shape_cast %68 : vector<8x8x4xbf16> to vector<64x4xbf16>
    %c8 = arith.constant 8 : index
    %c0_74 = arith.constant 0 : index
    %c0_75 = arith.constant 0 : index
    %70 = vector.load %arg2[%c8, %c0_74, %c0_75] : memref<9x4x8xbf16, #tpu.memory_space<vmem>>, vector<1x4x8xbf16>
    %71 = vector.shape_cast %70 : vector<1x4x8xbf16> to vector<4x8xbf16>
    %cst_76 = arith.constant dense<0.000000e+00> : vector<64x8xf32>
    %72 = tpu.matmul %69, %71, %cst_76 {dimension_numbers = #tpu.dot_dimension_numbers<[1], [0], [0], [1], [0, 0, 1, 1], [], []>} : vector<64x4xbf16>, vector<4x8xbf16>, vector<64x8xf32> -> vector<64x8xf32>
    %73 = arith.addf %67, %72 : vector<64x8xf32>
    %74 = vector.broadcast %20 : vector<1x8xf32> to vector<64x8xf32>
    %75 = arith.addf %73, %74 : vector<64x8xf32>
    %c0_77 = arith.constant 0 : index
    %c0_78 = arith.constant 0 : index
    %76 = vector.load %arg4[%c0_77, %c0_78] : memref<1x8xf32, #tpu.memory_space<vmem>>, vector<1x8xf32>
    %c0_79 = arith.constant 0 : index
    %c0_80 = arith.constant 0 : index
    %77 = vector.load %arg5[%c0_79, %c0_80] : memref<1x8xf32, #tpu.memory_space<vmem>>, vector<1x8xf32>
    %cst_81 = arith.constant dense<0.000000e+00> : vector<8xf32>
    %78 = vector.multi_reduction <add>, %75, %cst_81 [0] : vector<64x8xf32> to vector<8xf32>
    %79 = vector.shape_cast %78 : vector<8xf32> to vector<1x8xf32>
    %80 = arith.mulf %75, %75 : vector<64x8xf32>
    %cst_82 = arith.constant dense<0.000000e+00> : vector<8xf32>
    %81 = vector.multi_reduction <add>, %80, %cst_82 [0] : vector<64x8xf32> to vector<8xf32>
    %82 = vector.shape_cast %81 : vector<8xf32> to vector<1x8xf32>
    %83 = tpu.concatenate %79, %82 in 0 : vector<1x8xf32>, vector<1x8xf32> -> vector<2x8xf32>
    %c0_83 = arith.constant 0 : index
    %c0_84 = arith.constant 0 : index
    %84 = vector.load %arg10[%c0_83, %c0_84] : memref<8x8xf32, #tpu.memory_space<vmem>>, vector<8x8xf32>
    %cst_85 = arith.constant dense<0.000000e+00> : vector<2x8xf32>
    %85 = tpu.matmul %83, %84, %cst_85 {dimension_numbers = #tpu.dot_dimension_numbers<[1], [0], [0], [1], [0, 0, 1, 1], [], []>} : vector<2x8xf32>, vector<8x8xf32>, vector<2x8xf32> -> vector<2x8xf32>
    %c0_86 = arith.constant 0 : index
    %c0_87 = arith.constant 0 : index
    %86 = vector.load %arg11[%c0_86, %c0_87] : memref<8x8xf32, #tpu.memory_space<vmem>>, vector<8x8xf32>
    %cst_88 = arith.constant dense<0.000000e+00> : vector<2x8xf32>
    %87 = tpu.matmul %85, %86, %cst_88 {dimension_numbers = #tpu.dot_dimension_numbers<[1], [0], [0], [1], [0, 0, 1, 1], [], []>} : vector<2x8xf32>, vector<8x8xf32>, vector<2x8xf32> -> vector<2x8xf32>
    %88 = vector.extract_strided_slice %87 {offsets = [0, 0], sizes = [1, 8], strides = [1, 1]} : vector<2x8xf32> to vector<1x8xf32>
    %89 = vector.extract_strided_slice %87 {offsets = [1, 0], sizes = [1, 8], strides = [1, 1]} : vector<2x8xf32> to vector<1x8xf32>
    %90 = arith.mulf %88, %88 : vector<1x8xf32>
    %91 = arith.subf %89, %90 : vector<1x8xf32>
    %cst_89 = arith.constant 0.000000e+00 : f32
    %92 = vector.broadcast %cst_89 : f32 to vector<1x8xf32>
    %93 = arith.maximumf %91, %92 : vector<1x8xf32>
    %cst_90 = arith.constant 9.99999974E-6 : f32
    %94 = vector.broadcast %cst_90 : f32 to vector<1x8xf32>
    %95 = arith.addf %93, %94 : vector<1x8xf32>
    %96 = math.rsqrt %95 : vector<1x8xf32>
    %97 = vector.broadcast %88 : vector<1x8xf32> to vector<64x8xf32>
    %98 = arith.subf %75, %97 : vector<64x8xf32>
    %99 = arith.mulf %96, %76 : vector<1x8xf32>
    %100 = vector.broadcast %99 : vector<1x8xf32> to vector<64x8xf32>
    %101 = arith.mulf %98, %100 : vector<64x8xf32>
    %102 = vector.broadcast %77 : vector<1x8xf32> to vector<64x8xf32>
    %103 = arith.addf %101, %102 : vector<64x8xf32>
    %cst_91 = arith.constant 0.000000e+00 : f32
    %104 = vector.broadcast %cst_91 : f32 to vector<64x8xf32>
    %105 = arith.maximumf %103, %104 : vector<64x8xf32>
    %cst_92 = arith.constant 0.000000e+00 : bf16
    %106 = vector.broadcast %cst_92 : bf16 to vector<1x10x8xbf16>
    %c0_93 = arith.constant 0 : index
    %c0_94 = arith.constant 0 : index
    %c0_95 = arith.constant 0 : index
    %107 = vector.load %arg14[%c0_93, %c0_94, %c0_95] : memref<10x10x8xbf16, #tpu.memory_space<vmem>>, vector<1x10x8xbf16>
    tpu.vector_store %arg14[%c0_93, %c0_94, %c0_95], %106 {strides = array<i32>} : memref<10x10x8xbf16, #tpu.memory_space<vmem>>, vector<1x10x8xbf16>,
    %cst_96 = arith.constant 0.000000e+00 : bf16
    %108 = vector.broadcast %cst_96 : bf16 to vector<1x10x8xbf16>
    %c9_97 = arith.constant 9 : index
    %c0_98 = arith.constant 0 : index
    %c0_99 = arith.constant 0 : index
    %109 = vector.load %arg14[%c9_97, %c0_98, %c0_99] : memref<10x10x8xbf16, #tpu.memory_space<vmem>>, vector<1x10x8xbf16>
    tpu.vector_store %arg14[%c9_97, %c0_98, %c0_99], %108 {strides = array<i32>} : memref<10x10x8xbf16, #tpu.memory_space<vmem>>, vector<1x10x8xbf16>,
    %cst_100 = arith.constant 0.000000e+00 : bf16
    %110 = vector.broadcast %cst_100 : bf16 to vector<10x1x8xbf16>
    %c0_101 = arith.constant 0 : index
    %c0_102 = arith.constant 0 : index
    %c0_103 = arith.constant 0 : index
    %111 = vector.load %arg14[%c0_101, %c0_102, %c0_103] : memref<10x10x8xbf16, #tpu.memory_space<vmem>>, vector<10x1x8xbf16>
    tpu.vector_store %arg14[%c0_101, %c0_102, %c0_103], %110 {strides = array<i32>} : memref<10x10x8xbf16, #tpu.memory_space<vmem>>, vector<10x1x8xbf16>,
    %cst_104 = arith.constant 0.000000e+00 : bf16
    %112 = vector.broadcast %cst_104 : bf16 to vector<10x1x8xbf16>
    %c0_105 = arith.constant 0 : index
    %c9_106 = arith.constant 9 : index
    %c0_107 = arith.constant 0 : index
    %113 = vector.load %arg14[%c0_105, %c9_106, %c0_107] : memref<10x10x8xbf16, #tpu.memory_space<vmem>>, vector<10x1x8xbf16>
    tpu.vector_store %arg14[%c0_105, %c9_106, %c0_107], %112 {strides = array<i32>} : memref<10x10x8xbf16, #tpu.memory_space<vmem>>, vector<10x1x8xbf16>,
    %114 = arith.truncf %105 : vector<64x8xf32> to vector<64x8xbf16>
    %115 = vector.shape_cast %114 : vector<64x8xbf16> to vector<8x8x8xbf16>
    %c1_108 = arith.constant 1 : index
    %c1_109 = arith.constant 1 : index
    %c0_110 = arith.constant 0 : index
    %116 = vector.load %arg14[%c1_108, %c1_109, %c0_110] : memref<10x10x8xbf16, #tpu.memory_space<vmem>>, vector<8x8x8xbf16>
    tpu.vector_store %arg14[%c1_108, %c1_109, %c0_110], %115 {strides = array<i32>} : memref<10x10x8xbf16, #tpu.memory_space<vmem>>, vector<8x8x8xbf16>,
    %c0_111 = arith.constant 0 : index
    %c0_112 = arith.constant 0 : index
    %117 = vector.load %arg7[%c0_111, %c0_112] : memref<1x8xf32, #tpu.memory_space<vmem>>, vector<1x8xf32>
    %c0_113 = arith.constant 0 : index
    %c0_114 = arith.constant 0 : index
    %c0_115 = arith.constant 0 : index
    %118 = vector.load %arg14[%c0_113, %c0_114, %c0_115] : memref<10x10x8xbf16, #tpu.memory_space<vmem>>, vector<8x8x8xbf16>
    %119 = vector.shape_cast %118 : vector<8x8x8xbf16> to vector<64x8xbf16>
    %c0_116 = arith.constant 0 : index
    %c0_117 = arith.constant 0 : index
    %c0_118 = arith.constant 0 : index
    %120 = vector.load %arg6[%c0_116, %c0_117, %c0_118] : memref<9x8x8xbf16, #tpu.memory_space<vmem>>, vector<1x8x8xbf16>
    %121 = vector.shape_cast %120 : vector<1x8x8xbf16> to vector<8x8xbf16>
    %cst_119 = arith.constant dense<0.000000e+00> : vector<64x8xf32>
    %122 = tpu.matmul %119, %121, %cst_119 {dimension_numbers = #tpu.dot_dimension_numbers<[1], [0], [0], [1], [0, 0, 1, 1], [], []>} : vector<64x8xbf16>, vector<8x8xbf16>, vector<64x8xf32> -> vector<64x8xf32>
    %c0_120 = arith.constant 0 : index
    %c1_121 = arith.constant 1 : index
    %c0_122 = arith.constant 0 : index
    %123 = vector.load %arg14[%c0_120, %c1_121, %c0_122] : memref<10x10x8xbf16, #tpu.memory_space<vmem>>, vector<8x8x8xbf16>
    %124 = vector.shape_cast %123 : vector<8x8x8xbf16> to vector<64x8xbf16>
    %c1_123 = arith.constant 1 : index
    %c0_124 = arith.constant 0 : index
    %c0_125 = arith.constant 0 : index
    %125 = vector.load %arg6[%c1_123, %c0_124, %c0_125] : memref<9x8x8xbf16, #tpu.memory_space<vmem>>, vector<1x8x8xbf16>
    %126 = vector.shape_cast %125 : vector<1x8x8xbf16> to vector<8x8xbf16>
    %cst_126 = arith.constant dense<0.000000e+00> : vector<64x8xf32>
    %127 = tpu.matmul %124, %126, %cst_126 {dimension_numbers = #tpu.dot_dimension_numbers<[1], [0], [0], [1], [0, 0, 1, 1], [], []>} : vector<64x8xbf16>, vector<8x8xbf16>, vector<64x8xf32> -> vector<64x8xf32>
    %128 = arith.addf %122, %127 : vector<64x8xf32>
    %c0_127 = arith.constant 0 : index
    %c2_128 = arith.constant 2 : index
    %c0_129 = arith.constant 0 : index
    %129 = vector.load %arg14[%c0_127, %c2_128, %c0_129] : memref<10x10x8xbf16, #tpu.memory_space<vmem>>, vector<8x8x8xbf16>
    %130 = vector.shape_cast %129 : vector<8x8x8xbf16> to vector<64x8xbf16>
    %c2_130 = arith.constant 2 : index
    %c0_131 = arith.constant 0 : index
    %c0_132 = arith.constant 0 : index
    %131 = vector.load %arg6[%c2_130, %c0_131, %c0_132] : memref<9x8x8xbf16, #tpu.memory_space<vmem>>, vector<1x8x8xbf16>
    %132 = vector.shape_cast %131 : vector<1x8x8xbf16> to vector<8x8xbf16>
    %cst_133 = arith.constant dense<0.000000e+00> : vector<64x8xf32>
    %133 = tpu.matmul %130, %132, %cst_133 {dimension_numbers = #tpu.dot_dimension_numbers<[1], [0], [0], [1], [0, 0, 1, 1], [], []>} : vector<64x8xbf16>, vector<8x8xbf16>, vector<64x8xf32> -> vector<64x8xf32>
    %134 = arith.addf %128, %133 : vector<64x8xf32>
    %c1_134 = arith.constant 1 : index
    %c0_135 = arith.constant 0 : index
    %c0_136 = arith.constant 0 : index
    %135 = vector.load %arg14[%c1_134, %c0_135, %c0_136] : memref<10x10x8xbf16, #tpu.memory_space<vmem>>, vector<8x8x8xbf16>
    %136 = vector.shape_cast %135 : vector<8x8x8xbf16> to vector<64x8xbf16>
    %c3_137 = arith.constant 3 : index
    %c0_138 = arith.constant 0 : index
    %c0_139 = arith.constant 0 : index
    %137 = vector.load %arg6[%c3_137, %c0_138, %c0_139] : memref<9x8x8xbf16, #tpu.memory_space<vmem>>, vector<1x8x8xbf16>
    %138 = vector.shape_cast %137 : vector<1x8x8xbf16> to vector<8x8xbf16>
    %cst_140 = arith.constant dense<0.000000e+00> : vector<64x8xf32>
    %139 = tpu.matmul %136, %138, %cst_140 {dimension_numbers = #tpu.dot_dimension_numbers<[1], [0], [0], [1], [0, 0, 1, 1], [], []>} : vector<64x8xbf16>, vector<8x8xbf16>, vector<64x8xf32> -> vector<64x8xf32>
    %140 = arith.addf %134, %139 : vector<64x8xf32>
    %c1_141 = arith.constant 1 : index
    %c1_142 = arith.constant 1 : index
    %c0_143 = arith.constant 0 : index
    %141 = vector.load %arg14[%c1_141, %c1_142, %c0_143] : memref<10x10x8xbf16, #tpu.memory_space<vmem>>, vector<8x8x8xbf16>
    %142 = vector.shape_cast %141 : vector<8x8x8xbf16> to vector<64x8xbf16>
    %c4_144 = arith.constant 4 : index
    %c0_145 = arith.constant 0 : index
    %c0_146 = arith.constant 0 : index
    %143 = vector.load %arg6[%c4_144, %c0_145, %c0_146] : memref<9x8x8xbf16, #tpu.memory_space<vmem>>, vector<1x8x8xbf16>
    %144 = vector.shape_cast %143 : vector<1x8x8xbf16> to vector<8x8xbf16>
    %cst_147 = arith.constant dense<0.000000e+00> : vector<64x8xf32>
    %145 = tpu.matmul %142, %144, %cst_147 {dimension_numbers = #tpu.dot_dimension_numbers<[1], [0], [0], [1], [0, 0, 1, 1], [], []>} : vector<64x8xbf16>, vector<8x8xbf16>, vector<64x8xf32> -> vector<64x8xf32>
    %146 = arith.addf %140, %145 : vector<64x8xf32>
    %c1_148 = arith.constant 1 : index
    %c2_149 = arith.constant 2 : index
    %c0_150 = arith.constant 0 : index
    %147 = vector.load %arg14[%c1_148, %c2_149, %c0_150] : memref<10x10x8xbf16, #tpu.memory_space<vmem>>, vector<8x8x8xbf16>
    %148 = vector.shape_cast %147 : vector<8x8x8xbf16> to vector<64x8xbf16>
    %c5_151 = arith.constant 5 : index
    %c0_152 = arith.constant 0 : index
    %c0_153 = arith.constant 0 : index
    %149 = vector.load %arg6[%c5_151, %c0_152, %c0_153] : memref<9x8x8xbf16, #tpu.memory_space<vmem>>, vector<1x8x8xbf16>
    %150 = vector.shape_cast %149 : vector<1x8x8xbf16> to vector<8x8xbf16>
    %cst_154 = arith.constant dense<0.000000e+00> : vector<64x8xf32>
    %151 = tpu.matmul %148, %150, %cst_154 {dimension_numbers = #tpu.dot_dimension_numbers<[1], [0], [0], [1], [0, 0, 1, 1], [], []>} : vector<64x8xbf16>, vector<8x8xbf16>, vector<64x8xf32> -> vector<64x8xf32>
    %152 = arith.addf %146, %151 : vector<64x8xf32>
    %c2_155 = arith.constant 2 : index
    %c0_156 = arith.constant 0 : index
    %c0_157 = arith.constant 0 : index
    %153 = vector.load %arg14[%c2_155, %c0_156, %c0_157] : memref<10x10x8xbf16, #tpu.memory_space<vmem>>, vector<8x8x8xbf16>
    %154 = vector.shape_cast %153 : vector<8x8x8xbf16> to vector<64x8xbf16>
    %c6_158 = arith.constant 6 : index
    %c0_159 = arith.constant 0 : index
    %c0_160 = arith.constant 0 : index
    %155 = vector.load %arg6[%c6_158, %c0_159, %c0_160] : memref<9x8x8xbf16, #tpu.memory_space<vmem>>, vector<1x8x8xbf16>
    %156 = vector.shape_cast %155 : vector<1x8x8xbf16> to vector<8x8xbf16>
    %cst_161 = arith.constant dense<0.000000e+00> : vector<64x8xf32>
    %157 = tpu.matmul %154, %156, %cst_161 {dimension_numbers = #tpu.dot_dimension_numbers<[1], [0], [0], [1], [0, 0, 1, 1], [], []>} : vector<64x8xbf16>, vector<8x8xbf16>, vector<64x8xf32> -> vector<64x8xf32>
    %158 = arith.addf %152, %157 : vector<64x8xf32>
    %c2_162 = arith.constant 2 : index
    %c1_163 = arith.constant 1 : index
    %c0_164 = arith.constant 0 : index
    %159 = vector.load %arg14[%c2_162, %c1_163, %c0_164] : memref<10x10x8xbf16, #tpu.memory_space<vmem>>, vector<8x8x8xbf16>
    %160 = vector.shape_cast %159 : vector<8x8x8xbf16> to vector<64x8xbf16>
    %c7_165 = arith.constant 7 : index
    %c0_166 = arith.constant 0 : index
    %c0_167 = arith.constant 0 : index
    %161 = vector.load %arg6[%c7_165, %c0_166, %c0_167] : memref<9x8x8xbf16, #tpu.memory_space<vmem>>, vector<1x8x8xbf16>
    %162 = vector.shape_cast %161 : vector<1x8x8xbf16> to vector<8x8xbf16>
    %cst_168 = arith.constant dense<0.000000e+00> : vector<64x8xf32>
    %163 = tpu.matmul %160, %162, %cst_168 {dimension_numbers = #tpu.dot_dimension_numbers<[1], [0], [0], [1], [0, 0, 1, 1], [], []>} : vector<64x8xbf16>, vector<8x8xbf16>, vector<64x8xf32> -> vector<64x8xf32>
    %164 = arith.addf %158, %163 : vector<64x8xf32>
    %c2_169 = arith.constant 2 : index
    %c2_170 = arith.constant 2 : index
    %c0_171 = arith.constant 0 : index
    %165 = vector.load %arg14[%c2_169, %c2_170, %c0_171] : memref<10x10x8xbf16, #tpu.memory_space<vmem>>, vector<8x8x8xbf16>
    %166 = vector.shape_cast %165 : vector<8x8x8xbf16> to vector<64x8xbf16>
    %c8_172 = arith.constant 8 : index
    %c0_173 = arith.constant 0 : index
    %c0_174 = arith.constant 0 : index
    %167 = vector.load %arg6[%c8_172, %c0_173, %c0_174] : memref<9x8x8xbf16, #tpu.memory_space<vmem>>, vector<1x8x8xbf16>
    %168 = vector.shape_cast %167 : vector<1x8x8xbf16> to vector<8x8xbf16>
    %cst_175 = arith.constant dense<0.000000e+00> : vector<64x8xf32>
    %169 = tpu.matmul %166, %168, %cst_175 {dimension_numbers = #tpu.dot_dimension_numbers<[1], [0], [0], [1], [0, 0, 1, 1], [], []>} : vector<64x8xbf16>, vector<8x8xbf16>, vector<64x8xf32> -> vector<64x8xf32>
    %170 = arith.addf %164, %169 : vector<64x8xf32>
    %171 = vector.broadcast %117 : vector<1x8xf32> to vector<64x8xf32>
    %172 = arith.addf %170, %171 : vector<64x8xf32>
    %c0_176 = arith.constant 0 : index
    %c0_177 = arith.constant 0 : index
    %173 = vector.load %arg8[%c0_176, %c0_177] : memref<1x8xf32, #tpu.memory_space<vmem>>, vector<1x8xf32>
    %c0_178 = arith.constant 0 : index
    %c0_179 = arith.constant 0 : index
    %174 = vector.load %arg9[%c0_178, %c0_179] : memref<1x8xf32, #tpu.memory_space<vmem>>, vector<1x8xf32>
    %cst_180 = arith.constant dense<0.000000e+00> : vector<8xf32>
    %175 = vector.multi_reduction <add>, %172, %cst_180 [0] : vector<64x8xf32> to vector<8xf32>
    %176 = vector.shape_cast %175 : vector<8xf32> to vector<1x8xf32>
    %177 = arith.mulf %172, %172 : vector<64x8xf32>
    %cst_181 = arith.constant dense<0.000000e+00> : vector<8xf32>
    %178 = vector.multi_reduction <add>, %177, %cst_181 [0] : vector<64x8xf32> to vector<8xf32>
    %179 = vector.shape_cast %178 : vector<8xf32> to vector<1x8xf32>
    %180 = tpu.concatenate %176, %179 in 0 : vector<1x8xf32>, vector<1x8xf32> -> vector<2x8xf32>
    %c0_182 = arith.constant 0 : index
    %c0_183 = arith.constant 0 : index
    %181 = vector.load %arg10[%c0_182, %c0_183] : memref<8x8xf32, #tpu.memory_space<vmem>>, vector<8x8xf32>
    %cst_184 = arith.constant dense<0.000000e+00> : vector<2x8xf32>
    %182 = tpu.matmul %180, %181, %cst_184 {dimension_numbers = #tpu.dot_dimension_numbers<[1], [0], [0], [1], [0, 0, 1, 1], [], []>} : vector<2x8xf32>, vector<8x8xf32>, vector<2x8xf32> -> vector<2x8xf32>
    %c0_185 = arith.constant 0 : index
    %c0_186 = arith.constant 0 : index
    %183 = vector.load %arg11[%c0_185, %c0_186] : memref<8x8xf32, #tpu.memory_space<vmem>>, vector<8x8xf32>
    %cst_187 = arith.constant dense<0.000000e+00> : vector<2x8xf32>
    %184 = tpu.matmul %182, %183, %cst_187 {dimension_numbers = #tpu.dot_dimension_numbers<[1], [0], [0], [1], [0, 0, 1, 1], [], []>} : vector<2x8xf32>, vector<8x8xf32>, vector<2x8xf32> -> vector<2x8xf32>
    %185 = vector.extract_strided_slice %184 {offsets = [0, 0], sizes = [1, 8], strides = [1, 1]} : vector<2x8xf32> to vector<1x8xf32>
    %186 = vector.extract_strided_slice %184 {offsets = [1, 0], sizes = [1, 8], strides = [1, 1]} : vector<2x8xf32> to vector<1x8xf32>
    %187 = arith.mulf %185, %185 : vector<1x8xf32>
    %188 = arith.subf %186, %187 : vector<1x8xf32>
    %cst_188 = arith.constant 0.000000e+00 : f32
    %189 = vector.broadcast %cst_188 : f32 to vector<1x8xf32>
    %190 = arith.maximumf %188, %189 : vector<1x8xf32>
    %cst_189 = arith.constant 9.99999974E-6 : f32
    %191 = vector.broadcast %cst_189 : f32 to vector<1x8xf32>
    %192 = arith.addf %190, %191 : vector<1x8xf32>
    %193 = math.rsqrt %192 : vector<1x8xf32>
    %194 = vector.broadcast %185 : vector<1x8xf32> to vector<64x8xf32>
    %195 = arith.subf %172, %194 : vector<64x8xf32>
    %196 = arith.mulf %193, %173 : vector<1x8xf32>
    %197 = vector.broadcast %196 : vector<1x8xf32> to vector<64x8xf32>
    %198 = arith.mulf %195, %197 : vector<64x8xf32>
    %199 = vector.broadcast %174 : vector<1x8xf32> to vector<64x8xf32>
    %200 = arith.addf %198, %199 : vector<64x8xf32>
    %cst_190 = arith.constant 0.000000e+00 : f32
    %201 = vector.broadcast %cst_190 : f32 to vector<64x8xf32>
    %202 = arith.maximumf %200, %201 : vector<64x8xf32>
    %203 = vector.shape_cast %202 : vector<64x8xf32> to vector<8x8x8xf32>
    %204 = vector.extract_strided_slice %203 {offsets = [0, 0, 0], sizes = [8, 1, 8], strides = [1, 1, 1]} : vector<8x8x8xf32> to vector<8x1x8xf32>
    %205 = vector.shape_cast %204 : vector<8x1x8xf32> to vector<8x8xf32>
    %206 = vector.extract_strided_slice %203 {offsets = [0, 1, 0], sizes = [8, 1, 8], strides = [1, 1, 1]} : vector<8x8x8xf32> to vector<8x1x8xf32>
    %207 = vector.shape_cast %206 : vector<8x1x8xf32> to vector<8x8xf32>
    %208 = vector.extract_strided_slice %203 {offsets = [0, 2, 0], sizes = [8, 1, 8], strides = [1, 1, 1]} : vector<8x8x8xf32> to vector<8x1x8xf32>
    %209 = vector.shape_cast %208 : vector<8x1x8xf32> to vector<8x8xf32>
    %210 = vector.extract_strided_slice %203 {offsets = [0, 3, 0], sizes = [8, 1, 8], strides = [1, 1, 1]} : vector<8x8x8xf32> to vector<8x1x8xf32>
    %211 = vector.shape_cast %210 : vector<8x1x8xf32> to vector<8x8xf32>
    %212 = vector.extract_strided_slice %203 {offsets = [0, 4, 0], sizes = [8, 1, 8], strides = [1, 1, 1]} : vector<8x8x8xf32> to vector<8x1x8xf32>
    %213 = vector.shape_cast %212 : vector<8x1x8xf32> to vector<8x8xf32>
    %214 = vector.extract_strided_slice %203 {offsets = [0, 5, 0], sizes = [8, 1, 8], strides = [1, 1, 1]} : vector<8x8x8xf32> to vector<8x1x8xf32>
    %215 = vector.shape_cast %214 : vector<8x1x8xf32> to vector<8x8xf32>
    %216 = vector.extract_strided_slice %203 {offsets = [0, 6, 0], sizes = [8, 1, 8], strides = [1, 1, 1]} : vector<8x8x8xf32> to vector<8x1x8xf32>
    %217 = vector.shape_cast %216 : vector<8x1x8xf32> to vector<8x8xf32>
    %218 = vector.extract_strided_slice %203 {offsets = [0, 7, 0], sizes = [8, 1, 8], strides = [1, 1, 1]} : vector<8x8x8xf32> to vector<8x1x8xf32>
    %219 = vector.shape_cast %218 : vector<8x1x8xf32> to vector<8x8xf32>
    %220 = tpu.concatenate %205, %207, %209, %211, %213, %215, %217, %219 in 1 : vector<8x8xf32>, vector<8x8xf32>, vector<8x8xf32>, vector<8x8xf32>, vector<8x8xf32>, vector<8x8xf32>, vector<8x8xf32>, vector<8x8xf32> -> vector<8x64xf32>
    %c0_191 = arith.constant 0 : index
    %c0_192 = arith.constant 0 : index
    %c0_193 = arith.constant 0 : index
    %221 = vector.load %arg12[%c0_191, %c0_192, %c0_193] : memref<1x8x64xf32, #tpu.memory_space<vmem>>, vector<1x8x64xf32>
    %222 = vector.shape_cast %221 : vector<1x8x64xf32> to vector<8x64xf32>
    %223 = vector.shape_cast %220 : vector<8x64xf32> to vector<1x8x64xf32>
    tpu.vector_store %arg12[%c0_191, %c0_192, %c0_193], %223 {strides = array<i32>} : memref<1x8x64xf32, #tpu.memory_space<vmem>>, vector<1x8x64xf32>,
    return
  }
  func.func @transform_0(%arg0: i32) -> (i32, i32, i32, i32) {
    %c0_i32 = arith.constant 0 : i32
    %c0_i32_0 = arith.constant 0 : i32
    %c0_i32_1 = arith.constant 0 : i32
    %c0_i32_2 = arith.constant 0 : i32
    return %arg0, %c0_i32, %c0_i32_0, %c0_i32_1 : i32, i32, i32, i32
  }
  func.func @transform_1(%arg0: i32) -> (i32, i32, i32) {
    %c0_i32 = arith.constant 0 : i32
    %c0_i32_0 = arith.constant 0 : i32
    %c0_i32_1 = arith.constant 0 : i32
    %c0_i32_2 = arith.constant 0 : i32
    return %c0_i32, %c0_i32_0, %c0_i32_1 : i32, i32, i32
  }
  func.func @transform_2(%arg0: i32) -> (i32, i32) {
    %c0_i32 = arith.constant 0 : i32
    %c0_i32_0 = arith.constant 0 : i32
    %c0_i32_1 = arith.constant 0 : i32
    return %c0_i32, %c0_i32_0 : i32, i32
  }
  func.func @transform_3(%arg0: i32) -> (i32, i32) {
    %c0_i32 = arith.constant 0 : i32
    %c0_i32_0 = arith.constant 0 : i32
    %c0_i32_1 = arith.constant 0 : i32
    return %c0_i32, %c0_i32_0 : i32, i32
  }
  func.func @transform_4(%arg0: i32) -> (i32, i32) {
    %c0_i32 = arith.constant 0 : i32
    %c0_i32_0 = arith.constant 0 : i32
    %c0_i32_1 = arith.constant 0 : i32
    return %c0_i32, %c0_i32_0 : i32, i32
  }
  func.func @transform_5(%arg0: i32) -> (i32, i32, i32) {
    %c0_i32 = arith.constant 0 : i32
    %c0_i32_0 = arith.constant 0 : i32
    %c0_i32_1 = arith.constant 0 : i32
    %c0_i32_2 = arith.constant 0 : i32
    return %c0_i32, %c0_i32_0, %c0_i32_1 : i32, i32, i32
  }
  func.func @transform_6(%arg0: i32) -> (i32, i32) {
    %c0_i32 = arith.constant 0 : i32
    %c0_i32_0 = arith.constant 0 : i32
    %c0_i32_1 = arith.constant 0 : i32
    return %c0_i32, %c0_i32_0 : i32, i32
  }
  func.func @transform_7(%arg0: i32) -> (i32, i32) {
    %c0_i32 = arith.constant 0 : i32
    %c0_i32_0 = arith.constant 0 : i32
    %c0_i32_1 = arith.constant 0 : i32
    return %c0_i32, %c0_i32_0 : i32, i32
  }
  func.func @transform_8(%arg0: i32) -> (i32, i32) {
    %c0_i32 = arith.constant 0 : i32
    %c0_i32_0 = arith.constant 0 : i32
    %c0_i32_1 = arith.constant 0 : i32
    return %c0_i32, %c0_i32_0 : i32, i32
  }
  func.func @transform_9(%arg0: i32) -> (i32, i32) {
    %c0_i32 = arith.constant 0 : i32
    %c0_i32_0 = arith.constant 0 : i32
    %c0_i32_1 = arith.constant 0 : i32
    return %c0_i32, %c0_i32_0 : i32, i32
  }
  func.func @transform_10(%arg0: i32) -> (i32, i32) {
    %c0_i32 = arith.constant 0 : i32
    %c0_i32_0 = arith.constant 0 : i32
    %c0_i32_1 = arith.constant 0 : i32
    return %c0_i32, %c0_i32_0 : i32, i32
  }
  func.func @transform_11(%arg0: i32) -> (i32, i32, i32) {
    %c0_i32 = arith.constant 0 : i32
    %c0_i32_0 = arith.constant 0 : i32
    %c0_i32_1 = arith.constant 0 : i32
    return %arg0, %c0_i32, %c0_i32_0 : i32, i32, i32
  }
}

</mosaic_0001>

<bundles_post_ra>
// kernel: tpu_custom_call.1
= control target key start
LH: loop header
LB: loop body
LE: loop exit
PB: predicated region body
PF: predicated region fallthrough
CT: control target
= control target key end

     0   :  { %s7939_s0 = inlined_call_operand.hbm [shape: bf16[2,16,8,8], index: 0, kind: input, shape index: {}]   ;;  %s7940_s1 = inlined_call_operand.hbm [shape: bf16[9,4,8], index: 1, kind: input, shape index: {}]   ;;  %s7941_s2 = inlined_call_operand.hbm [shape: f32[1,8], index: 2, kind: input, shape index: {}]   ;;  %s7942_s3 = inlined_call_operand.hbm [shape: f32[1,8], index: 3, kind: input, shape index: {}]   ;;  %s7943_s4 = inlined_call_operand.hbm [shape: f32[1,8], index: 4, kind: input, shape index: {}]   ;;  %s7944_s5 = inlined_call_operand.hbm [shape: bf16[9,8,8], index: 5, kind: input, shape index: {}]   ;;  %s7945_s6 = inlined_call_operand.hbm [shape: f32[1,8], index: 6, kind: input, shape index: {}]   ;;  %s7946_s7 = inlined_call_operand.hbm [shape: f32[1,8], index: 7, kind: input, shape index: {}]   ;;  %s7947_s8 = inlined_call_operand.hbm [shape: f32[1,8], index: 8, kind: input, shape index: {}]   ;;  %s7948_s9 = inlined_call_operand.hbm [shape: f32[8,8], index: 9, kind: input, shape index: {}]   ;;  %s7949_s10 = inlined_call_operand.hbm [shape: f32[8,8], index: 10, kind: input, shape index: {}]   ;;  %s7950_s11 = inlined_call_operand.hbm [shape: f32[2,8,64], index: 11, kind: output, shape index: {}]  }
   0x1   :  { %7958 = sst [smem:[#allocation31_spill]] %s7939_s0 }
   0x2   :  { %7959 = sst [smem:[#allocation32_spill]] %s7940_s1 }
   0x3   :  { %7960 = sst [smem:[#allocation33_spill]] %s7942_s3 }
   0x4   :  { %7961 = sst [smem:[#allocation34_spill]] %s7950_s11 }
   0x5   :  { %16 = vsyncpa [#allocation5], 0 }
   0x6   :  { %18 = vsyncpa [#allocation5 + $0x1], 0 }
   0x7   :  { %19 = vsyncpa [#allocation8], 0 }
   0x8   :  { %20 = vsyncpa [#allocation11], 0 }
   0x9   :  { %21 = vsyncpa [#allocation14], 0 }
   0xa   :  { %22 = vsyncpa [#allocation17], 0 }
   0xb   :  { %23 = vsyncpa [#allocation20], 0 }
   0xc   :  { %24 = vsyncpa [#allocation6], 0 }
   0xd   :  { %26 = vsyncpa [#allocation6 + $0x1], 0  ;;  %s6334_s17 = smov 0   ;;  %s6336_s18 = smov 0  }
   0xe   :  { %s6338_s19 = smov 0   ;;  %s6340_s20 = smov 0  }
   0xf LB: > { %s6247_s21 = smov [#allocation7]   ;;  %s6355_s23 = sadd.s32 4294967295, %s6245_s20   ;;  %s6245_s20 = sphi %s6340_s20, %s8011_s20   ;;  %s6241_s19 = sphi %s6338_s19, %s8010_s19   ;;  %s6237_s18 = sphi %s6336_s18, %s8009_s18   ;;  %s6233_s17 = sphi %s6334_s17, %s8008_s17  }
  0x10   : > { %s311_s22 = sshll.u32 %s6247_s21, 4  ;;  %p4964_p0 = scmp.ge.s32.totalorder %s6245_s20, 1  ;;  %s6360_s22 = int_to_ptr.vmem [resolvable:$true] %s311_s22 }
  0x11   : > { %p7954_p1 = scmp.eq.s32.totalorder %s6355_s23, 0  ;;  %p299_p2 = scmp.lt.s32.totalorder %s6245_s20, 3 }
  0x12   : > { %s6248_s25 = smov [#allocation10]   ;;  %s6249_s28 = smov [#allocation13]  }
  0x13   : > { %p6362_p3 = pnand %p4964_p0, %p299_p2  ;;  %s336_s26 = sshll.u32 %s6248_s25, 4  ;;  %s6375_s26 = int_to_ptr.vmem [resolvable:$true] %s336_s26 }
  0x14   : > { %s357_s29 = sshll.u32 %s6249_s28, 4  ;;  %s7965_s1 = sld [smem:[#allocation32_spill]]  ;;  %s6377_s29 = int_to_ptr.vmem [resolvable:$true] %s357_s29 }
  0x15   : > { %s7962_s24 = scalar_select %p6362_p3, 1, 0 }
  0x16   : > { %p5703_p5 = pneg %p6362_p3 }
  0x17   : > { %7963 = sst [smem:[#allocation30_spill]] %s7962_s24 }
  0x18   : > { %p6371_p6 = pnand %p5703_p5, %p7954_p1 }
  0x1a   : > { %s5849_s13 = scalar_lea.hbm %s7965_s1, 288  ;;  %p6387_p8 = pneg %p6371_p6 }
  0x1b   : > { %p5850_p7 = scmp.ne.s32.totalorder %s7965_s1, %s5849_s13  ;;  %p5856_p11 = scmp.lt.u32.totalorder %s5849_s13, %s7965_s1 }
  0x1d   : > { %p5852_p9 = pnand %p6387_p8, %p5850_p7 }
  0x1f   : > { %p5853_p10 = pneg %p5852_p9 }
  0x21   : > { %p5858_p12 = pnand %p5856_p11, %p5853_p10 }
  0x23   : > { %5861 = shalt.err (!%p5858_p12)
}
  0x24   : > { %s5862_s28 = scalar_lea.vmem %s6360_s22, 288  ;;  %p5870_p5 = scmp.lt.s32.totalorder %s6360_s22, %s6360_s22 }
  0x25   : > { %p5863_p13 = scmp.ne.s32.totalorder %s6360_s22, %s5862_s28  ;;  %p5871_p4 = scmp.lt.s32.totalorder %s5862_s28, %s5862_s28 }
  0x27   : > { %p5865_p0 = pnand %p5863_p13, %p6387_p8  ;;  %p5872_p7 = por %p5871_p4, %p5870_p5 }
  0x29   : > { %p5866_p2 = pneg %p5865_p0 }
  0x2b   : > { %p5873_p9 = pnand %p5872_p7, %p5866_p2 }
  0x2d   : > { %5876 = shalt.err (!%p5873_p9)
}
  0x2e   : > { %s6250_s30 = smov 32   ;;  %s6251_s12 = smov 2  }
  0x2f   : > { %5706 = dma.hbm_to_vmem [thread:$0]  (!%p6371_p6), %s7965_s1, 288, %s6360_s22, [#allocation8], %s6250_s30, %s6250_s30, %s6251_s12  }
  0x30   : > { %s7967_s3 = sld [smem:[#allocation33_spill]] }
  0x36   : > { %s5877_s25 = scalar_lea.hbm %s7967_s3, 16 }
  0x37   : > { %p5878_p4 = scmp.ne.s32.totalorder %s7967_s3, %s5877_s25  ;;  %p5884_p12 = scmp.lt.u32.totalorder %s5877_s25, %s7967_s3 }
  0x39   : > { %p5880_p10 = pnand %p5878_p4, %p6387_p8 }
  0x3b   : > { %p5881_p11 = pneg %p5880_p10 }
  0x3d   : > { %p5886_p13 = pnand %p5884_p12, %p5881_p11 }
  0x3f   : > { %5889 = shalt.err (!%p5886_p13)
}
  0x40   : > { %s5890_s22 = scalar_lea.vmem %s6375_s26, 16  ;;  %s5897_s11 = scalar_lea.vmem %s6375_s26, 32 }
  0x41   : > { %p5891_p0 = scmp.ne.s32.totalorder %s6375_s26, %s5890_s22  ;;  %p5898_p7 = scmp.lt.s32.totalorder %s6375_s26, %s6375_s26 }
  0x42   : > { %p5899_p9 = scmp.lt.s32.totalorder %s5897_s11, %s5890_s22 }
  0x43   : > { %p5893_p2 = pnand %p5891_p0, %p6387_p8 }
  0x44   : > { %p5900_p4 = por %p5899_p9, %p5898_p7 }
  0x45   : > { %p5894_p5 = pneg %p5893_p2 }
  0x47   : > { %p5901_p10 = pnand %p5900_p4, %p5894_p5 }
  0x49   : > { %5904 = shalt.err (!%p5901_p10)
}
  0x4a   : > { %5712 = dma.hbm_to_vmem [thread:$0]  (!%p6371_p6), %s7967_s3, 16, %s6375_s26, [#allocation11]  }
  0x4b   : > { %s5905_s13 = scalar_lea.hbm %s7944_s5, 576 }
  0x4c   : > { %p5906_p11 = scmp.ne.s32.totalorder %s7944_s5, %s5905_s13  ;;  %p5912_p0 = scmp.lt.u32.totalorder %s5905_s13, %s7944_s5 }
  0x4e   : > { %p5908_p12 = pnand %p5906_p11, %p6387_p8 }
  0x50   : > { %p5909_p13 = pneg %p5908_p12 }
  0x52   : > { %p5914_p2 = pnand %p5912_p0, %p5909_p13 }
  0x54   : > { %5917 = shalt.err (!%p5914_p2)
}
  0x55   : > { %s5918_s26 = scalar_lea.vmem %s6377_s29, 576  ;;  %p5926_p4 = scmp.lt.s32.totalorder %s6377_s29, %s6377_s29 }
  0x56   : > { %p5919_p5 = scmp.ne.s32.totalorder %s6377_s29, %s5918_s26  ;;  %p5927_p10 = scmp.lt.s32.totalorder %s5918_s26, %s5918_s26 }
  0x58   : > { %p5921_p7 = pnand %p5919_p5, %p6387_p8  ;;  %p5928_p11 = por %p5927_p10, %p5926_p4 }
  0x5a   : > { %p5922_p9 = pneg %p5921_p7 }
  0x5c   : > { %p5929_p12 = pnand %p5928_p11, %p5922_p9 }
  0x5e   : > { %5932 = shalt.err (!%p5929_p12)
}
  0x5f   : > { %s7956_s28 = smov 64   ;;  %s6253_s22 = smov 4  }
  0x60   : > { %5718 = dma.hbm_to_vmem [thread:$0]  (!%p6371_p6), %s7944_s5, 576, %s6377_s29, [#allocation14], %s7956_s28, %s7956_s28, %s6253_s22  }
  0x61   : > { %s6254_s24 = smov [#allocation16]   ;;  %s6255_s12 = smov [#allocation19]  }
  0x62   : > { %s382_s30 = sshll.u32 %s6254_s24, 4  ;;  %s404_s13 = sshll.u32 %s6255_s12, 4  ;;  %s383_s30 = int_to_ptr.vmem [resolvable:$true] %s382_s30  ;;  %s405_s13 = int_to_ptr.vmem [resolvable:$true] %s404_s13 }
  0x63   : > { %s5933_s21 = scalar_lea.hbm %s7946_s7, 16 }
  0x64   : > { %p5934_p13 = scmp.ne.s32.totalorder %s7946_s7, %s5933_s21  ;;  %p5940_p5 = scmp.lt.u32.totalorder %s5933_s21, %s7946_s7 }
  0x66   : > { %p5936_p0 = pnand %p5934_p13, %p6387_p8 }
  0x68   : > { %p5937_p2 = pneg %p5936_p0 }
  0x6a   : > { %p5942_p7 = pnand %p5940_p5, %p5937_p2 }
  0x6c   : > { %5945 = shalt.err (!%p5942_p7)
}
  0x6d   : > { %s5946_s29 = scalar_lea.vmem %s383_s30, 16  ;;  %s5953_s11 = scalar_lea.vmem %s383_s30, 32 }
  0x6e   : > { %p5947_p9 = scmp.ne.s32.totalorder %s383_s30, %s5946_s29  ;;  %p5954_p11 = scmp.lt.s32.totalorder %s383_s30, %s383_s30 }
  0x6f   : > { %p5955_p12 = scmp.lt.s32.totalorder %s5953_s11, %s5946_s29 }
  0x70   : > { %p5949_p4 = pnand %p5947_p9, %p6387_p8 }
  0x71   : > { %p5956_p1 = por %p5955_p12, %p5954_p11 }
  0x72   : > { %p5950_p10 = pneg %p5949_p4 }
  0x74   : > { %p5957_p3 = pnand %p5956_p1, %p5950_p10 }
  0x76   : > { %5960 = shalt.err (!%p5957_p3)
}
  0x77   : > { %5724 = dma.hbm_to_vmem [thread:$0]  (!%p6371_p6), %s7946_s7, 16, %s383_s30, [#allocation17]  }
  0x78   : > { %s5961_s12 = scalar_lea.hbm %s7948_s9, 128 }
  0x79   : > { %p5962_p13 = scmp.ne.s32.totalorder %s7948_s9, %s5961_s12  ;;  %p5968_p3 = scmp.lt.u32.totalorder %s5961_s12, %s7948_s9 }
  0x7b   : > { %p5964_p0 = pnand %p5962_p13, %p6387_p8 }
  0x7d   : > { %p5965_p1 = pneg %p5964_p0 }
  0x7f   : > { %p5970_p2 = pnand %p5968_p3, %p5965_p1 }
  0x81   : > { %5973 = shalt.err (!%p5970_p2)
}
  0x82   : > { %s5974_s26 = scalar_lea.vmem %s405_s13, 128  ;;  %p5982_p4 = scmp.lt.s32.totalorder %s405_s13, %s405_s13 }
  0x83   : > { %p5975_p5 = scmp.ne.s32.totalorder %s405_s13, %s5974_s26  ;;  %p5983_p10 = scmp.lt.s32.totalorder %s5974_s26, %s5974_s26 }
  0x85   : > { %p5977_p7 = pnand %p5975_p5, %p6387_p8  ;;  %p5984_p11 = por %p5983_p10, %p5982_p4 }
  0x87   : > { %p5978_p9 = pneg %p5977_p7 }
  0x89   : > { %p5985_p12 = pnand %p5984_p11, %p5978_p9 }
  0x8b   : > { %5988 = shalt.err (!%p5985_p12)
}
  0x8c   : > { %5730 = dma.hbm_to_vmem [thread:$0]  (!%p6371_p6), %s7948_s9, 128, %s405_s13, [#allocation20]  }
  0x8d   : > { %s6256_s11 = smov [#allocation9]   ;;  %s6257_s24 = smov [#allocation12]  }
  0x8e   : > { %s325_s0 = sshll.u32 %s6256_s11, 4  ;;  %s347_s1 = sshll.u32 %s6257_s24, 4  ;;  %s326_s0 = int_to_ptr.vmem [resolvable:$true] %s325_s0  ;;  %s348_s1 = int_to_ptr.vmem [resolvable:$true] %s347_s1 }
  0x8f   : > { %s5989_s14 = scalar_lea.hbm %s7941_s2, 16 }
  0x90   : > { %p5990_p13 = scmp.ne.s32.totalorder %s7941_s2, %s5989_s14  ;;  %p5996_p3 = scmp.lt.u32.totalorder %s5989_s14, %s7941_s2 }
  0x92   : > { %p5992_p0 = pnand %p5990_p13, %p6387_p8 }
  0x94   : > { %p5993_p1 = pneg %p5992_p0 }
  0x96   : > { %p5998_p2 = pnand %p5996_p3, %p5993_p1 }
  0x98   : > { %6001 = shalt.err (!%p5998_p2)
}
  0x99   : > { %s6002_s13 = scalar_lea.vmem %s326_s0, 16  ;;  %s6009_s30 = scalar_lea.vmem %s326_s0, 32 }
  0x9a   : > { %p6003_p5 = scmp.ne.s32.totalorder %s326_s0, %s6002_s13  ;;  %p6010_p4 = scmp.lt.s32.totalorder %s326_s0, %s326_s0 }
  0x9b   : > { %p6011_p10 = scmp.lt.s32.totalorder %s6009_s30, %s6002_s13 }
  0x9c   : > { %p6005_p7 = pnand %p6003_p5, %p6387_p8 }
  0x9d   : > { %p6012_p11 = por %p6011_p10, %p6010_p4 }
  0x9e   : > { %p6006_p9 = pneg %p6005_p7 }
  0xa0   : > { %p6013_p12 = pnand %p6012_p11, %p6006_p9 }
  0xa2   : > { %6016 = shalt.err (!%p6013_p12)
}
  0xa3   : > { %5709 = dma.hbm_to_vmem [thread:$0]  (!%p6371_p6), %s7941_s2, 16, %s326_s0, [#allocation8]  }
  0xa4   : > { %s6017_s12 = scalar_lea.hbm %s7943_s4, 16 }
  0xa5   : > { %p6018_p13 = scmp.ne.s32.totalorder %s7943_s4, %s6017_s12  ;;  %p6024_p3 = scmp.lt.u32.totalorder %s6017_s12, %s7943_s4 }
  0xa7   : > { %p6020_p0 = pnand %p6018_p13, %p6387_p8 }
  0xa9   : > { %p6021_p1 = pneg %p6020_p0 }
  0xab   : > { %p6026_p2 = pnand %p6024_p3, %p6021_p1 }
  0xad   : > { %6029 = shalt.err (!%p6026_p2)
}
  0xae   : > { %s6030_s26 = scalar_lea.vmem %s348_s1, 16  ;;  %s6037_s0 = scalar_lea.vmem %s348_s1, 32 }
  0xaf   : > { %p6031_p5 = scmp.ne.s32.totalorder %s348_s1, %s6030_s26  ;;  %p6038_p4 = scmp.lt.s32.totalorder %s348_s1, %s348_s1 }
  0xb0   : > { %p6039_p10 = scmp.lt.s32.totalorder %s6037_s0, %s6030_s26 }
  0xb1   : > { %p6033_p7 = pnand %p6031_p5, %p6387_p8 }
  0xb2   : > { %p6040_p11 = por %p6039_p10, %p6038_p4 }
  0xb3   : > { %p6034_p9 = pneg %p6033_p7 }
  0xb5   : > { %p6041_p12 = pnand %p6040_p11, %p6034_p9 }
  0xb7   : > { %6044 = shalt.err (!%p6041_p12)
}
  0xb8   : > { %5715 = dma.hbm_to_vmem [thread:$0]  (!%p6371_p6), %s7943_s4, 16, %s348_s1, [#allocation11]  }
  0xb9   : > { %s6258_s29 = smov [#allocation15]   ;;  %s6259_s24 = smov [#allocation18]  }
  0xba   : > { %s371_s11 = sshll.u32 %s6258_s29, 4  ;;  %s393_s3 = sshll.u32 %s6259_s24, 4  ;;  %s372_s11 = int_to_ptr.vmem [resolvable:$true] %s371_s11  ;;  %s394_s3 = int_to_ptr.vmem [resolvable:$true] %s393_s3 }
  0xbb   : > { %s6045_s15 = scalar_lea.hbm %s7945_s6, 16 }
  0xbc   : > { %p6046_p13 = scmp.ne.s32.totalorder %s7945_s6, %s6045_s15  ;;  %p6052_p3 = scmp.lt.u32.totalorder %s6045_s15, %s7945_s6 }
  0xbe   : > { %p6048_p0 = pnand %p6046_p13, %p6387_p8 }
  0xc0   : > { %p6049_p1 = pneg %p6048_p0 }
  0xc2   : > { %p6054_p2 = pnand %p6052_p3, %p6049_p1 }
  0xc4   : > { %6057 = shalt.err (!%p6054_p2)
}
  0xc5   : > { %s6058_s1 = scalar_lea.vmem %s372_s11, 16  ;;  %s6065_s13 = scalar_lea.vmem %s372_s11, 32 }
  0xc6   : > { %p6059_p5 = scmp.ne.s32.totalorder %s372_s11, %s6058_s1  ;;  %p6066_p4 = scmp.lt.s32.totalorder %s372_s11, %s372_s11 }
  0xc7   : > { %p6067_p10 = scmp.lt.s32.totalorder %s6065_s13, %s6058_s1 }
  0xc8   : > { %p6061_p7 = pnand %p6059_p5, %p6387_p8 }
  0xc9   : > { %p6068_p11 = por %p6067_p10, %p6066_p4 }
  0xca   : > { %p6062_p9 = pneg %p6061_p7 }
  0xcc   : > { %p6069_p12 = pnand %p6068_p11, %p6062_p9 }
  0xce   : > { %6072 = shalt.err (!%p6069_p12)
}
  0xcf   : > { %5721 = dma.hbm_to_vmem [thread:$0]  (!%p6371_p6), %s7945_s6, 16, %s372_s11, [#allocation14]  }
  0xd0   : > { %s6073_s14 = scalar_lea.hbm %s7947_s8, 16 }
  0xd1   : > { %p6074_p13 = scmp.ne.s32.totalorder %s7947_s8, %s6073_s14  ;;  %p6080_p3 = scmp.lt.u32.totalorder %s6073_s14, %s7947_s8 }
  0xd3   : > { %p6076_p0 = pnand %p6074_p13, %p6387_p8 }
  0xd5   : > { %p6077_p1 = pneg %p6076_p0 }
  0xd7   : > { %p6082_p2 = pnand %p6080_p3, %p6077_p1 }
  0xd9   : > { %6085 = shalt.err (!%p6082_p2)
}
  0xda   : > { %s6086_s0 = scalar_lea.vmem %s394_s3, 16  ;;  %s6093_s11 = scalar_lea.vmem %s394_s3, 32 }
  0xdb   : > { %p6087_p5 = scmp.ne.s32.totalorder %s394_s3, %s6086_s0  ;;  %p6094_p4 = scmp.lt.s32.totalorder %s394_s3, %s394_s3 }
  0xdc   : > { %p6095_p10 = scmp.lt.s32.totalorder %s6093_s11, %s6086_s0 }
  0xdd   : > { %p6089_p7 = pnand %p6087_p5, %p6387_p8 }
  0xde   : > { %p6096_p11 = por %p6095_p10, %p6094_p4 }
  0xdf   : > { %p6090_p9 = pneg %p6089_p7 }
  0xe1   : > { %p6097_p12 = pnand %p6096_p11, %p6090_p9 }
  0xe3   : > { %6100 = shalt.err (!%p6097_p12)
}
  0xe4   : > { %5727 = dma.hbm_to_vmem [thread:$0]  (!%p6371_p6), %s7947_s8, 16, %s394_s3, [#allocation17]  }
  0xe5   : > { %s6260_s30 = smov [#allocation21]   ;;  %s6101_s14 = scalar_lea.hbm %s7949_s10, 128 }
  0xe6   : > { %s415_s29 = sshll.u32 %s6260_s30, 4  ;;  %p6102_p13 = scmp.ne.s32.totalorder %s7949_s10, %s6101_s14  ;;  %s416_s29 = int_to_ptr.vmem [resolvable:$true] %s415_s29 }
  0xe7   : > { %p6108_p3 = scmp.lt.u32.totalorder %s6101_s14, %s7949_s10 }
  0xe8   : > { %p6104_p0 = pnand %p6102_p13, %p6387_p8 }
  0xea   : > { %p6105_p1 = pneg %p6104_p0 }
  0xec   : > { %p6110_p2 = pnand %p6108_p3, %p6105_p1 }
  0xee   : > { %6113 = shalt.err (!%p6110_p2)
}
  0xef   : > { %s6114_s3 = scalar_lea.vmem %s416_s29, 128  ;;  %p6122_p4 = scmp.lt.s32.totalorder %s416_s29, %s416_s29 }
  0xf0   : > { %p6115_p5 = scmp.ne.s32.totalorder %s416_s29, %s6114_s3  ;;  %p6123_p10 = scmp.lt.s32.totalorder %s6114_s3, %s6114_s3 }
  0xf2   : > { %p6117_p7 = pnand %p6115_p5, %p6387_p8  ;;  %p6124_p11 = por %p6123_p10, %p6122_p4 }
  0xf4   : > { %p6118_p9 = pneg %p6117_p7 }
  0xf6   : > { %p6125_p12 = pnand %p6124_p11, %p6118_p9 }
  0xf8   : > { %6128 = shalt.err (!%p6125_p12)
}
  0xf9   : > { %5733 = dma.hbm_to_vmem [thread:$0]  (!%p6371_p6), %s7949_s10, 128, %s416_s29, [#allocation20]  }
  0xfa   : > { %s4963_s16 = sadd.s32 4294967294, %s6245_s20   ;;  %s6586_s27 = sadd.s32 1, %s6245_s20  }
  0xfb   : > { %s36_s1 = ssub.s32 %s6245_s20, %s6586_s27  ;;  %s39_s13 = sadd.s32 1, %s6241_s19 }
  0xfc   : > { %p37_p8 = scmp.eq.s32.totalorder %s36_s1, 0  ;;  %p46_p13 = scmp.ne.s32.totalorder %s6241_s19, %s6237_s18 }
  0xfd   : > { %p47_p0 = scmp.eq.s32.totalorder %s6245_s20, 0  ;;  %p52_p1 = scmp.ne.s32.totalorder %s6237_s18, %s6233_s17 }
  0xfe   : > { %s6597_s30 = scalar_select %p37_p8, %s6241_s19, %s39_s13  }
  0xff   : > { %p6599_p3 = por %p47_p0, %p46_p13  ;;  %p7969_p2 = scmp.eq.s32.totalorder %s6355_s23, 0 }
 0x100   : > { %p286_p5 = scmp.eq.s32.totalorder %s6355_s23, 1  ;;  %p292_p7 = scmp.eq.s32.totalorder %s4963_s16, 1 }
 0x101   : > { %p6605_p6 = por %p7969_p2, %p52_p1  ;;  %p5752_p9 = scmp.lt.s32.totalorder %s6245_s20, 2 }
 0x102   : > { %s426_s12 = sand.u32 1, %s6241_s19   ;;  %p6612_p4 = por %p286_p5, %p46_p13 }
 0x103   : > { %p6616_p10 = por %p292_p7, %p52_p1  ;;  %s4976_s21 = sshll.u32 %s426_s12, 6 }
 0x104   : > { %s7971_s14 = scalar_select %p6612_p4, 1, 0 }
 0x105   : > { %s7972_s15 = scalar_select %p6616_p10, 1, 0 }
 0x106   : > { %s5206_s25 = sshll.u32 %s6245_s20, 10  ;;  %s7973_s0 = sld [smem:[#allocation31_spill]] }
 0x107   : > { %s430_s16 = scalar_lea.vmem [#allocation4], %s4976_s21  ;;  %p6630_p11 = pnand %p5752_p9, %p6599_p3 }
 0x108   : > { %s437_s1 = sshll.u32 %s430_s16, 4  ;;  %s6634_s28 = scalar_lea.sflag [#allocation5], %s426_s12  ;;  %s6626_s1 = int_to_ptr.vmem [resolvable:$true] %s437_s1 }
 0x109   : > { %p6131_p8 = pneg %p6630_p11 }
 0x10c   : > { %s6624_s11 = scalar_lea.hbm %s7973_s0, %s5206_s25  ;;  %s6134_s24 = scalar_lea.hbm %s7973_s0, 2048 }
 0x10d   : > { %s6129_s26 = scalar_lea.hbm %s6624_s11, 1024  ;;  %p6135_p1 = scmp.lt.u32.totalorder %s6624_s11, %s7973_s0 }
 0x10e   : > { %p6130_p12 = scmp.ne.s32.totalorder %s6624_s11, %s6129_s26  ;;  %p6136_p3 = scmp.lt.u32.totalorder %s6134_s24, %s6129_s26 }
 0x10f   : > { %p6138_p5 = scmp.lt.u32.totalorder %s6129_s26, %s6624_s11 }
 0x110   : > { %p6132_p13 = pnand %p6131_p8, %p6130_p12  ;;  %p6137_p2 = por %p6136_p3, %p6135_p1 }
 0x112   : > { %p6133_p0 = pneg %p6132_p13  ;;  %p6139_p7 = por %p6138_p5, %p6137_p2 }
 0x114   : > { %p6140_p9 = pnand %p6139_p7, %p6133_p0 }
 0x116   : > { %6143 = shalt.err (!%p6140_p9)
}
 0x117   : > { %s6144_s12 = scalar_lea.vmem %s6626_s1, 1024  ;;  %s6261_s21 = smov [#allocation4]  }
 0x118   : > { %p6145_p12 = scmp.ne.s32.totalorder %s6626_s1, %s6144_s12  ;;  %s6149_s25 = sshll.u32 %s6261_s21, 4  ;;  %s6150_s25 = int_to_ptr.vmem [resolvable:$false] %s6149_s25 }
 0x119   : > { %s6151_s3 = scalar_lea.vmem %s6150_s25, 2048  ;;  %p6152_p4 = scmp.lt.s32.totalorder %s6626_s1, %s6150_s25 }
 0x11a   : > { %p6147_p13 = pnand %p6145_p12, %p6131_p8  ;;  %p6153_p1 = scmp.lt.s32.totalorder %s6151_s3, %s6144_s12 }
 0x11c   : > { %p6148_p10 = pneg %p6147_p13  ;;  %p6154_p3 = por %p6153_p1, %p6152_p4 }
 0x11e   : > { %p6155_p2 = pnand %p6154_p3, %p6148_p10 }
 0x120   : > { %6158 = shalt.err (!%p6155_p2)
}
 0x121   : > { %s7975_s26 = smov 64   ;;  %s7976_s24 = sld [smem:[#allocation30_spill]] }
 0x122   : > { %5737 = dma.hbm_to_vmem [thread:$0]  (!%p6630_p11), %s6624_s11, 1024, %s6626_s1, %s6634_s28, %s7975_s26, %s7975_s26, %s6253_s22  }
 0x127   : > { %p7977_p8 = scmp.ne.s32.totalorder %s7976_s24, 0 }
 0x128   : > { %s6668_s16 = sand.u32 (!%p7977_p8), 1, %s6237_s18  }
 0x129   : > { %449 = sbr.rel (%p7977_p8) target bundleno = 2347 (0x92b), region = 64  ;;  %s4980_s12 = sshll.u32 (!%p7977_p8), %s6668_s16, 6 }
 0x12a   : > { %s452_s21 = scalar_lea.sflag (!%p7977_p8), [#allocation5], %s6668_s16  ;;  %s6672_s25 = scalar_lea.vmem (!%p7977_p8), [#allocation4], %s4980_s12 }
 0x130   : > { %6204 = dma.done.wait (%p6605_p6), %s452_s21, 1024  }
 0x131   : > { %6206 = vsyncadd (%p6605_p6), %s452_s21, 4294966272  ;;  %p7978_p4 = scmp.eq.s32.totalorder %s6355_s23, 0 }
 0x133   : > { %6208 = dma.done.wait (%p7978_p4), [#allocation8], 304   ;;  %p7979_p10 = pmov %p7978_p4 }
 0x134   : > { %p7980_p11 = pmov %p7978_p4 }
 0x135   : > { %6210 = vsyncadd (%p7979_p10), [#allocation8], 4294966992 }
 0x136   : > { %6212 = dma.done.wait (%p7980_p11), [#allocation11], 32   ;;  %p7981_p0 = pmov %p7978_p4 }
 0x138   : > { %6214 = vsyncadd (%p7981_p0), [#allocation11], 4294967264  ;;  %p7982_p5 = pmov %p7981_p0 }
 0x139   : > { %p7983_p7 = pmov %p7981_p0 }
 0x13a   : > { %6216 = dma.done.wait (%p7982_p5), [#allocation14], 592  }
 0x13b   : > { %6218 = vsyncadd (%p7983_p7), [#allocation14], 4294966704  ;;  %p7984_p6 = pmov %p7981_p0 }
 0x13c   : > { %p7985_p9 = pmov %p7981_p0 }
 0x13d   : > { %6220 = dma.done.wait (%p7984_p6), [#allocation17], 32  }
 0x13e   : > { %6222 = vsyncadd (%p7985_p9), [#allocation17], 4294967264  ;;  %p7986_p12 = pmov %p7981_p0 }
 0x13f   : > { %p7987_p13 = pmov %p7981_p0 }
 0x140   : > { %6224 = dma.done.wait (%p7986_p12), [#allocation20], 256  }
 0x141   : > { %6226 = vsyncadd (%p7987_p13), [#allocation20], 4294967040  ;;  %vm639_vm0 = vcmask 27648   ;;  %vm641_vm1 = vcmask 24576   ;;  %v6262_v0 = vmov 0   ;;  %vm2623_vm2 = vcmask 60416  }
 0x142   : > { %640 = vst.msk [vmem:[#allocation2] sm:$0xf] %vm639_vm0, %v6262_v0  ;;  %644 = vst.msk [vmem:[#allocation2 + $0x48] sm:$0xf] %vm639_vm0, %v6262_v0  ;;  %vm2625_vm3 = vcmask 57344   ;;  %s6263_s28 = smov 124  }
 0x143   : > { %642 = vst.msk [vmem:[#allocation2 + $0x4] sm:$0x1] %vm641_vm1, %v6262_v0  ;;  %645 = vst.msk [vmem:[#allocation2 + $0x4c] sm:$0x1] %vm641_vm1, %v6262_v0  ;;  %vm679_vm4 = vsmask.f32 7938 }
 0x144   : > { %2624 = vst.msk [vmem:[#allocation3] sm:$0xf] %vm2623_vm2, %v6262_v0  ;;  %2628 = vst.msk [vmem:[#allocation3 + $0x48] sm:$0xf] %vm2623_vm2, %v6262_v0  ;;  %vm647_vm6 = vsmask.f32 256 }
 0x145   : > { %2626 = vst.msk [vmem:[#allocation3 + $0x4] sm:$0x1] %vm2625_vm3, %v6262_v0  ;;  %2629 = vst.msk [vmem:[#allocation3 + $0x4c] sm:$0x1] %vm2625_vm3, %v6262_v0  ;;  %v6710_v2 = vld [vmem:[%s6672_s25 + $0x8] sm:$0xf] }
 0x146   : > { %vm6705_vm5 = vmand %vm639_vm0, %vm679_vm4  ;;  %v6713_v3 = vld [vmem:[%s6672_s25] sm:$0xf]  ;;  %571 = vrot.lane.b32.xlu1 %v6710_v2, %s6263_s28  ;;  %v6726_v5 = vld [vmem:[%s6672_s25 + $0xc] sm:$0xf]  ;;  %vm1002_vm12 = vcmask 1041408   ;;  %vm989_vm0 = vcmask 31744  }
 0x147   : > { %567 = vrot.lane.b32.xlu0 %v6713_v3, %s6263_s28  ;;  %vm6721_vm7 = vmand %vm641_vm1, %vm647_vm6  ;;  %v6729_v6 = vld [vmem:[%s6672_s25 + $0x4] sm:$0xf]  ;;  %v6748_v10 = vld [vmem:[%s6672_s25 + $0x14] sm:$0xf]  ;;  %vm860_vm13 = vsmask.f32 3328 }
 0x148   : > { %vm6733_vm8 = vmand %vm641_vm1, %vm679_vm4  ;;  %v6751_v11 = vld [vmem:[%s6672_s25 + $0x10] sm:$0xf]  ;;  %v687_v16 = vld [vmem:[#allocation2 + $0x14] sm:$0x1]  ;;  %vm861_vm14 = vsmask.f32 7440 }
 0x149   : > { %v649_v7 = vld [vmem:[#allocation2] sm:$0x1]  ;;  %vm6739_vm9 = vmand %vm2625_vm3, %vm679_vm4  ;;  %v655_v14 = vld [vmem:[#allocation2 + $0x10] sm:$0x1]  ;;  %v688_v19 = vsel %vm6733_vm8, 0, %v687_v16  ;;  %vm1195_vm1 = vcmask 1042432  }
 0x14a   : > { %573 = vrot.lane.b32.xlu1 %v6726_v5, %s6263_s28  ;;  %v650_v12 = vsel %vm6721_vm7, 0, %v649_v7  ;;  %vm6757_vm10 = vmand %vm2623_vm2, %vm679_vm4  ;;  %v676_v15 = vld [vmem:[#allocation2 + $0x48] sm:$0x1]  ;;  %v656_v17 = vsel %vm6721_vm7, 0, %v655_v14  ;;  %v6774_v22 = vld [vmem:[%s6672_s25 + $0x1c] sm:$0xf] }
 0x14b   : > { %569 = vrot.lane.b32.xlu0 %v6729_v6, %s6263_s28  ;;  %651 = vst [vmem:[#allocation2] sm:$0x1] %v650_v12  ;;  %v677_v18 = vsel %vm6721_vm7, 0, %v676_v15  ;;  %vm6769_vm11 = vmand %vm2625_vm3, %vm647_vm6  ;;  %v2632_v21 = vld [vmem:[#allocation3] sm:$0x1]  ;;  %vm1196_vm2 = vcmask 1046532  }
 0x14c   : > { %v6777_v23 = vld [vmem:[%s6672_s25 + $0x18] sm:$0xf]  ;;  %657 = vst [vmem:[#allocation2 + $0x10] sm:$0x1] %v656_v17  ;;  %678 = vst [vmem:[#allocation2 + $0x48] sm:$0x1] %v677_v18 }
 0x14d   : > { %689 = vst [vmem:[#allocation2 + $0x14] sm:$0x1] %v688_v19  ;;  %v2633_v24 = vsel %vm6769_vm11, 0, %v2632_v21  ;;  %v2666_v25 = vld [vmem:[#allocation3 + $0xc] sm:$0x1]  ;;  %vm6936_vm15 = vmor %vm860_vm13, %vm861_vm14  ;;  %vm6265_vm4 = vmmov 0  }
 0x14e   : > { %v2669_v26 = vld [vmem:[#allocation3 + $0x14] sm:$0x1]  ;;  %577 = vrot.lane.b32.xlu1 %v6748_v10, %s6263_s28  ;;  %2634 = vst [vmem:[#allocation3] sm:$0x1] %v2633_v24  ;;  %v2667_v27 = vsel %vm6739_vm9, 0, %v2666_v25  ;;  %vm7031_vm3 = vmor %vm1195_vm1, %vm1196_vm2  ;;  %vm2412_vm6 = vcmask 1040384  }
 0x14f   : > { %575 = vrot.lane.b32.xlu0 %v6751_v11, %s6263_s28  ;;  %v2670_v28 = vsel %vm6739_vm9, 0, %v2669_v26  ;;  %v2672_v29 = vld [vmem:[#allocation3 + $0x1c] sm:$0x1]  ;;  %v2675_v30 = vld [vmem:[#allocation3 + $0x24] sm:$0x1]  ;;  %vm4644_vm13 = vcmask 1046534  }
 0x150   : > { %2668 = vst [vmem:[#allocation3 + $0xc] sm:$0x1] %v2667_v27  ;;  %2671 = vst [vmem:[#allocation3 + $0x14] sm:$0x1] %v2670_v28  ;;  %v2673_v31 = vsel %vm6739_vm9, 0, %v2672_v29  ;;  %v2676_v32 = vsel %vm6739_vm9, 0, %v2675_v30 }
 0x151   : > { %v2678_v33 = vld [vmem:[#allocation3 + $0x2c] sm:$0x1]  ;;  %v2681_v34 = vld [vmem:[#allocation3 + $0x34] sm:$0x1]  ;;  %2674 = vst [vmem:[#allocation3 + $0x1c] sm:$0x1] %v2673_v31 }
 0x152   : > { %2677 = vst [vmem:[#allocation3 + $0x24] sm:$0x1] %v2676_v32  ;;  %v2679_v35 = vsel %vm6739_vm9, 0, %v2678_v33  ;;  %v2682_v36 = vsel %vm6739_vm9, 0, %v2681_v34  ;;  %v2684_v37 = vld [vmem:[#allocation3 + $0x3c] sm:$0x1]  ;;  %581 = vrot.lane.b32.xlu1 %v6774_v22, %s6263_s28 }
 0x153   : > { %v2687_v38 = vld [vmem:[#allocation3 + $0x44] sm:$0x1]  ;;  %v6798_v39 = vld [vmem:[%s6672_s25 + $0x24] sm:$0xf]  ;;  %v6801_v40 = vld [vmem:[%s6672_s25 + $0x20] sm:$0xf]  ;;  %579 = vrot.lane.b32.xlu0 %v6777_v23, %s6263_s28 }
 0x154   : > { %2680 = vst [vmem:[#allocation3 + $0x2c] sm:$0x1] %v2679_v35  ;;  %2683 = vst [vmem:[#allocation3 + $0x34] sm:$0x1] %v2682_v36  ;;  %v2685_v41 = vsel %vm6739_vm9, 0, %v2684_v37  ;;  %v2688_v42 = vsel %vm6739_vm9, 0, %v2687_v38 }
 0x155   : > { %v652_v43 = vld [vmem:[#allocation2 + $0x8] sm:$0x1]  ;;  %v684_v44 = vld [vmem:[#allocation2 + $0xc] sm:$0x1]  ;;  %2686 = vst [vmem:[#allocation3 + $0x3c] sm:$0x1] %v2685_v41 }
 0x156   : > { %2689 = vst [vmem:[#allocation3 + $0x44] sm:$0x1] %v2688_v42  ;;  %v653_v45 = vsel %vm6721_vm7, 0, %v652_v43  ;;  %v685_v46 = vsel %vm6733_vm8, 0, %v684_v44  ;;  %v658_v47 = vld [vmem:[#allocation2 + $0x18] sm:$0x1]  ;;  %585 = vrot.lane.b32.xlu1 %v6798_v39, %s6263_s28 }
 0x157   : > { %v690_v48 = vld [vmem:[#allocation2 + $0x1c] sm:$0x1]  ;;  %654 = vst [vmem:[#allocation2 + $0x8] sm:$0x1] %v653_v45  ;;  %686 = vst [vmem:[#allocation2 + $0xc] sm:$0x1] %v685_v46  ;;  %583 = vrot.lane.b32.xlu0 %v6801_v40, %s6263_s28 }
 0x158   : > { %v659_v49 = vsel %vm6721_vm7, 0, %v658_v47  ;;  %v691_v50 = vsel %vm6733_vm8, 0, %v690_v48  ;;  %v661_v51 = vld [vmem:[#allocation2 + $0x20] sm:$0x1]  ;;  %v693_v52 = vld [vmem:[#allocation2 + $0x24] sm:$0x1] }
 0x159   : > { %660 = vst [vmem:[#allocation2 + $0x18] sm:$0x1] %v659_v49  ;;  %692 = vst [vmem:[#allocation2 + $0x1c] sm:$0x1] %v691_v50  ;;  %v662_v53 = vsel %vm6721_vm7, 0, %v661_v51  ;;  %v694_v54 = vsel %vm6733_vm8, 0, %v693_v52 }
 0x15a   : > { %v6824_v55 = vld [vmem:[%s6672_s25 + $0x2c] sm:$0xf]  ;;  %v6827_v56 = vld [vmem:[%s6672_s25 + $0x28] sm:$0xf]  ;;  %663 = vst [vmem:[#allocation2 + $0x20] sm:$0x1] %v662_v53 }
 0x15b   : > { %695 = vst [vmem:[#allocation2 + $0x24] sm:$0x1] %v694_v54  ;;  %v664_v57 = vld [vmem:[#allocation2 + $0x28] sm:$0x1]  ;;  %v696_v58 = vld [vmem:[#allocation2 + $0x2c] sm:$0x1]  ;;  %589 = vrot.lane.b32.xlu1 %v6824_v55, %s6263_s28  ;;  %587 = vrot.lane.b32.xlu0 %v6827_v56, %s6263_s28 }
 0x15c   : > { %v667_v59 = vld [vmem:[#allocation2 + $0x30] sm:$0x1]  ;;  %v665_v60 = vsel %vm6721_vm7, 0, %v664_v57  ;;  %v697_v61 = vsel %vm6733_vm8, 0, %v696_v58  ;;  %v699_v63 = vld [vmem:[#allocation2 + $0x34] sm:$0x1] }
 0x15d   : > { %v668_v62 = vsel %vm6721_vm7, 0, %v667_v59  ;;  %666 = vst [vmem:[#allocation2 + $0x28] sm:$0x1] %v665_v60  ;;  %698 = vst [vmem:[#allocation2 + $0x2c] sm:$0x1] %v697_v61  ;;  %v700_v0 = vsel %vm6733_vm8, 0, %v699_v63 }
 0x15e   : > { %669 = vst [vmem:[#allocation2 + $0x30] sm:$0x1] %v668_v62  ;;  %v670_v7 = vld [vmem:[#allocation2 + $0x38] sm:$0x1]  ;;  %v702_v12 = vld [vmem:[#allocation2 + $0x3c] sm:$0x1] }
 0x15f   : > { %701 = vst [vmem:[#allocation2 + $0x34] sm:$0x1] %v700_v0  ;;  %v671_v14 = vsel %vm6721_vm7, 0, %v670_v7  ;;  %v703_v15 = vsel %vm6733_vm8, 0, %v702_v12  ;;  %v673_v16 = vld [vmem:[#allocation2 + $0x40] sm:$0x1] }
 0x160   : > { %v705_v17 = vld [vmem:[#allocation2 + $0x44] sm:$0x1]  ;;  %672 = vst [vmem:[#allocation2 + $0x38] sm:$0x1] %v671_v14  ;;  %704 = vst [vmem:[#allocation2 + $0x3c] sm:$0x1] %v703_v15 }
 0x161   : > { %v674_v18 = vsel %vm6721_vm7, 0, %v673_v16  ;;  %v706_v19 = vsel %vm6733_vm8, 0, %v705_v17  ;;  %v681_v21 = vld [vmem:[#allocation2 + $0x4] sm:$0x1]  ;;  %v6856_v25 = vld [vmem:[%s6672_s25 + $0x34] sm:$0xf] }
 0x162   : > { %675 = vst [vmem:[#allocation2 + $0x40] sm:$0x1] %v674_v18  ;;  %707 = vst [vmem:[#allocation2 + $0x44] sm:$0x1] %v706_v19  ;;  %v682_v24 = vsel %vm6733_vm8, 0, %v681_v21  ;;  %593 = vrot.lane.b32.xlu1 %v6856_v25, %s6263_s28  ;;  %vm4647_vm14 = vcmask 1047559  }
 0x163   : > { %v6859_v26 = vld [vmem:[%s6672_s25 + $0x30] sm:$0xf]  ;;  %v976_v27 = vld [vmem:[#allocation7 + $0x2] sm:$0x3]  ;;  %683 = vst [vmem:[#allocation2 + $0x4] sm:$0x1] %v682_v24 }
 0x164   : > { %5641 = vmatprep.subr.msk.bf16.mxu0 %vm1002_vm12, %v976_v27  ;;  %591 = vrot.lane.b32.xlu0 %v6859_v26, %s6263_s28  ;;  %v6867_v28 = vld [vmem:[%s6672_s25 + $0x3c] sm:$0xf]  ;;  %v6870_v29 = vld [vmem:[%s6672_s25 + $0x38] sm:$0xf]  ;;  %v1004_v30 = vsel %vm1002_vm12, %v976_v27, 0  ;;  %s6266_s22 = smov 16  }
 0x165   : > { %5314 = vmatpush3.bf16.msra.mxu0 %v1004_v30  ;;  %v6877_v31 = vld [vmem:[#allocation7] sm:$0x3]  ;;  %v800_v50 = vld [vmem:[#allocation2 + $0x10] sm:$0xf]  ;;  %v794_v57 = vld [vmem:[#allocation2 + $0x8] sm:$0xf] }
 0x166   : > { %597 = vrot.lane.b32.xlu1 %v6867_v28, %s6263_s28  ;;  %5642 = vmatprep.subr.msk.bf16.mxu0 %vm1002_vm12, %v6877_v31  ;;  %v6885_v42 = vld [vmem:[#allocation2] sm:$0xf]  ;;  %v797_v58 = vld [vmem:[#allocation2 + $0xc] sm:$0x1]  ;;  %v806_v30 = vld [vmem:[#allocation2 + $0x18] sm:$0xf] }
 0x167   : > { %v864_v47 = vshrl.u32 %v6885_v42, 16  ;;  %s6267_s29 = smov 8   ;;  %s6268_s11 = smov 32   ;;  %vm4774_vm1 = vcmask 261120   ;;  %vm4776_vm2 = vcmask 326656  }
 0x168   : > { %595 = vrot.lane.b32.xlu0 %v6870_v29, %s6263_s28  ;;  %s6269_s1 = smov 24   ;;  %s6270_s13 = smov 48  }
 0x169   : > { %v866_v62 = vrot.slane %v864_v47, 4  ;;  %v812_v47 = vld [vmem:[#allocation2 + $0x20] sm:$0xf]  ;;  %s6271_s3 = smov 40   ;;  %s6272_s26 = smov 56  }
 0x16a   : > { %s4991_s24 = sshll.u32 %s6668_s16, 3  ;;  %s5203_s12 = sshll.u32 %s6355_s23, 7 }
 0x16b   : > { %s533_s21 = scalar_lea.vmem [#allocation22], %s4991_s24  ;;  %p8005_p3 = scmp.ne.s32.totalorder %s7971_s14, 0 }
 0x16c   : > { %s4798_s25 = sshll.u32 %s533_s21, 4  ;;  %s7897_s25 = int_to_ptr.vmem [resolvable:$true] %s4798_s25 }
 0x16d   : > { %s6159_s23 = scalar_lea.vmem %s7897_s25, 128 }
 0x16e   : > { %p6160_p1 = scmp.ne.s32.totalorder %s7897_s25, %s6159_s23 }
 0x170   : > { %p6161_p2 = pnand %p6160_p1, %p8005_p3 }
 0x172   : > { %p6162_p8 = pneg %p6161_p2 }
 0x1b8   : > { %v572_v32 = vpop.permute.xlu1 %571 }
 0x1b9   : > { %v568_v33 = vpop.permute.xlu0 %567  ;;  %v617_v36 = vmax.bf16 %v572_v32, %v6710_v2  ;;  %v809_v32 = vld [vmem:[#allocation2 + $0x1c] sm:$0x1] }
 0x1ba   : > { %v615_v37 = vmax.bf16 %v568_v33, %v6713_v3  ;;  %v867_v3 = vshll.u32 %v6885_v42, 16 }
 0x1bc   : > { %v574_v34 = vpop.permute.xlu1 %573  ;;  %v869_v15 = vrot.slane %v867_v3, 5 }
 0x1bd   : > { %v570_v35 = vpop.permute.xlu0 %569  ;;  %v618_v38 = vmax.bf16 %v574_v34, %v6726_v5  ;;  %v803_v5 = vld [vmem:[#allocation2 + $0x14] sm:$0x1] }
 0x1be   : > { %v616_v41 = vmax.bf16 %v570_v35, %v6729_v6 }
 0x1bf   : > { %v632_v43 = vmax.bf16 %v618_v38, %v617_v36  ;;  %v6903_v38 = vld [vmem:[#allocation2 + $0x4] sm:$0x1] }
 0x1c0   : > { %v631_v44 = vmax.bf16 %v616_v41, %v615_v37  ;;  %v578_v45 = vpop.permute.xlu1 %577  ;;  %v870_v41 = vor.u32 %v869_v15, %v866_v62 }
 0x1c1   : > { %v576_v46 = vpop.permute.xlu0 %575  ;;  %v720_v48 = vshrl.u32 %v632_v43, 16  ;;  %v620_v51 = vmax.bf16 %v578_v45, %v6748_v10  ;;  %v723_v6 = vshll.u32 %v632_v43, 16 }
 0x1c2   : > { %v712_v49 = vshrl.u32 %v631_v44, 16  ;;  %v619_v2 = vmax.bf16 %v576_v46, %v6751_v11  ;;  %v715_v54 = vshll.u32 %v631_v44, 16  ;;  %v873_v44 = vshll.u32 %v6903_v38, 16 }
 0x1c3   : > { %v722_v52 = vrot.slane %v720_v48, 7 }
 0x1c4   : > { %v714_v53 = vrot.slane %v712_v49, 7  ;;  %v633_v59 = vmax.bf16 %v620_v51, %v619_v2  ;;  %v582_v60 = vpop.permute.xlu1 %581  ;;  %v815_v51 = vld [vmem:[#allocation2 + $0x24] sm:$0x1]  ;;  %v875_v62 = vrot.slane %v873_v44, 5 }
 0x1c5   : > { %v580_v61 = vpop.permute.xlu0 %579  ;;  %v725_v63 = vor.u32 %v723_v6, %v722_v52  ;;  %v726_v0 = vrot.slane %v722_v52, 4  ;;  %v622_v11 = vmax.bf16 %v582_v60, %v6774_v22 }
 0x1c6   : > { %v717_v7 = vor.u32 %v715_v54, %v714_v53  ;;  %v718_v12 = vrot.slane %v714_v53, 4  ;;  %v728_v10 = vshrl.u32 %v633_v59, 16  ;;  %v621_v14 = vmax.bf16 %v580_v61, %v6777_v23  ;;  %v818_v53 = vld [vmem:[#allocation2 + $0x28] sm:$0xf] }
 0x1c7   : > { %v801_v16 = vsel %vm6705_vm5, %v725_v63, %v800_v50  ;;  %v804_v17 = vsel %vm6721_vm7, %v726_v0, %v803_v5  ;;  %v731_v21 = vshll.u32 %v633_v59, 16  ;;  %v708_v50 = vld [vmem:[#allocation2 + $0x4c] sm:$0x1]  ;;  %v6912_v54 = vrot.slane %v870_v41, 4 }
 0x1c8   : > { %v795_v18 = vsel %vm6705_vm5, %v717_v7, %v794_v57  ;;  %v798_v19 = vsel %vm6721_vm7, %v718_v12, %v797_v58  ;;  %802 = vst [vmem:[#allocation2 + $0x10] sm:$0xf] %v801_v16  ;;  %805 = vst [vmem:[#allocation2 + $0x14] sm:$0x1] %v804_v17  ;;  %v730_v22 = vrot.slane %v728_v10, 7  ;;  %v634_v23 = vmax.bf16 %v622_v11, %v621_v14  ;;  %v586_v24 = vpop.permute.xlu1 %585 }
 0x1c9   : > { %796 = vst [vmem:[#allocation2 + $0x8] sm:$0xf] %v795_v18  ;;  %799 = vst [vmem:[#allocation2 + $0xc] sm:$0x1] %v798_v19  ;;  %v584_v27 = vpop.permute.xlu0 %583  ;;  %v624_v33 = vmax.bf16 %v586_v24, %v6798_v39  ;;  %v709_v57 = vsel %vm6733_vm8, 0, %v708_v50  ;;  %vm4629_vm8 = vcmask 1041409  }
 0x1ca   : > { %v623_v34 = vmax.bf16 %v584_v27, %v6801_v40  ;;  %v733_v35 = vor.u32 %v731_v21, %v730_v22  ;;  %v734_v36 = vrot.slane %v730_v22, 4  ;;  %v736_v37 = vshrl.u32 %v634_v23, 16  ;;  %710 = vst [vmem:[#allocation2 + $0x4c] sm:$0x1] %v709_v57  ;;  %v821_v63 = vld [vmem:[#allocation2 + $0x2c] sm:$0x1] }
 0x1cb   : > { %v739_v48 = vshll.u32 %v634_v23, 16 }
 0x1cc   : > { %v635_v43 = vmax.bf16 %v624_v33, %v623_v34  ;;  %v807_v45 = vsel %vm6705_vm5, %v733_v35, %v806_v30  ;;  %v810_v46 = vsel %vm6721_vm7, %v734_v36, %v809_v32  ;;  %v738_v39 = vrot.slane %v736_v37, 7 }
 0x1cd   : > { %v590_v40 = vpop.permute.xlu1 %589  ;;  %v588_v49 = vpop.permute.xlu0 %587  ;;  %808 = vst [vmem:[#allocation2 + $0x18] sm:$0xf] %v807_v45  ;;  %811 = vst [vmem:[#allocation2 + $0x1c] sm:$0x1] %v810_v46 }
 0x1ce   : > { %v744_v2 = vshrl.u32 %v635_v43, 16  ;;  %v626_v3 = vmax.bf16 %v590_v40, %v6824_v55  ;;  %v625_v5 = vmax.bf16 %v588_v49, %v6827_v56  ;;  %v741_v52 = vor.u32 %v739_v48, %v738_v39 }
 0x1cf   : > { %v742_v6 = vrot.slane %v738_v39, 4  ;;  %v747_v59 = vshll.u32 %v635_v43, 16  ;;  %v6926_v17 = vld [vmem:[#allocation2 + $0x10] sm:$0xf] }
 0x1d0   : > { %v746_v58 = vrot.slane %v744_v2, 7  ;;  %v636_v60 = vmax.bf16 %v626_v3, %v625_v5  ;;  %v6916_v61 = vld [vmem:[#allocation2 + $0x8] sm:$0xf]  ;;  %v813_v55 = vsel %vm6705_vm5, %v741_v52, %v812_v47  ;;  %v6922_v12 = vld [vmem:[#allocation2 + $0xc] sm:$0x1]  ;;  %v892_v37 = vshrl.u32 %v6926_v17, 16 }
 0x1d1   : > { %v816_v56 = vsel %vm6721_vm7, %v742_v6, %v815_v51  ;;  %v878_v8 = vshrl.u32 %v6916_v61, 16  ;;  %v881_v10 = vshll.u32 %v6916_v61, 16  ;;  %814 = vst [vmem:[#allocation2 + $0x20] sm:$0xf] %v813_v55  ;;  %v887_v32 = vshll.u32 %v6922_v12, 16 }
 0x1d2   : > { %817 = vst [vmem:[#allocation2 + $0x24] sm:$0x1] %v816_v56  ;;  %v749_v11 = vor.u32 %v747_v59, %v746_v58  ;;  %v750_v14 = vrot.slane %v746_v58, 4  ;;  %v752_v15 = vshrl.u32 %v636_v60, 16  ;;  %v755_v16 = vshll.u32 %v636_v60, 16 }
 0x1d3   : > { %v880_v22 = vrot.slane %v878_v8, 4  ;;  %v883_v21 = vrot.slane %v881_v10, 5  ;;  %v876_v47 = vsel %vm6936_vm15, %v6912_v54, %v875_v62  ;;  %v889_v48 = vrot.slane %v887_v32, 5  ;;  %v830_v51 = vld [vmem:[#allocation2 + $0x38] sm:$0xf] }
 0x1d4   : > { %v594_v0 = vpop.permute.xlu1 %593  ;;  %v819_v23 = vsel %vm6705_vm5, %v749_v11, %v818_v53  ;;  %v822_v24 = vsel %vm6721_vm7, %v750_v14, %v821_v63  ;;  %v754_v27 = vrot.slane %v752_v15, 7  ;;  %v6947_v40 = vld [vmem:[#allocation2 + $0x18] sm:$0xf]  ;;  %v833_v2 = vld [vmem:[#allocation2 + $0x3c] sm:$0x1]  ;;  %v894_v6 = vrot.slane %v892_v37, 4 }
 0x1d5   : > { %v628_v18 = vmax.bf16 %v594_v0, %v6856_v25  ;;  %820 = vst [vmem:[#allocation2 + $0x28] sm:$0xf] %v819_v23  ;;  %823 = vst [vmem:[#allocation2 + $0x2c] sm:$0x1] %v822_v24  ;;  %v824_v25 = vld [vmem:[#allocation2 + $0x30] sm:$0xf]  ;;  %v884_v36 = vor.u32 %v883_v21, %v880_v22 }
 0x1d6   : > { %v592_v7 = vpop.permute.xlu0 %591  ;;  %v757_v41 = vor.u32 %v755_v16, %v754_v27  ;;  %v758_v43 = vrot.slane %v754_v27, 4  ;;  %v6955_v52 = vld [vmem:[#allocation2 + $0x14] sm:$0x1]  ;;  %v895_v53 = vshll.u32 %v6926_v17, 16  ;;  %v6958_v59 = vld [vmem:[#allocation2 + $0x1c] sm:$0x1] }
 0x1d7   : > { %v627_v19 = vmax.bf16 %v592_v7, %v6859_v26  ;;  %v827_v26 = vld [vmem:[#allocation2 + $0x34] sm:$0x1]  ;;  %v885_v39 = vrot.slane %v884_v36, 4  ;;  %v906_v60 = vshrl.u32 %v6947_v40, 16  ;;  %v901_v0 = vshll.u32 %v6955_v52, 16 }
 0x1d8   : > { %v598_v34 = vpop.permute.xlu1 %597  ;;  %v825_v49 = vsel %vm6705_vm5, %v757_v41, %v824_v25  ;;  %v828_v50 = vsel %vm6721_vm7, %v758_v43, %v827_v26  ;;  %v897_v56 = vrot.slane %v895_v53, 5  ;;  %v909_v8 = vshll.u32 %v6947_v40, 16  ;;  %v6964_v10 = vld [vmem:[#allocation2 + $0x20] sm:$0xf]  ;;  %v839_v16 = vld [vmem:[#allocation2 + $0x44] sm:$0x1] }
 0x1d9   : > { %v637_v33 = vmax.bf16 %v628_v18, %v627_v19  ;;  %v630_v44 = vmax.bf16 %v598_v34, %v6867_v28  ;;  %826 = vst [vmem:[#allocation2 + $0x30] sm:$0xf] %v825_v49  ;;  %829 = vst [vmem:[#allocation2 + $0x34] sm:$0x1] %v828_v50  ;;  %v890_v5 = vsel %vm6936_vm15, %v885_v39, %v889_v48  ;;  %v908_v7 = vrot.slane %v906_v60, 4 }
 0x1da   : > { %v596_v35 = vpop.permute.xlu0 %595  ;;  %v4992_v58 = vcombine.low %v876_v47, %v890_v5  ;;  %v836_v15 = vld [vmem:[#allocation2 + $0x40] sm:$0xf]  ;;  %v898_v18 = vor.u32 %v897_v56, %v894_v6  ;;  %v915_v19 = vshll.u32 %v6958_v59, 16  ;;  %v911_v23 = vrot.slane %v909_v8, 5  ;;  %v6973_v27 = vld [vmem:[#allocation2 + $0x24] sm:$0x1] }
 0x1db   : > { %v629_v45 = vmax.bf16 %v596_v35, %v6870_v29  ;;  %v760_v46 = vshrl.u32 %v637_v33, 16  ;;  %v763_v28 = vshll.u32 %v637_v33, 16  ;;  %v920_v32 = vshrl.u32 %v6964_v10, 16 }
 0x1dc   : > { %5315 = vmatprep.mubr.msk.bf16.mxu0 %vm989_vm0, %v4992_v58  ;;  %v6971_v24 = vld [vmem:[#allocation2 + $0x28] sm:$0xf]  ;;  %v923_v25 = vshll.u32 %v6964_v10, 16  ;;  %v899_v34 = vrot.slane %v898_v18, 4  ;;  %v912_v35 = vor.u32 %v911_v23, %v908_v7  ;;  %v903_v37 = vrot.slane %v901_v0, 5 }
 0x1dd   : > { %v638_v3 = vmax.bf16 %v630_v44, %v629_v45  ;;  %v762_v29 = vrot.slane %v760_v46, 7  ;;  %v6983_v41 = vld [vmem:[#allocation2 + $0x2c] sm:$0x1]  ;;  %v922_v43 = vrot.slane %v920_v32, 4  ;;  %v934_v45 = vshrl.u32 %v6971_v24, 16 }
 0x1de   : > { %v925_v44 = vrot.slane %v923_v25, 5  ;;  %v913_v46 = vrot.slane %v912_v35, 4  ;;  %v917_v47 = vrot.slane %v915_v19, 5  ;;  %v929_v1 = vshll.u32 %v6973_v27, 16 }
 0x1df   : > { %v768_v54 = vshrl.u32 %v638_v3, 16  ;;  %v771_v57 = vshll.u32 %v638_v3, 16  ;;  %v765_v62 = vor.u32 %v763_v28, %v762_v29  ;;  %v766_v55 = vrot.slane %v762_v29, 4  ;;  %v1231_v29 = vld [vmem:[#allocation7 + $0x4] sm:$0x3] }
 0x1e0   : > { %v6981_v36 = vld [vmem:[#allocation2 + $0x30] sm:$0xf]  ;;  %v937_v4 = vshll.u32 %v6971_v24, 16  ;;  %v926_v39 = vor.u32 %v925_v44, %v922_v43  ;;  %v936_v48 = vrot.slane %v934_v45, 4  ;;  %v943_v3 = vshll.u32 %v6983_v41, 16 }
 0x1e1   : > { %v770_v63 = vrot.slane %v768_v54, 7  ;;  %v831_v11 = vsel %vm6705_vm5, %v765_v62, %v830_v51  ;;  %v834_v14 = vsel %vm6721_vm7, %v766_v55, %v833_v2  ;;  %v948_v49 = vshrl.u32 %v6981_v36, 16  ;;  %v6999_v54 = vld [vmem:[#allocation2 + $0x34] sm:$0x1]  ;;  %v1171_v43 = vld [vmem:[#allocation2] sm:$0xe] }
 0x1e2   : > { %832 = vst [vmem:[#allocation2 + $0x38] sm:$0xf] %v831_v11  ;;  %835 = vst [vmem:[#allocation2 + $0x3c] sm:$0x1] %v834_v14  ;;  %v951_v50 = vshll.u32 %v6981_v36, 16  ;;  %v904_v51 = vsel %vm6936_vm15, %v899_v34, %v903_v37  ;;  %v918_v2 = vsel %vm6936_vm15, %v913_v46, %v917_v47  ;;  %v939_v28 = vrot.slane %v937_v4, 5 }
 0x1e3   : > { %v773_v22 = vor.u32 %v771_v57, %v770_v63  ;;  %v774_v21 = vrot.slane %v770_v63, 4  ;;  %v4993_v5 = vcombine.low %v904_v51, %v918_v2  ;;  %v1104_v6 = vsel %vm1002_vm12, %v6877_v31, 0  ;;  %v1172_v44 = vld [vmem:[#allocation2 + $0x8] sm:$0xe]  ;;  %v1175_v2 = vld [vmem:[#allocation2 + $0x20] sm:$0xe] }
 0x1e4   : > { %v950_v57 = vrot.slane %v948_v49, 4  ;;  %v927_v58 = vrot.slane %v926_v39, 4  ;;  %v940_v60 = vor.u32 %v939_v28, %v936_v48  ;;  %v953_v55 = vrot.slane %v951_v50, 5  ;;  %v1173_v48 = vld [vmem:[#allocation2 + $0x10] sm:$0xe] }
 0x1e5   : > { %v837_v26 = vsel %vm6705_vm5, %v773_v22, %v836_v15  ;;  %v840_v33 = vsel %vm6721_vm7, %v774_v21, %v839_v16  ;;  %5316 = vmatmul.mubr.msk.bf16.vlgmr.msra.gmra.mrb[0].mxu0 %vm989_vm0, %v4993_v5  ;;  %v931_v63 = vrot.slane %v929_v1, 5  ;;  %v945_v8 = vrot.slane %v943_v3, 5 }
 0x1e6   : > { %838 = vst [vmem:[#allocation2 + $0x40] sm:$0xf] %v837_v26  ;;  %841 = vst [vmem:[#allocation2 + $0x44] sm:$0x1] %v840_v33  ;;  %v941_v7 = vrot.slane %v940_v60, 4  ;;  %5324 = vmatpush3.bf16.msra.mxu0 %v1104_v6  ;;  %v954_v31 = vor.u32 %v953_v55, %v950_v57  ;;  %v957_v14 = vshll.u32 %v6999_v54, 16  ;;  %v5000_v37 = vcombine.low %v6885_v42, %v6916_v61 }
 0x1e7   : > { %5643 = vmatprep.subr.msk.bf16.mxu0 %vm1002_vm12, %v1231_v29  ;;  %v932_v18 = vsel %vm6936_vm15, %v927_v58, %v931_v63  ;;  %v5001_v45 = vcombine.low %v6926_v17, %v6947_v40  ;;  %v1257_v46 = vsel %vm1002_vm12, %v1231_v29, 0  ;;  %v1200_v47 = vrot.slane %v6903_v38, 5  ;;  %v1341_v42 = vld [vmem:[#allocation7 + $0x6] sm:$0x3]  ;;  %v1177_v55 = vld [vmem:[#allocation2 + $0x30] sm:$0xe] }
 0x1e8   : > { %v946_v19 = vsel %vm6936_vm15, %v941_v7, %v945_v8  ;;  %v955_v21 = vrot.slane %v954_v31, 4  ;;  %v959_v32 = vrot.slane %v957_v14, 5  ;;  %v5002_v1 = vcombine.low %v6964_v10, %v6971_v24  ;;  %v1174_v10 = vld [vmem:[#allocation2 + $0x18] sm:$0xe]  ;;  %v1450_v31 = vld [vmem:[#allocation2 + $0x8] sm:$0xf] }
 0x1e9   : > { %v6997_v53 = vld [vmem:[#allocation2 + $0x38] sm:$0xf]  ;;  %v7001_v62 = vld [vmem:[#allocation2 + $0x3c] sm:$0x1]  ;;  %v4994_v22 = vcombine.low %v932_v18, %v946_v19  ;;  %v5008_v4 = vrot.slane %v1171_v43, 9  ;;  %v1204_v61 = vrot.slane %v6922_v12, 5 }
 0x1ea   : > { %v962_v56 = vshrl.u32 %v6997_v53, 16  ;;  %v965_v0 = vshll.u32 %v6997_v53, 16  ;;  %v971_v16 = vshll.u32 %v7001_v62, 16  ;;  %v960_v33 = vsel %vm6936_vm15, %v955_v21, %v959_v32  ;;  %v1176_v12 = vld [vmem:[#allocation2 + $0x28] sm:$0xe] }
 0x1eb   : > { %5319 = vmatprep.mubr.msk.bf16.mxu0 %vm989_vm0, %v4994_v22  ;;  %v5009_v39 = vrot.slane %v1172_v44, 9  ;;  %v1201_v38 = vsel %vm7031_vm3, %v5008_v4, %v1200_v47  ;;  %v5003_v24 = vcombine.low %v6981_v36, %v6997_v53  ;;  %v1212_v49 = vrot.slane %v6958_v59, 5  ;;  %v1178_v53 = vld [vmem:[#allocation2 + $0x38] sm:$0xe]  ;;  %v5825_v21 = vld [vmem:[#allocation2 + $0x8] ss:$8 sps:$4 sm:$0xff]  }
 0x1ec   : > { %v964_v11 = vrot.slane %v962_v56, 4  ;;  %v967_v15 = vrot.slane %v965_v0, 5  ;;  %v973_v26 = vrot.slane %v971_v16, 5  ;;  %v5011_v51 = vrot.slane %v1174_v10, 9  ;;  %v1579_v0 = vld [vmem:[#allocation7 + $0x8] sm:$0x3] }
 0x1ed   : > { %v1205_v40 = vsel %vm7031_vm3, %v5009_v39, %v1204_v61  ;;  %v5013_v28 = vrot.slane %v1176_v12, 9  ;;  %v1220_v3 = vrot.slane %v6983_v41, 5  ;;  %v1208_v29 = vrot.slane %v6955_v52, 5 }
 0x1ee   : > { %v968_v23 = vor.u32 %v967_v15, %v964_v11  ;;  %v5016_v50 = vcombine.low %v1201_v38, %v1205_v40  ;;  %v5010_v5 = vrot.slane %v1173_v48, 9  ;;  %v5012_v6 = vrot.slane %v1175_v2, 9  ;;  %v1452_v11 = vld [vmem:[#allocation2 + $0x10] sm:$0xf]  ;;  %v5826_v38 = vld [vmem:[#allocation2 + $0x18] ss:$8 sps:$4 sm:$0xff]  }
 0x1ef   : > { %v1216_v57 = vrot.slane %v6973_v27, 5  ;;  %v1213_v36 = vsel %vm7031_vm3, %v5011_v51, %v1212_v49  ;;  %v1221_v59 = vsel %vm7031_vm3, %v5013_v28, %v1220_v3  ;;  %v1375_v41 = vsel %vm1002_vm12, %v1341_v42, 0  ;;  %v5827_v48 = vld [vmem:[#allocation2 + $0x28] ss:$8 sps:$4 sm:$0xff]  }
 0x1f0   : > { %v969_v25 = vrot.slane %v968_v23, 4  ;;  %v1209_v58 = vsel %vm7031_vm3, %v5010_v5, %v1208_v29  ;;  %v5015_v63 = vrot.slane %v1178_v53, 9  ;;  %v1228_v27 = vrot.slane %v7001_v62, 5  ;;  %v7075_v49 = vld [vmem:[#allocation7 + $0xa] sm:$0x3] }
 0x1f1   : > { %v5017_v60 = vcombine.low %v1209_v58, %v1213_v36  ;;  %v1217_v52 = vsel %vm7031_vm3, %v5012_v6, %v1216_v57  ;;  %v5014_v7 = vrot.slane %v1177_v55, 9  ;;  %v1224_v8 = vrot.slane %v6999_v54, 5  ;;  %v1464_v5 = vld [vmem:[#allocation2 + $0x40] sm:$0xf]  ;;  %v7079_v6 = vld [vmem:[#allocation2 + $0x24] sm:$0x1] }
 0x1f2   : > { %v974_v34 = vsel %vm6936_vm15, %v969_v25, %v973_v26  ;;  %v5018_v56 = vcombine.low %v1217_v52, %v1221_v59  ;;  %v1229_v14 = vsel %vm7031_vm3, %v5015_v63, %v1228_v27  ;;  %v1467_v15 = vshrl.u32 %v1450_v31, 16  ;;  %v1456_v26 = vld [vmem:[#allocation2 + $0x20] sm:$0xf]  ;;  %v7083_v52 = vld [vmem:[#allocation2 + $0x1c] sm:$0x1] }
 0x1f3   : > { %v4995_v35 = vcombine.low %v960_v33, %v974_v34  ;;  %v1470_v16 = vshll.u32 %v1450_v31, 16  ;;  %v1481_v18 = vshrl.u32 %v1452_v11, 16  ;;  %v1484_v62 = vshll.u32 %v1452_v11, 16  ;;  %v1460_v33 = vld [vmem:[#allocation2 + $0x30] sm:$0xf] }
 0x1f4   : > { %v1225_v19 = vsel %vm7031_vm3, %v5014_v7, %v1224_v8  ;;  %v1469_v23 = vrot.slane %v1467_v15, 4  ;;  %v7068_v34 = vld [vmem:[#allocation2 + $0xc] sm:$0x1]  ;;  %v1509_v43 = vshrl.u32 %v1456_v26, 16  ;;  %v1512_v44 = vshll.u32 %v1456_v26, 16 }
 0x1f5   : > { %5320 = vmatmul.mubr.msk.bf16.gmra.mrb[4].mxu0 %vm989_vm0, %v4995_v35  ;;  %v5019_v22 = vcombine.low %v1225_v19, %v1229_v14  ;;  %v1472_v54 = vrot.slane %v1470_v16, 5  ;;  %v1483_v32 = vrot.slane %v1481_v18, 4  ;;  %v1486_v25 = vrot.slane %v1484_v62, 5  ;;  %v1454_v35 = vld [vmem:[#allocation2 + $0x18] sm:$0xf] }
 0x1f6   : > { %5325 = vmatprep.mubr.msk.bf16.mxu0 %vm989_vm0, %v5000_v37  ;;  %v7070_v37 = vld [vmem:[#allocation2 + $0x14] sm:$0x1]  ;;  %v1540_v4 = vshll.u32 %v1460_v33, 16  ;;  %v1495_v61 = vshrl.u32 %v1454_v35, 16  ;;  %v1498_v39 = vshll.u32 %v1454_v35, 16  ;;  %v1476_v40 = vshll.u32 %v7068_v34, 16 }
 0x1f7   : > { %v1487_v47 = vor.u32 %v1486_v25, %v1483_v32  ;;  %v1490_v10 = vshll.u32 %v7070_v37, 16  ;;  %v1514_v51 = vrot.slane %v1512_v44, 5  ;;  %v1565_v63 = vshrl.u32 %v1464_v5, 16  ;;  %v7092_v14 = vld [vmem:[#allocation2 + $0x2c] sm:$0x1] }
 0x1f8   : > { %v1542_v29 = vrot.slane %v1540_v4, 5  ;;  %v1497_v57 = vrot.slane %v1495_v61, 4  ;;  %v1500_v36 = vrot.slane %v1498_v39, 5  ;;  %v1478_v59 = vrot.slane %v1476_v40, 5  ;;  %v5828_v18 = vld [vmem:[#allocation2 + $0x38] ss:$8 sps:$4 sm:$0xff]  }
 0x1f9   : > { %v1488_v28 = vrot.slane %v1487_v47, 4  ;;  %v1492_v53 = vrot.slane %v1490_v10, 5  ;;  %v1568_v27 = vshll.u32 %v1464_v5, 16  ;;  %v1518_v11 = vshll.u32 %v7079_v6, 16  ;;  %v7099_v47 = vld [vmem:[#allocation2 + $0x44] sm:$0x1] }
 0x1fa   : > { %v1501_v31 = vor.u32 %v1500_v36, %v1497_v57  ;;  %v1504_v62 = vshll.u32 %v7083_v52, 16  ;;  %v1532_v25 = vshll.u32 %v7092_v14, 16  ;;  %v1574_v61 = vshll.u32 %v7099_v47, 16  ;;  %v7106_v40 = vld [vmem:[#allocation2 + $0x3c] sm:$0x1] }
 0x1fb   : > { %v1493_v7 = vsel %vm6936_vm15, %v1488_v28, %v1492_v53  ;;  %v1570_v32 = vrot.slane %v1568_v27, 5  ;;  %v1520_v35 = vrot.slane %v1518_v11, 5  ;;  %v1848_v57 = vld [vmem:[#allocation7 + $0xc] sm:$0x3]  ;;  %v1685_v27 = vld [vmem:[#allocation2 + $0x30] sm:$0xe] }
 0x1fc   : > { %v1534_v39 = vrot.slane %v1532_v25, 5  ;;  %v1576_v5 = vrot.slane %v1574_v61, 5  ;;  %v1718_v11 = vrot.slane %v7079_v6, 5  ;;  %vm2361_vm5 = vcmask 64512  }
 0x1fd   : > { %5326 = vmatmul.mubr.msk.bf16.vlgmr.msra.gmra.mrb[0].mxu0 %vm989_vm0, %v5001_v45  ;;  %v1458_v45 = vld [vmem:[#allocation2 + $0x28] sm:$0xf]  ;;  %vm3004_vm7 = vcmask 1043456  }
 0x1fe   : > { %5334 = vmatpush3.bf16.msra.mxu0 %v1257_v46  ;;  %5329 = vmatprep.mubr.msk.bf16.mxu0 %vm989_vm0, %v5002_v1  ;;  %v1473_v46 = vor.u32 %v1472_v54, %v1469_v23  ;;  %v1537_v1 = vshrl.u32 %v1460_v33, 16  ;;  %v1523_v12 = vshrl.u32 %v1458_v45, 16  ;;  %v1567_v54 = vrot.slane %v1565_v63, 4 }
 0x1ff   : > { %5644 = vmatprep.subr.msk.bf16.mxu0 %vm1002_vm12, %v1341_v42  ;;  %v1605_v42 = vsel %vm1002_vm12, %v1579_v0, 0  ;;  %v1502_v33 = vrot.slane %v1501_v31, 4 }
 0x200   : > { %v1474_v2 = vrot.slane %v1473_v46, 4  ;;  %v1539_v3 = vrot.slane %v1537_v1, 4  ;;  %v1525_v58 = vrot.slane %v1523_v12, 4  ;;  %v1506_v1 = vrot.slane %v1504_v62, 5 }
 0x202   : > { %v1543_v8 = vor.u32 %v1542_v29, %v1539_v3  ;;  %v1507_v10 = vsel %vm6936_vm15, %v1502_v33, %v1506_v1  ;;  %v1560_v3 = vshll.u32 %v7106_v40, 16  ;;  %v1957_v1 = vld [vmem:[#allocation2 + $0x10] sm:$0xf] }
 0x204   : > { %v1544_v26 = vrot.slane %v1543_v8, 4 }
 0x205   : > { %5330 = vmatmul.mubr.msk.bf16.gmra.mrb[4].mxu0 %vm989_vm0, %v5003_v24  ;;  %v1526_v24 = vshll.u32 %v1458_v45, 16 }
 0x206   : > { %5335 = vmatprep.mubr.msk.bf16.mxu0 %vm989_vm0, %v5016_v50  ;;  %v1511_v50 = vrot.slane %v1509_v43, 4 }
 0x208   : > { %v1515_v55 = vor.u32 %v1514_v51, %v1511_v50  ;;  %v1763_v51 = vsel %vm1002_vm12, %v7075_v49, 0 }
 0x20a   : > { %v1516_v23 = vrot.slane %v1515_v55, 4 }
 0x20c   : > { %v1521_v4 = vsel %vm6936_vm15, %v1516_v23, %v1520_v35 }
 0x20d   : > { %5336 = vmatmul.mubr.msk.bf16.vlgmr.msra.gmra.mrb[0].mxu0 %vm989_vm0, %v5017_v60  ;;  %v1528_v60 = vrot.slane %v1526_v24, 5  ;;  %v1680_v24 = vld [vmem:[#allocation2 + $0x8] sm:$0xe]  ;;  %v5033_v50 = vcombine.low %v1507_v10, %v1521_v4 }
 0x20e   : > { %5344 = vmatpush3.bf16.msra.mxu0 %v1375_v41  ;;  %5339 = vmatprep.mubr.msk.bf16.mxu0 %vm989_vm0, %v5018_v56  ;;  %v1462_v41 = vld [vmem:[#allocation2 + $0x38] sm:$0xf]  ;;  %v7085_v56 = vld [vmem:[#allocation2 + $0x34] sm:$0x1]  ;;  %v5040_v36 = vrot.slane %v1680_v24, 9 }
 0x20f   : > { %5645 = vmatprep.subr.msk.bf16.mxu0 %vm1002_vm12, %v1579_v0  ;;  %v1479_v0 = vsel %vm6936_vm15, %v1474_v2, %v1478_v59  ;;  %v1551_v15 = vshrl.u32 %v1462_v41, 16  ;;  %v1554_v16 = vshll.u32 %v1462_v41, 16  ;;  %v1529_v19 = vor.u32 %v1528_v60, %v1525_v58 }
 0x210   : > { %v1706_v59 = vrot.slane %v7068_v34, 5  ;;  %v1710_v58 = vrot.slane %v7070_v37, 5  ;;  %v1562_v60 = vrot.slane %v1560_v3, 5  ;;  %v1683_v34 = vld [vmem:[#allocation2 + $0x20] sm:$0xe] }
 0x211   : > { %v1553_v43 = vrot.slane %v1551_v15, 4  ;;  %v1556_v44 = vrot.slane %v1554_v16, 5  ;;  %v1530_v45 = vrot.slane %v1529_v19, 4  ;;  %v5043_v31 = vrot.slane %v1683_v34, 9  ;;  %v1684_v15 = vld [vmem:[#allocation2 + $0x28] sm:$0xe] }
 0x212   : > { %v1707_v55 = vsel %vm7031_vm3, %v5040_v36, %v1706_v59  ;;  %v5045_v16 = vrot.slane %v1685_v27, 9  ;;  %v1714_v19 = vrot.slane %v7083_v52, 5  ;;  %v1686_v52 = vld [vmem:[#allocation2 + $0x38] sm:$0xe]  ;;  %v5830_v27 = vld [vmem:[#allocation2 + $0x20] ss:$8 sps:$4 sm:$0xff]  }
 0x213   : > { %v1557_v12 = vor.u32 %v1556_v44, %v1553_v43  ;;  %v1535_v2 = vsel %vm6936_vm15, %v1530_v45, %v1534_v39  ;;  %v1719_v23 = vsel %vm7031_vm3, %v5043_v31, %v1718_v11  ;;  %v2086_v43 = vld [vmem:[#allocation7 + $0xe] sm:$0x3]  ;;  %v1959_v44 = vld [vmem:[#allocation2 + $0x18] sm:$0xf]  ;;  %v5046_v45 = vrot.slane %v1686_v52, 9 }
 0x214   : > { %v1988_v4 = vshrl.u32 %v1959_v44, 16  ;;  %v1974_v39 = vshrl.u32 %v1957_v1, 16  ;;  %v2112_v59 = vsel %vm1002_vm12, %v2086_v43, 0  ;;  %v5831_v11 = vld [vmem:[#allocation2 + $0x30] ss:$8 sps:$4 sm:$0xff]  }
 0x215   : > { %5340 = vmatmul.mubr.msk.bf16.gmra.mrb[4].mxu0 %vm989_vm0, %v5019_v22  ;;  %v1546_v22 = vshll.u32 %v7085_v56, 16 }
 0x216   : > { %5345 = vmatprep.mubr.msk.bf16.mxu0 %vm989_vm0, %v5825_v21  ;;  %v5032_v21 = vcombine.low %v1479_v0, %v1493_v7  ;;  %v1682_v7 = vld [vmem:[#allocation2 + $0x18] sm:$0xe] }
 0x217   : > { %v1548_v46 = vrot.slane %v1546_v22, 5  ;;  %v5042_v62 = vrot.slane %v1682_v7, 9  ;;  %v5044_v22 = vrot.slane %v1684_v15, 9  ;;  %v2244_v15 = vld [vmem:[#allocation7 + $0x10] sm:$0x3] }
 0x21d   : > { %5346 = vmatmul.mubr.msk.bf16.vlgmr.msra.gmra.mrb[0].mxu0 %vm989_vm0, %v5826_v38  ;;  %v1549_v38 = vsel %vm6936_vm15, %v1544_v26, %v1548_v46  ;;  %v1730_v46 = vrot.slane %v7106_v40, 5  ;;  %v7153_v40 = vld [vmem:[#allocation2 + $0x14] sm:$0x1] }
 0x21e   : > { %5354 = vmatpush3.bf16.msra.mxu0 %v1605_v42  ;;  %5349 = vmatprep.mubr.msk.bf16.mxu0 %vm989_vm0, %v5827_v48  ;;  %v1571_v42 = vor.u32 %v1570_v32, %v1567_v54  ;;  %v1681_v48 = vld [vmem:[#allocation2 + $0x10] sm:$0xe]  ;;  %v5034_v28 = vcombine.low %v1535_v2, %v1549_v38  ;;  %v1687_v54 = vld [vmem:[#allocation2 + $0x40] sm:$0xe]  ;;  %v1715_v32 = vsel %vm7031_vm3, %v5042_v62, %v1714_v19  ;;  %v1977_v38 = vshll.u32 %v1957_v1, 16 }
 0x21f   : > { %5646 = vmatprep.subr.msk.bf16.mxu0 %vm1002_vm12, %v7075_v49  ;;  %v5041_v53 = vrot.slane %v1681_v48, 9  ;;  %v1558_v49 = vrot.slane %v1557_v12, 4  ;;  %v5049_v25 = vcombine.low %v1715_v32, %v1719_v23  ;;  %v5047_v35 = vrot.slane %v1687_v54, 9  ;;  %v1963_v48 = vld [vmem:[#allocation2 + $0x28] sm:$0xf] }
 0x220   : > { %v1572_v29 = vrot.slane %v1571_v42, 4  ;;  %v1991_v42 = vshll.u32 %v1959_v44, 16  ;;  %v1990_v12 = vrot.slane %v1988_v4, 4  ;;  %v1976_v2 = vrot.slane %v1974_v39, 4  ;;  %v5832_v39 = vld [vmem:[#allocation2 + $0x40] ss:$8 sps:$4 sm:$0xff]  }
 0x221   : > { %v1711_v63 = vsel %vm7031_vm3, %v5041_v53, %v1710_v58  ;;  %v1563_v37 = vsel %vm6936_vm15, %v1558_v49, %v1562_v60  ;;  %v2016_v3 = vshrl.u32 %v1963_v48, 16  ;;  %v2019_v36 = vshll.u32 %v1963_v48, 16  ;;  %v1965_v53 = vld [vmem:[#allocation2 + $0x30] sm:$0xf] }
 0x222   : > { %v1577_v41 = vsel %vm6936_vm15, %v1572_v29, %v1576_v5  ;;  %v5048_v8 = vcombine.low %v1707_v55, %v1711_v63  ;;  %v1993_v24 = vrot.slane %v1991_v42, 5  ;;  %v1967_v29 = vld [vmem:[#allocation2 + $0x38] sm:$0xf]  ;;  %v1983_v58 = vshll.u32 %v7153_v40, 16 }
 0x223   : > { %v5035_v0 = vcombine.low %v1563_v37, %v1577_v41  ;;  %v2044_v60 = vshrl.u32 %v1967_v29, 16  ;;  %v2047_v41 = vshll.u32 %v1967_v29, 16  ;;  %v2018_v37 = vrot.slane %v2016_v3, 4 }
 0x224   : > { %v1994_v5 = vor.u32 %v1993_v24, %v1990_v12  ;;  %v2021_v7 = vrot.slane %v2019_v36, 5  ;;  %v2033_v31 = vshll.u32 %v1965_v53, 16  ;;  %v1985_v23 = vrot.slane %v1983_v58, 5  ;;  %v7182_v36 = vld [vmem:[#allocation2 + $0x44] sm:$0x1] }
 0x225   : > { %5350 = vmatmul.mubr.msk.bf16.gmra.mrb[4].mxu0 %vm989_vm0, %v5828_v18  ;;  %v1726_v18 = vrot.slane %v7085_v56, 5  ;;  %v1882_v56 = vsel %vm1002_vm12, %v1848_v57, 0  ;;  %v2046_v62 = vrot.slane %v2044_v60, 4  ;;  %v2049_v19 = vrot.slane %v2047_v41, 5 }
 0x226   : > { %5355 = vmatprep.mubr.msk.bf16.mxu0 %vm989_vm0, %v5032_v21  ;;  %v1722_v21 = vrot.slane %v7092_v14, 5  ;;  %v1734_v14 = vrot.slane %v7099_v47, 5  ;;  %v1731_v47 = vsel %vm7031_vm3, %v5046_v45, %v1730_v46  ;;  %v2067_v60 = vshll.u32 %v7182_v36, 16 }
 0x227   : > { %v1727_v6 = vsel %vm7031_vm3, %v5045_v16, %v1726_v18  ;;  %v1969_v16 = vld [vmem:[#allocation2 + $0x40] sm:$0xf]  ;;  %v2050_v46 = vor.u32 %v2049_v19, %v2046_v62 }
 0x228   : > { %v1723_v26 = vsel %vm7031_vm3, %v5044_v22, %v1722_v21  ;;  %v1735_v61 = vsel %vm7031_vm3, %v5047_v35, %v1734_v14  ;;  %v1971_v22 = vld [vmem:[#allocation2 + $0x48] sm:$0xf]  ;;  %v7170_v35 = vld [vmem:[#allocation2 + $0x3c] sm:$0x1]  ;;  %v2058_v14 = vshrl.u32 %v1969_v16, 16 }
 0x229   : > { %v5050_v33 = vcombine.low %v1723_v26, %v1727_v6  ;;  %v5051_v10 = vcombine.low %v1731_v47, %v1735_v61  ;;  %v2022_v26 = vor.u32 %v2021_v7, %v2018_v37  ;;  %v2072_v44 = vshrl.u32 %v1971_v22, 16  ;;  %v7176_v47 = vld [vmem:[#allocation2 + $0x34] sm:$0x1]  ;;  %v2188_v7 = vld [vmem:[#allocation2 + $0x18] sm:$0xe] }
 0x22a   : > { %v2075_v45 = vshll.u32 %v1971_v22, 16  ;;  %v2053_v24 = vshll.u32 %v7170_v35, 16  ;;  %v2060_v48 = vrot.slane %v2058_v14, 4  ;;  %v2039_v3 = vshll.u32 %v7176_v47, 16  ;;  %v2192_v14 = vld [vmem:[#allocation2 + $0x38] sm:$0xe] }
 0x22b   : > { %v2051_v29 = vrot.slane %v2050_v46, 4 }
 0x22c   : > { %v2055_v58 = vrot.slane %v2053_v24, 5  ;;  %v2041_v37 = vrot.slane %v2039_v3, 5  ;;  %v2193_v24 = vld [vmem:[#allocation2 + $0x40] sm:$0xe]  ;;  %v2237_v3 = vrot.slane %v7182_v36, 5 }
 0x22d   : > { %5356 = vmatmul.mubr.msk.bf16.vlgmr.msra.gmra.mrb[0].mxu0 %vm989_vm0, %v5033_v50  ;;  %v5829_v50 = vld [vmem:[#allocation2 + $0x10] ss:$8 sps:$4 sm:$0xff]  }
 0x22e   : > { %5364 = vmatpush3.bf16.msra.mxu0 %v1763_v51  ;;  %5359 = vmatprep.mubr.msk.bf16.mxu0 %vm989_vm0, %v5034_v28  ;;  %v7155_v51 = vld [vmem:[#allocation2 + $0x1c] sm:$0x1]  ;;  %v1979_v28 = vrot.slane %v1977_v38, 5  ;;  %v5088_v36 = vld [vmem:[#allocation9] ss:$0 sm:$0xff] }
 0x22f   : > { %5647 = vmatprep.subr.msk.bf16.mxu0 %vm1002_vm12, %v1848_v57  ;;  %v1961_v57 = vld [vmem:[#allocation2 + $0x20] sm:$0xf]  ;;  %v1997_v49 = vshll.u32 %v7155_v51, 16 }
 0x230   : > { %v1980_v55 = vor.u32 %v1979_v28, %v1976_v2  ;;  %v2002_v63 = vshrl.u32 %v1961_v57, 16  ;;  %v2005_v34 = vshll.u32 %v1961_v57, 16  ;;  %v2074_v2 = vrot.slane %v2072_v44, 4  ;;  %v2189_v44 = vld [vmem:[#allocation2 + $0x20] sm:$0xe] }
 0x231   : > { %v1999_v18 = vrot.slane %v1997_v49, 5  ;;  %v2077_v28 = vrot.slane %v2075_v45, 5  ;;  %v7184_v49 = vld [vmem:[#allocation2 + $0x4c] sm:$0x1] }
 0x232   : > { %v1981_v21 = vrot.slane %v1980_v55, 4  ;;  %v2004_v6 = vrot.slane %v2002_v63, 4  ;;  %v2007_v54 = vrot.slane %v2005_v34, 5  ;;  %v2081_v34 = vshll.u32 %v7184_v49, 16 }
 0x233   : > { %v2078_v63 = vor.u32 %v2077_v28, %v2074_v2  ;;  %v5078_v28 = vrot.slane %v2193_v24, 9 }
 0x234   : > { %v1986_v1 = vsel %vm6936_vm15, %v1981_v21, %v1985_v23  ;;  %v2008_v4 = vor.u32 %v2007_v54, %v2004_v6  ;;  %v2083_v22 = vrot.slane %v2081_v34, 5  ;;  %v2187_v21 = vld [vmem:[#allocation2 + $0x10] sm:$0xe]  ;;  %v5073_v23 = vrot.slane %v2188_v7, 9 }
 0x235   : > { %5360 = vmatmul.mubr.msk.bf16.gmra.mrb[4].mxu0 %vm989_vm0, %v5035_v0  ;;  %v1995_v0 = vrot.slane %v1994_v5, 4  ;;  %v2079_v19 = vrot.slane %v2078_v63, 4  ;;  %v2217_v6 = vrot.slane %v7155_v51, 5  ;;  %v5072_v54 = vrot.slane %v2187_v21, 9 }
 0x236   : > { %5365 = vmatprep.mubr.msk.bf16.mxu0 %vm989_vm0, %v5048_v8  ;;  %v2030_v8 = vshrl.u32 %v1965_v53, 16  ;;  %v2009_v5 = vrot.slane %v2008_v4, 4  ;;  %v5077_v4 = vrot.slane %v2192_v14, 9 }
 0x237   : > { %v2000_v32 = vsel %vm6936_vm15, %v1995_v0, %v1999_v18 }
 0x238   : > { %v2032_v52 = vrot.slane %v2030_v8, 4  ;;  %v5064_v38 = vcombine.low %v1986_v1, %v2000_v32  ;;  %v2191_v1 = vld [vmem:[#allocation2 + $0x30] sm:$0xe] }
 0x23d   : > { %5366 = vmatmul.mubr.msk.bf16.vlgmr.msra.gmra.mrb[0].mxu0 %vm989_vm0, %v5049_v25  ;;  %v7166_v25 = vld [vmem:[#allocation2 + $0x24] sm:$0x1] }
 0x23e   : > { %5374 = vmatpush3.bf16.msra.mxu0 %v1882_v56  ;;  %5369 = vmatprep.mubr.msk.bf16.mxu0 %vm989_vm0, %v5050_v33  ;;  %v7168_v56 = vld [vmem:[#allocation2 + $0x2c] sm:$0x1]  ;;  %v2035_v33 = vrot.slane %v2033_v31, 5  ;;  %v2011_v42 = vshll.u32 %v7166_v25, 16  ;;  %v2270_v31 = vsel %vm1002_vm12, %v2244_v15, 0 }
 0x23f   : > { %5648 = vmatprep.subr.msk.bf16.mxu0 %vm1002_vm12, %v2086_v43  ;;  %v2061_v43 = vshll.u32 %v1969_v16, 16  ;;  %v2025_v61 = vshll.u32 %v7168_v56, 16  ;;  %v2069_v16 = vrot.slane %v2067_v60, 5 }
 0x240   : > { %v2036_v12 = vor.u32 %v2035_v33, %v2032_v52  ;;  %v2218_v52 = vsel %vm7031_vm3, %v5073_v23, %v2217_v6  ;;  %v2190_v33 = vld [vmem:[#allocation2 + $0x28] sm:$0xe] }
 0x241   : > { %v2027_v57 = vrot.slane %v2025_v61, 5  ;;  %v5075_v46 = vrot.slane %v2190_v33, 9  ;;  %v5074_v61 = vrot.slane %v2189_v44, 9 }
 0x242   : > { %v2037_v53 = vrot.slane %v2036_v12, 4 }
 0x245   : > { %5370 = vmatmul.mubr.msk.bf16.gmra.mrb[4].mxu0 %vm989_vm0, %v5051_v10  ;;  %v2023_v10 = vrot.slane %v2022_v26, 4  ;;  %v2084_v26 = vsel %vm6936_vm15, %v2079_v19, %v2083_v22 }
 0x246   : > { %5375 = vmatprep.mubr.msk.bf16.mxu0 %vm989_vm0, %v5829_v50  ;;  %v2063_v50 = vrot.slane %v2061_v43, 5 }
 0x247   : > { %v2028_v41 = vsel %vm6936_vm15, %v2023_v10, %v2027_v57  ;;  %v2229_v10 = vrot.slane %v7176_v47, 5 }
 0x248   : > { %v2064_v55 = vor.u32 %v2063_v50, %v2060_v48  ;;  %v2194_v48 = vld [vmem:[#allocation2 + $0x48] sm:$0xe] }
 0x249   : > { %v5079_v47 = vrot.slane %v2194_v48, 9 }
 0x24a   : > { %v2065_v62 = vrot.slane %v2064_v55, 4 }
 0x24c   : > { %v2070_v32 = vsel %vm6936_vm15, %v2065_v62, %v2069_v16 }
 0x24d   : > { %5376 = vmatmul.mubr.msk.bf16.vlgmr.msra.gmra.mrb[0].mxu0 %vm989_vm0, %v5830_v27  ;;  %v2056_v27 = vsel %vm6936_vm15, %v2051_v29, %v2055_v58  ;;  %v5067_v43 = vcombine.low %v2070_v32, %v2084_v26  ;;  %v2241_v29 = vrot.slane %v7184_v49, 5  ;;  %v6264_v58 = vmov 0.0  }
 0x24e   : > { %5384 = vmatpush3.bf16.msra.mxu0 %v2112_v59  ;;  %5379 = vmatprep.mubr.msk.bf16.mxu0 %vm989_vm0, %v5831_v11  ;;  %v2013_v59 = vrot.slane %v2011_v42, 5  ;;  %v2042_v11 = vsel %vm6936_vm15, %v2037_v53, %v2041_v37  ;;  %v2233_v42 = vrot.slane %v7170_v35, 5  ;;  %v2414_v53 = vld [vmem:[#allocation19] sm:$0xff] }
 0x24f   : > { %5649 = vmatprep.subr.msk.bf16.mxu0 %vm1002_vm12, %v2244_v15  ;;  %v5066_v18 = vcombine.low %v2042_v11, %v2056_v27  ;;  %v2213_v15 = vrot.slane %v7153_v40, 5  ;;  %v2225_v40 = vrot.slane %v7168_v56, 5  ;;  %v2242_v57 = vsel %vm7031_vm3, %v5079_v47, %v2241_v29  ;;  %5403 = vmatprep.subr.mxu1 %v6264_v58 }
 0x250   : > { %v2014_v0 = vsel %vm6936_vm15, %v2009_v5, %v2013_v59  ;;  %v2234_v56 = vsel %vm7031_vm3, %v5077_v4, %v2233_v42  ;;  %v2238_v5 = vsel %vm7031_vm3, %v5078_v28, %v2237_v3  ;;  %5405 = vmatprep.mubr.msk.f32.mxu1 %vm6265_vm4, %v6264_v58  ;;  %5404 = vmatpush3.msra.mxu1 %v2414_v53  ;;  %vm4641_vm12 = vcmask 1045509  }
 0x251   : > { %v5065_v8 = vcombine.low %v2014_v0, %v2028_v41  ;;  %v2214_v51 = vsel %vm7031_vm3, %v5072_v54, %v2213_v15  ;;  %v2226_v12 = vsel %vm7031_vm3, %v5075_v46, %v2225_v40  ;;  %v5083_v59 = vcombine.low %v2238_v5, %v2242_v57  ;;  %5408 = vmatprep.subr.mxu1 %v6264_v58 }
 0x252   : > { %v5080_v45 = vcombine.low %v2214_v51, %v2218_v52 }
 0x255   : > { %5380 = vmatmul.mubr.msk.bf16.gmra.mrb[4].mxu0 %vm989_vm0, %v5832_v39  ;;  %v2221_v39 = vrot.slane %v7166_v25, 5 }
 0x256   : > { %5385 = vmatprep.mubr.msk.bf16.mxu0 %vm989_vm0, %v5064_v38  ;;  %v5076_v38 = vrot.slane %v2191_v1, 9 }
 0x257   : > { %v2222_v50 = vsel %vm7031_vm3, %v5074_v61, %v2221_v39 }
 0x258   : > { %v5081_v35 = vcombine.low %v2222_v50, %v2226_v12  ;;  %v2230_v2 = vsel %vm7031_vm3, %v5076_v38, %v2229_v10 }
 0x259   : > { %v5082_v25 = vcombine.low %v2230_v2, %v2234_v56 }
 0x25d   : > { %5386 = vmatmul.mubr.msk.bf16.vlgmr.msra.gmra.mrb[0].mxu0 %vm989_vm0, %v5065_v8 }
 0x25e   : > { %5394 = vmatpush3.bf16.msra.mxu0 %v2270_v31  ;;  %5389 = vmatprep.mubr.msk.bf16.mxu0 %vm989_vm0, %v5066_v18 }
 0x25f   : > { %5503 = vmatprep.subr.mxu0 %v6264_v58 }
 0x265   : > { %5390 = vmatmul.mubr.msk.bf16.gmra.mrb[4].mxu0 %vm989_vm0, %v5067_v43 }
 0x266   : > { %5395 = vmatprep.mubr.msk.bf16.mxu0 %vm989_vm0, %v5080_v45 }
 0x26d   : > { %5396 = vmatmul.mubr.msk.bf16.vlgmr.msra.gmra.mrb[0].mxu0 %vm989_vm0, %v5081_v35 }
 0x26e   : > { %5399 = vmatprep.mubr.msk.bf16.mxu0 %vm989_vm0, %v5082_v25 }
 0x275   : > { %5400 = vmatmul.mubr.msk.bf16.gmra.mrb[4].mxu0 %vm989_vm0, %v5083_v59  ;;  %vm4772_vm0 = vcmask 195584  }
 0x276   : > { %5505 = vmatprep.mubr.msk.f32.mxu0 %vm6265_vm4, %v6264_v58 }
 0x340   : > { %v5397_v49 = vpop.f32.mrb[0].mxu0 }
 0x341   : > { %v2306_v60 = vpop.f32.mrb[1].mxu0  ;;  %v7239_v41 = vadd.f32 %v5397_v49, %v5088_v36 }
 0x342   : > { %v7241_v55 = vadd.f32 %v5088_v36, %v2306_v60  ;;  %v5398_v63 = vpop.f32.mrb[2].mxu0 }
 0x343   : > { %v2309_v34 = vpop.f32.mrb[3].mxu0  ;;  %v7245_v27 = vadd.f32 %v5398_v63, %v5088_v36  ;;  %v2385_v7 = vmul.f32 %v7239_v41, %v7239_v41  ;;  %v2365_v18 = vsel %vm2361_vm5, %v7239_v41, 0.0 }
 0x344   : > { %v2383_v37 = vmul.f32 %v7241_v55, %v7241_v55  ;;  %v7247_v0 = vadd.f32 %v5088_v36, %v2309_v34  ;;  %v2362_v8 = vsel %vm2361_vm5, %v7241_v55, 0.0 }
 0x345   : > { %v2386_v19 = vmul.f32 %v7245_v27, %v7245_v27  ;;  %v2394_v15 = vsel %vm2361_vm5, %v2385_v7, 0.0  ;;  %v2367_v32 = vsel %vm2361_vm5, %v7245_v27, 0.0 }
 0x346   : > { %v2363_v31 = vsel %vm2361_vm5, %v7247_v0, 0.0  ;;  %v2384_v11 = vmul.f32 %v7247_v0, %v7247_v0  ;;  %v2391_v62 = vsel %vm2361_vm5, %v2383_v37, 0.0 }
 0x347   : > { %v2364_v16 = vadd.f32 %v2363_v31, %v2362_v8  ;;  %v2396_v44 = vsel %vm2361_vm5, %v2386_v19, 0.0  ;;  %v2635_v19 = vld [vmem:[#allocation3 + $0x8] sm:$0x1] }
 0x348   : > { %v2392_v22 = vsel %vm2361_vm5, %v2384_v11, 0.0  ;;  %v5401_v21 = vpop.f32.mrb[4].mxu0  ;;  %v2488_v11 = vld [vmem:[#allocation21] sm:$0xff] }
 0x349   : > { %v2366_v23 = vadd.f32 %v2365_v18, %v2364_v16  ;;  %v2393_v6 = vadd.f32 %v2392_v22, %v2391_v62  ;;  %v2322_v54 = vpop.f32.mrb[5].mxu0  ;;  %v7268_v14 = vadd.f32 %v5401_v21, %v5088_v36  ;;  %v2638_v22 = vld [vmem:[#allocation3 + $0x10] sm:$0x1]  ;;  %v2641_v21 = vld [vmem:[#allocation3 + $0x18] sm:$0x1] }
 0x34a   : > { %v7266_v26 = vadd.f32 %v5088_v36, %v2322_v54  ;;  %v5402_v52 = vpop.f32.mrb[6].mxu0  ;;  %v2642_v54 = vsel %vm6769_vm11, 0, %v2641_v21  ;;  %v5092_v21 = vld [vmem:[#allocation12] ss:$0 sm:$0xff] }
 0x34b   : > { %v2395_v33 = vadd.f32 %v2394_v15, %v2393_v6  ;;  %v2368_v43 = vadd.f32 %v2367_v32, %v2366_v23  ;;  %v2325_v51 = vpop.f32.mrb[7].mxu0  ;;  %v7277_v42 = vadd.f32 %v5402_v52, %v5088_v36  ;;  %v2389_v38 = vmul.f32 %v7268_v14, %v7268_v14  ;;  %v2644_v15 = vld [vmem:[#allocation3 + $0x20] sm:$0x1]  ;;  %2643 = vst [vmem:[#allocation3 + $0x18] sm:$0x1] %v2642_v54 }
 0x34c   : > { %v2369_v45 = vsel %vm2361_vm5, %v7266_v26, 0.0  ;;  %v2387_v46 = vmul.f32 %v7266_v26, %v7266_v26  ;;  %v7275_v40 = vadd.f32 %v5088_v36, %v2325_v51  ;;  %v2373_v56 = vsel %vm2361_vm5, %v7268_v14, 0.0  ;;  %v2647_v52 = vld [vmem:[#allocation3 + $0x28] sm:$0x1] }
 0x34d   : > { %v2370_v1 = vadd.f32 %v2369_v45, %v2368_v43  ;;  %v2397_v4 = vadd.f32 %v2396_v44, %v2395_v33  ;;  %v2390_v48 = vmul.f32 %v7277_v42, %v7277_v42  ;;  %v2375_v2 = vsel %vm2361_vm5, %v7277_v42, 0.0  ;;  %v2650_v33 = vld [vmem:[#allocation3 + $0x30] sm:$0x1]  ;;  %v2653_v44 = vld [vmem:[#allocation3 + $0x38] sm:$0x1] }
 0x34e   : > { %v2398_v61 = vsel %vm2361_vm5, %v2387_v46, 0.0  ;;  %v2371_v39 = vsel %vm2361_vm5, %v7275_v40, 0.0  ;;  %v2388_v24 = vmul.f32 %v7275_v40, %v7275_v40  ;;  %v2402_v25 = vsel %vm2361_vm5, %v2389_v38, 0.0  ;;  %v2979_v46 = vld [vmem:[#allocation13 + $0x4] sm:$0xf] }
 0x34f   : > { %v2399_v10 = vadd.f32 %v2398_v61, %v2397_v4  ;;  %v2372_v12 = vadd.f32 %v2371_v39, %v2370_v1  ;;  %v2404_v29 = vsel %vm2361_vm5, %v2390_v48, 0.0  ;;  %v2636_v23 = vsel %vm6769_vm11, 0, %v2635_v19  ;;  %v2663_v1 = vld [vmem:[#allocation3 + $0x4] sm:$0x1]  ;;  %v7318_v39 = vld [vmem:[#allocation13] sm:$0xf] }
 0x350   : > { %v2400_v35 = vsel %vm2361_vm5, %v2388_v24, 0.0  ;;  %v2639_v6 = vsel %vm6769_vm11, 0, %v2638_v22  ;;  %2637 = vst [vmem:[#allocation3 + $0x8] sm:$0x1] %v2636_v23  ;;  %v2645_v32 = vsel %vm6769_vm11, 0, %v2644_v15  ;;  %v2648_v43 = vsel %vm6769_vm11, 0, %v2647_v52 }
 0x351   : > { %v2374_v50 = vadd.f32 %v2373_v56, %v2372_v12  ;;  %v2401_v28 = vadd.f32 %v2400_v35, %v2399_v10  ;;  %2640 = vst [vmem:[#allocation3 + $0x10] sm:$0x1] %v2639_v6  ;;  %2646 = vst [vmem:[#allocation3 + $0x20] sm:$0x1] %v2645_v32  ;;  %v2651_v51 = vsel %vm6769_vm11, 0, %v2650_v33  ;;  %v2654_v45 = vsel %vm6769_vm11, 0, %v2653_v44 }
 0x352   : > { %2649 = vst [vmem:[#allocation3 + $0x28] sm:$0x1] %v2648_v43  ;;  %2652 = vst [vmem:[#allocation3 + $0x30] sm:$0x1] %v2651_v51  ;;  %v3006_v4 = vsel %vm3004_vm7, %v2979_v46, 0  ;;  %v2664_v61 = vsel %vm6739_vm9, 0, %v2663_v1 }
 0x353   : > { %v2376_v3 = vadd.f32 %v2375_v2, %v2374_v50  ;;  %v2403_v47 = vadd.f32 %v2402_v25, %v2401_v28  ;;  %2655 = vst [vmem:[#allocation3 + $0x38] sm:$0x1] %v2654_v45  ;;  %2665 = vst [vmem:[#allocation3 + $0x4] sm:$0x1] %v2664_v61  ;;  %v2656_v38 = vld [vmem:[#allocation3 + $0x40] sm:$0x1] }
 0x354   : > { %v2657_v10 = vsel %vm6769_vm11, 0, %v2656_v38  ;;  %v2659_v12 = vld [vmem:[#allocation3 + $0x48] sm:$0x1]  ;;  %v2690_v24 = vld [vmem:[#allocation3 + $0x4c] sm:$0x1] }
 0x355   : > { %v2377_v5 = vrot.slane %v2376_v3, 4  ;;  %v2405_v57 = vadd.f32 %v2404_v29, %v2403_v47  ;;  %2658 = vst [vmem:[#allocation3 + $0x40] sm:$0x1] %v2657_v10  ;;  %v2660_v56 = vsel %vm6769_vm11, 0, %v2659_v12  ;;  %v2691_v48 = vsel %vm6739_vm9, 0, %v2690_v24 }
 0x356   : > { %2661 = vst [vmem:[#allocation3 + $0x48] sm:$0x1] %v2660_v56  ;;  %2692 = vst [vmem:[#allocation3 + $0x4c] sm:$0x1] %v2691_v48  ;;  %v2570_v47 = vlaneseq  ;;  %vm4632_vm9 = vcmask 1042434  }
 0x357   : > { %v2378_v59 = vadd.f32 %v2377_v5, %v2376_v3  ;;  %v2406_v53 = vrot.slane %v2405_v57, 4 }
 0x358   : > { %v7328_v5 = vshrl.u32 %v2570_v47, 7 }
 0x359   : > { %v2379_v36 = vrot.slane %v2378_v59, 2  ;;  %v2407_v49 = vadd.f32 %v2406_v53, %v2405_v57  ;;  %v7330_v57 = vld [vmem:[#allocation3] sm:$0xf] }
 0x35a   : > { %v2867_v9 = vshrl.u32 %v7330_v57, 16  ;;  %v2870_v53 = vshll.u32 %v7330_v57, 16 }
 0x35b   : > { %v2380_v60 = vadd.f32 %v2379_v36, %v2378_v59  ;;  %v2408_v63 = vrot.slane %v2407_v49, 2  ;;  %v2572_v59 = vsub.s32 0, %v7328_v5  ;;  %v5091_v36 = vld [vmem:[#allocation10] ss:$0 sm:$0xff] }
 0x35d   : > { %v2381_v34 = vrot.slane %v2380_v60, 1  ;;  %v2409_v37 = vadd.f32 %v2408_v63, %v2407_v49  ;;  %v7339_v63 = vrot.slane %v2870_v53, 5 }
 0x35f   : > { %v2410_v7 = vrot.slane %v2409_v37, 1  ;;  %v2382_v8 = vadd.f32 %v2381_v34, %v2380_v60  ;;  %v7337_v60 = vrot.slane %v2867_v9, 4  ;;  %v2591_v34 = vsub.s32 1, %v7328_v5 }
 0x361   : > { %v2411_v31 = vadd.f32 %v2410_v7, %v2409_v37 }
 0x363   : > { %v2413_v16 = vsel %vm2412_vm6, %v2382_v8, %v2411_v31  ;;  %v7342_v8 = vld [vmem:[#allocation3 + $0x4] sm:$0x1] }
 0x364   : > { %5406 = vmatmul.mubr.msk.f32.vlgmr.msra.gmra.mrb[0].mxu1 %vm2361_vm5, %v2413_v16  ;;  %v2876_v16 = vshll.u32 %v7342_v8, 16 }
 0x365   : > { %5409 = vmatpush3.msra.mxu1 %v2488_v11  ;;  %5410 = vmatprep.mubr.msk.f32.mxu1 %vm6265_vm4, %v6264_v58  ;;  %v2873_v11 = vor.u32 %v7339_v63, %v7337_v60 }
 0x366   : > { %5650 = vmatprep.subr.msk.bf16.mxu1 %vm3004_vm7, %v2979_v46 }
 0x367   : > { %v2874_v20 = vrot.slane %v2873_v11, 4 }
 0x437   : > { %v2484_v18 = vpop.f32.mrb[0].mxu1 }
 0x438   : > { %v5407_v62 = vpop.f32.mrb[1].mxu1  ;;  %5411 = vmatmul.mubr.msk.f32.vlgmr.msra.gmra.mrb[2].mxu1 %vm2361_vm5, %v2484_v18 }
 0x439   : > { %5414 = vmatpush3.bf16.msra.mxu1 %v3006_v4 }
 0x43a   : > { %5651 = vmatprep.subr.msk.bf16.mxu1 %vm3004_vm7, %v7318_v39 }
 0x50b   : > { %v2558_v50 = vpop.f32.mrb[2].mxu1 }
 0x50c   : > { %v2562_v35 = vmul.f32 %v2558_v50, %v2558_v50  ;;  %v5412_v2 = vpop.f32.mrb[3].mxu1  ;;  %v2573_v49 = vrot.slane %v2558_v50, %v2572_v59 }
 0x50e   : > { %v2564_v28 = vrot.slane %v2562_v35, 7  ;;  %v2574_v31 = vsub.f32 %v7241_v55, %v2573_v49  ;;  %v2575_v18 = vsub.f32 %v7247_v0, %v2573_v49  ;;  %v2576_v62 = vsub.f32 %v7239_v41, %v2573_v49 }
 0x50f   : > { %v2577_v19 = vsub.f32 %v7245_v27, %v2573_v49  ;;  %v2578_v23 = vsub.f32 %v7266_v26, %v2573_v49  ;;  %v2579_v6 = vsub.f32 %v7275_v40, %v2573_v49  ;;  %v2580_v55 = vsub.f32 %v7268_v14, %v2573_v49 }
 0x510   : > { %v2566_v25 = vsub.f32 %v2558_v50, %v2564_v28  ;;  %v2581_v54 = vsub.f32 %v7277_v42, %v2573_v49 }
 0x512   : > { %v2567_v3 = vmax.f32 %v2566_v25, 0.0 }
 0x514   : > { %v2568_v29 = vadd.f32 1e-05, %v2567_v3 }
 0x516   : > { %5845 = vrsqrt.f32 %v2568_v29 }
 0x520   : > { %v5846_v37 = vpop.eup %5845 }
 0x521   : > { %v2588_v7 = vmul.f32 %v5846_v37, %v5091_v36 }
 0x523   : > { %v2592_v22 = vrot.slane %v2588_v7, %v2591_v34 }
 0x525   : > { %v2593_v15 = vmul.f32 %v2592_v22, %v2574_v31  ;;  %v2594_v32 = vmul.f32 %v2592_v22, %v2575_v18  ;;  %v2595_v52 = vmul.f32 %v2592_v22, %v2576_v62  ;;  %v2596_v0 = vmul.f32 %v2592_v22, %v2577_v19 }
 0x526   : > { %v2597_v33 = vmul.f32 %v2592_v22, %v2578_v23  ;;  %v2598_v41 = vmul.f32 %v2592_v22, %v2579_v6  ;;  %v2599_v43 = vmul.f32 %v2592_v22, %v2580_v55  ;;  %v2600_v27 = vmul.f32 %v2592_v22, %v2581_v54 }
 0x527   : > { %v2607_v51 = vadd.f32 %v5092_v21, %v2593_v15  ;;  %v2608_v44 = vadd.f32 %v5092_v21, %v2594_v32  ;;  %v2609_v45 = vadd.f32 %v5092_v21, %v2595_v52  ;;  %v2610_v46 = vadd.f32 %v5092_v21, %v2596_v0  ;;  %v2803_v15 = vld [vmem:[#allocation3 + $0xc] sm:$0x1] }
 0x528   : > { %v2611_v1 = vadd.f32 %v5092_v21, %v2597_v33  ;;  %v2612_v26 = vadd.f32 %v5092_v21, %v2598_v41  ;;  %v2613_v4 = vadd.f32 %v5092_v21, %v2599_v43  ;;  %v2614_v40 = vadd.f32 %v5092_v21, %v2600_v27  ;;  %v2800_v21 = vld [vmem:[#allocation3 + $0x8] sm:$0xf]  ;;  %v2806_v41 = vld [vmem:[#allocation3 + $0x10] sm:$0xf]  ;;  %v2809_v43 = vld [vmem:[#allocation3 + $0x14] sm:$0x1] }
 0x529   : > { %v2615_v61 = vmax.f32 %v2607_v51, 0.0  ;;  %v2616_v14 = vmax.f32 %v2608_v44, 0.0  ;;  %v2617_v38 = vmax.f32 %v2609_v45, 0.0  ;;  %v2618_v42 = vmax.f32 %v2610_v46, 0.0  ;;  %v2812_v46 = vld [vmem:[#allocation3 + $0x18] sm:$0xf] }
 0x52a   : > { %v2619_v10 = vmax.f32 %v2611_v1, 0.0  ;;  %v2620_v12 = vmax.f32 %v2612_v26, 0.0  ;;  %v2621_v24 = vmax.f32 %v2613_v4, 0.0  ;;  %v2622_v56 = vmax.f32 %v2614_v40, 0.0  ;;  %v2815_v1 = vld [vmem:[#allocation3 + $0x1c] sm:$0x1] }
 0x52b   : > { %v5207_v48 = vpack.c.bf16 %v2615_v61, %v2615_v61  ;;  %v5208_v50 = vpack.c.bf16 %v2616_v14, %v2616_v14  ;;  %v5209_v35 = vpack.c.bf16 %v2617_v38, %v2617_v38  ;;  %v5210_v2 = vpack.c.bf16 %v2618_v42, %v2618_v42  ;;  %v2818_v14 = vld [vmem:[#allocation3 + $0x20] sm:$0xf] }
 0x52c   : > { %v5211_v28 = vpack.c.bf16 %v2619_v10, %v2619_v10  ;;  %v5212_v25 = vpack.c.bf16 %v2620_v12, %v2620_v12  ;;  %v7357_v3 = vpack.c.bf16 %v2621_v24, %v2621_v24  ;;  %v7359_v47 = vpack.c.bf16 %v2622_v56, %v2622_v56  ;;  %v2821_v24 = vld [vmem:[#allocation3 + $0x24] sm:$0x1]  ;;  %v2824_v56 = vld [vmem:[#allocation3 + $0x28] sm:$0xf] }
 0x52d   : > { %v2718_v29 = vshrl.u32 %v5207_v48, 16  ;;  %v2721_v9 = vshll.u32 %v5207_v48, 16  ;;  %v2726_v53 = vshrl.u32 %v5208_v50, 16  ;;  %v2729_v36 = vshll.u32 %v5208_v50, 16 }
 0x52e   : > { %v2734_v49 = vshrl.u32 %v5209_v35, 16  ;;  %v2737_v37 = vshll.u32 %v5209_v35, 16  ;;  %v2742_v7 = vshrl.u32 %v5210_v2, 16  ;;  %v2745_v31 = vshll.u32 %v5210_v2, 16 }
 0x52f   : > { %v2720_v18 = vrot.slane %v2718_v29, 7  ;;  %v2728_v62 = vrot.slane %v2726_v53, 7  ;;  %v2750_v19 = vshrl.u32 %v5211_v28, 16  ;;  %v2753_v22 = vshll.u32 %v5211_v28, 16  ;;  %v2827_v28 = vld [vmem:[#allocation3 + $0x2c] sm:$0x1] }
 0x530   : > { %v2736_v23 = vrot.slane %v2734_v49, 7  ;;  %v2744_v6 = vrot.slane %v2742_v7, 7  ;;  %v2758_v55 = vshrl.u32 %v5212_v25, 16  ;;  %v2761_v54 = vshll.u32 %v5212_v25, 16  ;;  %v2830_v25 = vld [vmem:[#allocation3 + $0x30] sm:$0xf] }
 0x531   : > { %v2723_v32 = vor.u32 %v2721_v9, %v2720_v18  ;;  %v2724_v52 = vrot.slane %v2720_v18, 4  ;;  %v2731_v0 = vor.u32 %v2729_v36, %v2728_v62  ;;  %v2732_v33 = vrot.slane %v2728_v62, 4  ;;  %v2833_v53 = vld [vmem:[#allocation3 + $0x34] sm:$0x1]  ;;  %v2836_v36 = vld [vmem:[#allocation3 + $0x38] sm:$0xf] }
 0x532   : > { %v2739_v27 = vor.u32 %v2737_v37, %v2736_v23  ;;  %v2740_v51 = vrot.slane %v2736_v23, 4  ;;  %v2747_v44 = vor.u32 %v2745_v31, %v2744_v6  ;;  %v2748_v45 = vrot.slane %v2744_v6, 4  ;;  %v2839_v18 = vld [vmem:[#allocation3 + $0x3c] sm:$0x1]  ;;  %v2845_v62 = vld [vmem:[#allocation3 + $0x44] sm:$0x1] }
 0x533   : > { %v2752_v26 = vrot.slane %v2750_v19, 7  ;;  %v2760_v4 = vrot.slane %v2758_v55, 7  ;;  %v2766_v40 = vshrl.u32 %v7357_v3, 16  ;;  %v2769_v61 = vshll.u32 %v7357_v3, 16  ;;  %v2842_v19 = vld [vmem:[#allocation3 + $0x40] sm:$0xf] }
 0x534   : > { %v2774_v38 = vshrl.u32 %v7359_v47, 16  ;;  %v2777_v42 = vshll.u32 %v7359_v47, 16  ;;  %v2801_v10 = vsel %vm6757_vm10, %v2723_v32, %v2800_v21  ;;  %v2804_v12 = vsel %vm6769_vm11, %v2724_v52, %v2803_v15 }
 0x535   : > { %v2755_v48 = vor.u32 %v2753_v22, %v2752_v26  ;;  %v2756_v50 = vrot.slane %v2752_v26, 4  ;;  %v2763_v35 = vor.u32 %v2761_v54, %v2760_v4  ;;  %v2764_v2 = vrot.slane %v2760_v4, 4  ;;  %2802 = vst [vmem:[#allocation3 + $0x8] sm:$0xf] %v2801_v10  ;;  %2805 = vst [vmem:[#allocation3 + $0xc] sm:$0x1] %v2804_v12 }
 0x536   : > { %v2768_v3 = vrot.slane %v2766_v40, 7  ;;  %v2776_v29 = vrot.slane %v2774_v38, 7  ;;  %v2807_v47 = vsel %vm6757_vm10, %v2731_v0, %v2806_v41  ;;  %v2810_v9 = vsel %vm6769_vm11, %v2732_v33, %v2809_v43 }
 0x537   : > { %v2813_v49 = vsel %vm6757_vm10, %v2739_v27, %v2812_v46  ;;  %v2816_v37 = vsel %vm6769_vm11, %v2740_v51, %v2815_v1  ;;  %v2819_v7 = vsel %vm6757_vm10, %v2747_v44, %v2818_v14  ;;  %v2822_v31 = vsel %vm6769_vm11, %v2748_v45, %v2821_v24  ;;  %2808 = vst [vmem:[#allocation3 + $0x10] sm:$0xf] %v2807_v47 }
 0x538   : > { %2811 = vst [vmem:[#allocation3 + $0x14] sm:$0x1] %v2810_v9  ;;  %v2771_v22 = vor.u32 %v2769_v61, %v2768_v3  ;;  %v2772_v21 = vrot.slane %v2768_v3, 4  ;;  %v2779_v23 = vor.u32 %v2777_v42, %v2776_v29  ;;  %v2780_v6 = vrot.slane %v2776_v29, 4  ;;  %2814 = vst [vmem:[#allocation3 + $0x18] sm:$0xf] %v2813_v49 }
 0x539   : > { %2817 = vst [vmem:[#allocation3 + $0x1c] sm:$0x1] %v2816_v37  ;;  %2820 = vst [vmem:[#allocation3 + $0x20] sm:$0xf] %v2819_v7  ;;  %v2825_v55 = vsel %vm6757_vm10, %v2755_v48, %v2824_v56  ;;  %v2828_v54 = vsel %vm6769_vm11, %v2756_v50, %v2827_v28  ;;  %v2831_v15 = vsel %vm6757_vm10, %v2763_v35, %v2830_v25  ;;  %v2878_v51 = vrot.slane %v2876_v16, 5 }
 0x53a   : > { %2823 = vst [vmem:[#allocation3 + $0x24] sm:$0x1] %v2822_v31  ;;  %v2834_v32 = vsel %vm6769_vm11, %v2764_v2, %v2833_v53  ;;  %v2837_v52 = vsel %vm6757_vm10, %v2771_v22, %v2836_v36  ;;  %v2840_v0 = vsel %vm6769_vm11, %v2772_v21, %v2839_v18  ;;  %v2846_v33 = vsel %vm6769_vm11, %v2780_v6, %v2845_v62 }
 0x53b   : > { %2826 = vst [vmem:[#allocation3 + $0x28] sm:$0xf] %v2825_v55  ;;  %2829 = vst [vmem:[#allocation3 + $0x2c] sm:$0x1] %v2828_v54  ;;  %v2843_v41 = vsel %vm6757_vm10, %v2779_v23, %v2842_v19  ;;  %v2879_v38 = vsel %vm6936_vm15, %v2874_v20, %v2878_v51  ;;  %v3106_v55 = vsel %vm3004_vm7, %v7318_v39, 0  ;;  %vm4635_vm10 = vcmask 1043459  }
 0x53c   : > { %2832 = vst [vmem:[#allocation3 + $0x30] sm:$0xf] %v2831_v15  ;;  %2835 = vst [vmem:[#allocation3 + $0x34] sm:$0x1] %v2834_v32  ;;  %v7397_v43 = vld [vmem:[#allocation3 + $0x8] sm:$0xf] }
 0x53d   : > { %2838 = vst [vmem:[#allocation3 + $0x38] sm:$0xf] %v2837_v52  ;;  %2841 = vst [vmem:[#allocation3 + $0x3c] sm:$0x1] %v2840_v0  ;;  %v7399_v27 = vld [vmem:[#allocation3 + $0xc] sm:$0x1] }
 0x53e   : > { %2847 = vst [vmem:[#allocation3 + $0x44] sm:$0x1] %v2846_v33  ;;  %2844 = vst [vmem:[#allocation3 + $0x40] sm:$0xf] %v2843_v41  ;;  %v2881_v44 = vshrl.u32 %v7397_v43, 16  ;;  %v2884_v13 = vshll.u32 %v7397_v43, 16 }
 0x53f   : > { %v2890_v45 = vshll.u32 %v7399_v27, 16  ;;  %v7409_v46 = vld [vmem:[#allocation3 + $0x10] sm:$0xf]  ;;  %v7411_v1 = vld [vmem:[#allocation3 + $0x14] sm:$0x1]  ;;  %vm4638_vm11 = vcmask 1044484  }
 0x540   : > { %v2883_v26 = vrot.slane %v2881_v44, 4  ;;  %v2886_v4 = vrot.slane %v2884_v13, 5  ;;  %v7413_v40 = vld [vmem:[#allocation3 + $0x18] sm:$0xf]  ;;  %v2895_v60 = vshrl.u32 %v7409_v46, 16  ;;  %v2898_v11 = vshll.u32 %v7409_v46, 16 }
 0x541   : > { %v7416_v63 = vld [vmem:[#allocation3 + $0x1c] sm:$0x1]  ;;  %v2904_v16 = vshll.u32 %v7411_v1, 16  ;;  %v2909_v61 = vshrl.u32 %v7413_v40, 16  ;;  %v2912_v14 = vshll.u32 %v7413_v40, 16  ;;  %v2892_v56 = vrot.slane %v2890_v45, 5 }
 0x542   : > { %v2887_v42 = vor.u32 %v2886_v4, %v2883_v26  ;;  %v2897_v10 = vrot.slane %v2895_v60, 4  ;;  %v2918_v12 = vshll.u32 %v7416_v63, 16  ;;  %v7425_v24 = vld [vmem:[#allocation3 + $0x20] sm:$0xf]  ;;  %v2900_v48 = vrot.slane %v2898_v11, 5 }
 0x543   : > { %v2911_v50 = vrot.slane %v2909_v61, 4  ;;  %v2914_v35 = vrot.slane %v2912_v14, 5  ;;  %v7427_v2 = vld [vmem:[#allocation3 + $0x28] sm:$0xf]  ;;  %v2906_v25 = vrot.slane %v2904_v16, 5  ;;  %v2923_v47 = vshrl.u32 %v7425_v24, 16 }
 0x544   : > { %v2888_v28 = vrot.slane %v2887_v42, 4  ;;  %v2920_v3 = vrot.slane %v2918_v12, 5  ;;  %v7429_v29 = vld [vmem:[#allocation3 + $0x24] sm:$0x1]  ;;  %v2901_v9 = vor.u32 %v2900_v48, %v2897_v10  ;;  %v7432_v36 = vld [vmem:[#allocation3 + $0x2c] sm:$0x1] }
 0x545   : > { %v2915_v53 = vor.u32 %v2914_v35, %v2911_v50  ;;  %v2926_v49 = vshll.u32 %v7425_v24, 16  ;;  %v2932_v37 = vshll.u32 %v7429_v29, 16  ;;  %v2925_v31 = vrot.slane %v2923_v47, 4  ;;  %v7440_v19 = vld [vmem:[#allocation3 + $0x30] sm:$0xf] }
 0x546   : > { %v2893_v7 = vsel %vm6936_vm15, %v2888_v28, %v2892_v56  ;;  %v2937_v18 = vshrl.u32 %v7427_v2, 16  ;;  %v2940_v62 = vshll.u32 %v7427_v2, 16  ;;  %v2902_v21 = vrot.slane %v2901_v9, 4  ;;  %v7445_v52 = vld [vmem:[#allocation3 + $0x38] sm:$0xf] }
 0x547   : > { %v5101_v22 = vcombine.low %v2879_v38, %v2893_v7  ;;  %v2916_v23 = vrot.slane %v2915_v53, 4  ;;  %v2928_v6 = vrot.slane %v2926_v49, 5  ;;  %v2946_v32 = vshll.u32 %v7432_v36, 16  ;;  %v7452_v20 = vld [vmem:[#allocation3 + $0x34] sm:$0x1] }
 0x548   : > { %v2939_v54 = vrot.slane %v2937_v18, 4  ;;  %v2942_v15 = vrot.slane %v2940_v62, 5  ;;  %v2907_v0 = vsel %vm6936_vm15, %v2902_v21, %v2906_v25  ;;  %v2951_v51 = vshrl.u32 %v7440_v19, 16  ;;  %v3230_v26 = vld [vmem:[#allocation13 + $0x8] sm:$0xf] }
 0x549   : > { %5415 = vmatprep.mubr.msk.bf16.mxu1 %vm2361_vm5, %v5101_v22  ;;  %v2921_v33 = vsel %vm6936_vm15, %v2916_v23, %v2920_v3  ;;  %v2929_v41 = vor.u32 %v2928_v6, %v2925_v31  ;;  %v2934_v44 = vrot.slane %v2932_v37, 5  ;;  %v2954_v45 = vshll.u32 %v7440_v19, 16  ;;  %v7456_v11 = vld [vmem:[#allocation3 + $0x3c] sm:$0x1]  ;;  %v3173_v62 = vld [vmem:[#allocation3] sm:$0xe] }
 0x54a   : > { %v5102_v39 = vcombine.low %v2907_v0, %v2921_v33  ;;  %v2943_v13 = vor.u32 %v2942_v15, %v2939_v54  ;;  %v2948_v60 = vrot.slane %v2946_v32, 5  ;;  %v2953_v16 = vrot.slane %v2951_v51, 4  ;;  %v3174_v22 = vld [vmem:[#allocation3 + $0x8] sm:$0xe]  ;;  %v3177_v32 = vld [vmem:[#allocation3 + $0x20] sm:$0xe] }
 0x54b   : > { %v2930_v4 = vrot.slane %v2929_v41, 4  ;;  %v2965_v61 = vshrl.u32 %v7445_v52, 16  ;;  %v2956_v38 = vrot.slane %v2954_v45, 5  ;;  %v2960_v42 = vshll.u32 %v7452_v20, 16  ;;  %v3178_v0 = vld [vmem:[#allocation3 + $0x28] sm:$0xe] }
 0x54c   : > { %5416 = vmatmul.mubr.msk.bf16.vlgmr.msra.gmra.mrb[4].mxu1 %vm2361_vm5, %v5102_v39  ;;  %v2944_v14 = vrot.slane %v2943_v13, 4  ;;  %v2968_v10 = vshll.u32 %v7445_v52, 16  ;;  %v2974_v28 = vshll.u32 %v7456_v11, 16  ;;  %v5109_v18 = vcombine.low %v7330_v57, %v7397_v43 }
 0x54d   : > { %5424 = vmatpush3.bf16.msra.mxu1 %v3106_v55  ;;  %v2935_v12 = vsel %vm6936_vm15, %v2930_v4, %v2934_v44  ;;  %v2967_v56 = vrot.slane %v2965_v61, 4  ;;  %v2957_v50 = vor.u32 %v2956_v38, %v2953_v16  ;;  %v2962_v47 = vrot.slane %v2960_v42, 5  ;;  %v3340_v55 = vld [vmem:[#allocation13 + $0xc] sm:$0xf]  ;;  %v3578_v61 = vld [vmem:[#allocation13 + $0x10] sm:$0xf] }
 0x54e   : > { %v2949_v48 = vsel %vm6936_vm15, %v2944_v14, %v2948_v60  ;;  %v2970_v35 = vrot.slane %v2968_v10, 5  ;;  %5652 = vmatprep.subr.msk.bf16.mxu1 %vm3004_vm7, %v3230_v26  ;;  %v2976_v37 = vrot.slane %v2974_v28, 5  ;;  %v5110_v21 = vcombine.low %v7409_v46, %v7413_v40  ;;  %v3180_v60 = vld [vmem:[#allocation3 + $0x38] sm:$0xe]  ;;  %v3449_v14 = vld [vmem:[#allocation3 + $0x8] sm:$0xf] }
 0x54f   : > { %v5103_v25 = vcombine.low %v2935_v12, %v2949_v48  ;;  %v2958_v3 = vrot.slane %v2957_v50, 4  ;;  %v3256_v23 = vsel %vm3004_vm7, %v3230_v26, 0  ;;  %v5111_v6 = vcombine.low %v7425_v24, %v7427_v2  ;;  %v3175_v24 = vld [vmem:[#allocation3 + $0x10] sm:$0xe]  ;;  %v3176_v2 = vld [vmem:[#allocation3 + $0x18] sm:$0xe] }
 0x550   : > { %v2971_v9 = vor.u32 %v2970_v35, %v2967_v56  ;;  %v5117_v54 = vrot.slane %v3173_v62, 9  ;;  %v3199_v57 = vrot.slane %v7342_v8, 5  ;;  %v5118_v43 = vrot.slane %v3174_v22, 9  ;;  %v3451_v56 = vld [vmem:[#allocation3 + $0x10] sm:$0xf] }
 0x551   : > { %5419 = vmatprep.mubr.msk.bf16.mxu1 %vm2361_vm5, %v5103_v25  ;;  %v2963_v53 = vsel %vm6936_vm15, %v2958_v3, %v2962_v47  ;;  %v3203_v15 = vrot.slane %v7399_v27, 5  ;;  %v3207_v8 = vrot.slane %v7411_v1, 5  ;;  %v3211_v33 = vrot.slane %v7416_v63, 5 }
 0x552   : > { %v2972_v49 = vrot.slane %v2971_v9, 4  ;;  %v3200_v46 = vsel %vm7031_vm3, %v5117_v54, %v3199_v57  ;;  %v5112_v27 = vcombine.low %v7440_v19, %v7445_v52  ;;  %v5119_v51 = vrot.slane %v3175_v24, 9  ;;  %v3179_v19 = vld [vmem:[#allocation3 + $0x30] sm:$0xe] }
 0x553   : > { %v3204_v40 = vsel %vm7031_vm3, %v5118_v43, %v3203_v15  ;;  %v5120_v39 = vrot.slane %v3176_v2, 9  ;;  %v5121_v44 = vrot.slane %v3177_v32, 9  ;;  %v3215_v13 = vrot.slane %v7429_v29, 5 }
 0x554   : > { %v2977_v7 = vsel %vm6936_vm15, %v2972_v49, %v2976_v37  ;;  %v5125_v41 = vcombine.low %v3200_v46, %v3204_v40  ;;  %v5122_v45 = vrot.slane %v3178_v0, 9  ;;  %v3219_v26 = vrot.slane %v7432_v36, 5  ;;  %v3453_v49 = vld [vmem:[#allocation3 + $0x18] sm:$0xf]  ;;  %v5837_v37 = vld [vmem:[#allocation3 + $0x8] ss:$8 sps:$4 sm:$0xff]  }
 0x555   : > { %v5104_v31 = vcombine.low %v2963_v53, %v2977_v7  ;;  %v3208_v1 = vsel %vm7031_vm3, %v5119_v51, %v3207_v8  ;;  %v3212_v63 = vsel %vm7031_vm3, %v5120_v39, %v3211_v33  ;;  %v3216_v52 = vsel %vm7031_vm3, %v5121_v44, %v3215_v13  ;;  %v3455_v7 = vld [vmem:[#allocation3 + $0x20] sm:$0xf]  ;;  %v7526_v8 = vld [vmem:[#allocation13 + $0x14] sm:$0xf]  ;;  %v5839_v13 = vld [vmem:[#allocation3 + $0x28] ss:$8 sps:$4 sm:$0xff]  }
 0x556   : > { %v3220_v4 = vsel %vm7031_vm3, %v5122_v45, %v3219_v26  ;;  %v5126_v29 = vcombine.low %v3208_v1, %v3212_v63  ;;  %v3374_v16 = vsel %vm3004_vm7, %v3340_v55, 0  ;;  %v5123_v36 = vrot.slane %v3179_v19, 9  ;;  %v3461_v1 = vld [vmem:[#allocation3 + $0x38] sm:$0xf] }
 0x557   : > { %5420 = vmatmul.mubr.msk.bf16.gmra.mrb[8].mxu1 %vm2361_vm5, %v5104_v31  ;;  %v5127_v38 = vcombine.low %v3216_v52, %v3220_v4  ;;  %v3223_v42 = vrot.slane %v7452_v20, 5  ;;  %v5124_v10 = vrot.slane %v3180_v60, 9  ;;  %v3227_v12 = vrot.slane %v7456_v11, 5  ;;  %v7518_v31 = vld [vmem:[#allocation3 + $0xc] sm:$0x1] }
 0x558   : > { %5425 = vmatprep.mubr.msk.bf16.mxu1 %vm2361_vm5, %v5109_v18  ;;  %v3466_v48 = vshrl.u32 %v3449_v14, 16  ;;  %v3469_v50 = vshll.u32 %v3449_v14, 16  ;;  %v3480_v35 = vshrl.u32 %v3451_v56, 16  ;;  %v3483_v28 = vshll.u32 %v3451_v56, 16  ;;  %v7520_v18 = vld [vmem:[#allocation3 + $0x14] sm:$0x1] }
 0x559   : > { %v3224_v25 = vsel %vm7031_vm3, %v5123_v36, %v3223_v42  ;;  %v3228_v20 = vsel %vm7031_vm3, %v5124_v10, %v3227_v12  ;;  %v3494_v22 = vshrl.u32 %v3453_v49, 16  ;;  %v3508_v54 = vshrl.u32 %v3455_v7, 16  ;;  %v3463_v60 = vld [vmem:[#allocation3 + $0x40] sm:$0xf]  ;;  %v7536_v36 = vld [vmem:[#allocation3 + $0x1c] sm:$0x1] }
 0x55a   : > { %v3468_v3 = vrot.slane %v3466_v48, 4  ;;  %v3471_v11 = vrot.slane %v3469_v50, 5  ;;  %v5128_v47 = vcombine.low %v3224_v25, %v3228_v20  ;;  %v3482_v9 = vrot.slane %v3480_v35, 4  ;;  %v7540_v42 = vld [vmem:[#allocation3 + $0x2c] sm:$0x1] }
 0x55b   : > { %v3485_v53 = vrot.slane %v3483_v28, 5  ;;  %v3511_v57 = vshll.u32 %v3455_v7, 16  ;;  %v3475_v43 = vshll.u32 %v7518_v31, 16  ;;  %v3489_v15 = vshll.u32 %v7520_v18, 16  ;;  %v7542_v10 = vld [vmem:[#allocation3 + $0x34] sm:$0x1] }
 0x55c   : > { %v3472_v62 = vor.u32 %v3471_v11, %v3468_v3  ;;  %v3604_v32 = vsel %vm3004_vm7, %v3578_v61, 0  ;;  %v3496_v33 = vrot.slane %v3494_v22, 4  ;;  %v3510_v39 = vrot.slane %v3508_v54, 4  ;;  %v5840_v11 = vld [vmem:[#allocation3 + $0x38] ss:$8 sps:$4 sm:$0xff]  }
 0x55d   : > { %v3513_v44 = vrot.slane %v3511_v57, 5  ;;  %v3477_v45 = vrot.slane %v3475_v43, 5  ;;  %v3491_v26 = vrot.slane %v3489_v15, 5  ;;  %v3550_v12 = vshrl.u32 %v3461_v1, 16  ;;  %v7550_v43 = vld [vmem:[#allocation3 + $0x3c] sm:$0x1] }
 0x55e   : > { %v3473_v0 = vrot.slane %v3472_v62, 4  ;;  %v3553_v56 = vshll.u32 %v3461_v1, 16  ;;  %v3564_v48 = vshrl.u32 %v3463_v60, 16  ;;  %v3567_v50 = vshll.u32 %v3463_v60, 16  ;;  %v7552_v15 = vld [vmem:[#allocation3 + $0x44] sm:$0x1] }
 0x55f   : > { %5426 = vmatmul.mubr.msk.bf16.vlgmr.msra.gmra.mrb[4].mxu1 %vm2361_vm5, %v5110_v21  ;;  %v3457_v21 = vld [vmem:[#allocation3 + $0x28] sm:$0xf]  ;;  %v3503_v25 = vshll.u32 %v7536_v36, 16  ;;  %v3531_v3 = vshll.u32 %v7540_v42, 16  ;;  %v3847_v1 = vld [vmem:[#allocation13 + $0x18] sm:$0xf] }
 0x560   : > { %5434 = vmatpush3.bf16.msra.mxu1 %v3256_v23  ;;  %5429 = vmatprep.mubr.msk.bf16.mxu1 %vm2361_vm5, %v5111_v6  ;;  %v3459_v23 = vld [vmem:[#allocation3 + $0x30] sm:$0xf]  ;;  %v3486_v6 = vor.u32 %v3485_v53, %v3482_v9  ;;  %v3522_v46 = vshrl.u32 %v3457_v21, 16  ;;  %v3525_v40 = vshll.u32 %v3457_v21, 16  ;;  %v3555_v7 = vrot.slane %v3553_v56, 5 }
 0x561   : > { %5653 = vmatprep.subr.msk.bf16.mxu1 %vm3004_vm7, %v3340_v55  ;;  %v3497_v55 = vshll.u32 %v3453_v49, 16  ;;  %v3536_v24 = vshrl.u32 %v3459_v23, 16  ;;  %v3539_v2 = vshll.u32 %v3459_v23, 16  ;;  %v3545_v49 = vshll.u32 %v7542_v10, 16  ;;  %v3684_v56 = vld [vmem:[#allocation3 + $0x30] sm:$0xe] }
 0x562   : > { %v3524_v63 = vrot.slane %v3522_v46, 4  ;;  %v3527_v19 = vrot.slane %v3525_v40, 5  ;;  %v3566_v62 = vrot.slane %v3564_v48, 4  ;;  %v3569_v22 = vrot.slane %v3567_v50, 5 }
 0x563   : > { %v3499_v51 = vrot.slane %v3497_v55, 5  ;;  %v3538_v52 = vrot.slane %v3536_v24, 4  ;;  %v3541_v4 = vrot.slane %v3539_v2, 5  ;;  %v3533_v54 = vrot.slane %v3531_v3, 5 }
 0x564   : > { %v3528_v35 = vor.u32 %v3527_v19, %v3524_v63  ;;  %v3547_v57 = vrot.slane %v3545_v49, 5  ;;  %v3570_v2 = vor.u32 %v3569_v22, %v3566_v62  ;;  %v3705_v19 = vrot.slane %v7518_v31, 5  ;;  %v4085_v22 = vld [vmem:[#allocation13 + $0x1c] sm:$0xf] }
 0x565   : > { %v3500_v14 = vor.u32 %v3499_v51, %v3496_v33  ;;  %v3542_v28 = vor.u32 %v3541_v4, %v3538_v52  ;;  %v3559_v33 = vshll.u32 %v7550_v43, 16  ;;  %v3680_v51 = vld [vmem:[#allocation3 + $0x10] sm:$0xe]  ;;  %v3709_v4 = vrot.slane %v7520_v18, 5 }
 0x566   : > { %v3529_v21 = vrot.slane %v3528_v35, 4  ;;  %v5150_v52 = vrot.slane %v3680_v51, 9  ;;  %v3881_v62 = vsel %vm3004_vm7, %v3847_v1, 0 }
 0x567   : > { %5430 = vmatmul.mubr.msk.bf16.gmra.mrb[8].mxu1 %vm2361_vm5, %v5112_v27  ;;  %v5838_v27 = vld [vmem:[#allocation3 + $0x18] ss:$8 sps:$4 sm:$0xff]   ;;  %v3501_v9 = vrot.slane %v3500_v14, 4  ;;  %v3543_v23 = vrot.slane %v3542_v28, 4  ;;  %v3561_v60 = vrot.slane %v3559_v33, 5  ;;  %v3713_v28 = vrot.slane %v7536_v36, 5 }
 0x568   : > { %5435 = vmatprep.mubr.msk.bf16.mxu1 %vm2361_vm5, %v5125_v41  ;;  %v3487_v41 = vrot.slane %v3486_v6, 4  ;;  %v3505_v6 = vrot.slane %v3503_v25, 5  ;;  %v3681_v14 = vld [vmem:[#allocation3 + $0x18] sm:$0xe]  ;;  %v3710_v18 = vsel %vm7031_vm3, %v5150_v52, %v3709_v4 }
 0x569   : > { %v5151_v50 = vrot.slane %v3681_v14, 9  ;;  %v3685_v36 = vld [vmem:[#allocation3 + $0x38] sm:$0xe] }
 0x56a   : > { %v3506_v46 = vsel %vm6936_vm15, %v3501_v9, %v3505_v6  ;;  %v3725_v9 = vrot.slane %v7542_v10, 5  ;;  %v5155_v10 = vrot.slane %v3685_v36, 9 }
 0x56f   : > { %5436 = vmatmul.mubr.msk.bf16.vlgmr.msra.gmra.mrb[4].mxu1 %vm2361_vm5, %v5126_v29  ;;  %v3478_v29 = vsel %vm6936_vm15, %v3473_v0, %v3477_v45  ;;  %v3548_v0 = vsel %vm6936_vm15, %v3543_v23, %v3547_v57  ;;  %v3729_v23 = vrot.slane %v7550_v43, 5  ;;  %v3958_v57 = vld [vmem:[#allocation3 + $0x18] sm:$0xf] }
 0x570   : > { %5444 = vmatpush3.bf16.msra.mxu1 %v3374_v16  ;;  %5439 = vmatprep.mubr.msk.bf16.mxu1 %vm2361_vm5, %v5127_v38  ;;  %v3492_v16 = vsel %vm6936_vm15, %v3487_v41, %v3491_v26  ;;  %v3514_v38 = vor.u32 %v3513_v44, %v3510_v39  ;;  %v3679_v41 = vld [vmem:[#allocation3 + $0x8] sm:$0xe]  ;;  %v3762_v44 = vsel %vm3004_vm7, %v7526_v8, 0  ;;  %v3571_v26 = vrot.slane %v3570_v2, 4 }
 0x571   : > { %5654 = vmatprep.subr.msk.bf16.mxu1 %vm3004_vm7, %v3578_v61  ;;  %v7538_v61 = vld [vmem:[#allocation3 + $0x24] sm:$0x1]  ;;  %v5149_v63 = vrot.slane %v3679_v41, 9  ;;  %v3987_v2 = vshrl.u32 %v3958_v57, 16 }
 0x572   : > { %v3517_v20 = vshll.u32 %v7538_v61, 16  ;;  %v3515_v53 = vrot.slane %v3514_v38, 4  ;;  %v3682_v38 = vld [vmem:[#allocation3 + $0x20] sm:$0xe] }
 0x573   : > { %v3706_v31 = vsel %vm7031_vm3, %v5149_v63, %v3705_v19  ;;  %v5152_v25 = vrot.slane %v3682_v38, 9  ;;  %v3989_v41 = vrot.slane %v3987_v2, 4  ;;  %v7605_v63 = vld [vmem:[#allocation3 + $0x14] sm:$0x1]  ;;  %v7607_v19 = vld [vmem:[#allocation3 + $0x1c] sm:$0x1] }
 0x574   : > { %v3519_v55 = vrot.slane %v3517_v20, 5  ;;  %v5157_v35 = vcombine.low %v3706_v31, %v3710_v18  ;;  %v3717_v20 = vrot.slane %v7538_v61, 5  ;;  %v4111_v18 = vsel %vm3004_vm7, %v4085_v22, 0  ;;  %v7610_v38 = vld [vmem:[#allocation13 + $0x20] sm:$0xf] }
 0x576   : > { %v3520_v40 = vsel %vm6936_vm15, %v3515_v53, %v3519_v55  ;;  %v3714_v53 = vsel %vm7031_vm3, %v5151_v50, %v3713_v28  ;;  %v3718_v49 = vsel %vm7031_vm3, %v5152_v25, %v3717_v20  ;;  %v3733_v55 = vrot.slane %v7552_v15, 5  ;;  %v5843_v25 = vld [vmem:[#allocation3 + $0x30] ss:$8 sps:$4 sm:$0xff]  }
 0x577   : > { %5440 = vmatmul.mubr.msk.bf16.gmra.mrb[8].mxu1 %vm2361_vm5, %v5128_v47  ;;  %v5141_v47 = vcombine.low %v3478_v29, %v3492_v16  ;;  %v5142_v39 = vcombine.low %v3506_v46, %v3520_v40  ;;  %v3996_v50 = vshll.u32 %v7607_v19, 16 }
 0x578   : > { %5445 = vmatprep.mubr.msk.bf16.mxu1 %vm2361_vm5, %v5837_v37  ;;  %v3552_v37 = vrot.slane %v3550_v12, 4  ;;  %v3683_v12 = vld [vmem:[#allocation3 + $0x28] sm:$0xe] }
 0x579   : > { %v5153_v3 = vrot.slane %v3683_v12, 9  ;;  %v3970_v12 = vld [vmem:[#allocation3 + $0x48] sm:$0xf] }
 0x57a   : > { %v3556_v24 = vor.u32 %v3555_v7, %v3552_v37  ;;  %v3686_v7 = vld [vmem:[#allocation3 + $0x40] sm:$0xe] }
 0x57b   : > { %v5156_v6 = vrot.slane %v3686_v7, 9  ;;  %v4074_v7 = vshll.u32 %v3970_v12, 16 }
 0x57c   : > { %v3557_v45 = vrot.slane %v3556_v24, 4  ;;  %v3730_v24 = vsel %vm7031_vm3, %v5155_v10, %v3729_v23  ;;  %v7618_v10 = vld [vmem:[#allocation3 + $0x24] sm:$0x1] }
 0x57d   : > { %v3734_v43 = vsel %vm7031_vm3, %v5156_v6, %v3733_v55  ;;  %v7622_v6 = vld [vmem:[#allocation3 + $0x34] sm:$0x1]  ;;  %v7624_v55 = vld [vmem:[#allocation3 + $0x3c] sm:$0x1]  ;;  %v4010_v2 = vshll.u32 %v7618_v10, 16 }
 0x57f   : > { %5446 = vmatmul.mubr.msk.bf16.vlgmr.msra.gmra.mrb[4].mxu1 %vm2361_vm5, %v5838_v27  ;;  %v3573_v27 = vshll.u32 %v7552_v15, 16  ;;  %v5160_v15 = vcombine.low %v3730_v24, %v3734_v43 }
 0x580   : > { %5454 = vmatpush3.bf16.msra.mxu1 %v3604_v32  ;;  %5449 = vmatprep.mubr.msk.bf16.mxu1 %vm2361_vm5, %v5839_v13  ;;  %v3534_v32 = vsel %vm6936_vm15, %v3529_v21, %v3533_v54  ;;  %v3956_v54 = vld [vmem:[#allocation3 + $0x10] sm:$0xf] }
 0x581   : > { %5655 = vmatprep.subr.msk.bf16.mxu1 %vm3004_vm7, %v7526_v8  ;;  %v5143_v13 = vcombine.low %v3534_v32, %v3548_v0  ;;  %v3575_v29 = vrot.slane %v3573_v27, 5  ;;  %v3562_v8 = vsel %vm6936_vm15, %v3557_v45, %v3561_v60  ;;  %v3973_v46 = vshrl.u32 %v3956_v54, 16  ;;  %v5841_v0 = vld [vmem:[#allocation3 + $0x10] ss:$8 sps:$4 sm:$0xff]  }
 0x582   : > { %v3976_v40 = vshll.u32 %v3956_v54, 16  ;;  %v3990_v32 = vshll.u32 %v3958_v57, 16  ;;  %v3966_v45 = vld [vmem:[#allocation3 + $0x38] sm:$0xf] }
 0x583   : > { %v3576_v16 = vsel %vm6936_vm15, %v3571_v26, %v3575_v29  ;;  %v3975_v33 = vrot.slane %v3973_v46, 4  ;;  %v4043_v14 = vshrl.u32 %v3966_v45, 16  ;;  %v4046_v31 = vshll.u32 %v3966_v45, 16 }
 0x584   : > { %v5144_v48 = vcombine.low %v3562_v8, %v3576_v16  ;;  %v3978_v27 = vrot.slane %v3976_v40, 5  ;;  %v3992_v51 = vrot.slane %v3990_v32, 5 }
 0x585   : > { %v4048_v36 = vrot.slane %v4046_v31, 5 }
 0x586   : > { %v3979_v52 = vor.u32 %v3978_v27, %v3975_v33  ;;  %v3993_v4 = vor.u32 %v3992_v51, %v3989_v41  ;;  %v4038_v27 = vshll.u32 %v7622_v6, 16  ;;  %v4052_v41 = vshll.u32 %v7624_v55, 16 }
 0x587   : > { %5450 = vmatmul.mubr.msk.bf16.gmra.mrb[8].mxu1 %vm2361_vm5, %v5840_v11  ;;  %v3721_v11 = vrot.slane %v7540_v42, 5  ;;  %v5158_v42 = vcombine.low %v3714_v53, %v3718_v49  ;;  %v4045_v49 = vrot.slane %v4043_v14, 4  ;;  %v4076_v51 = vrot.slane %v4074_v7, 5 }
 0x588   : > { %5455 = vmatprep.mubr.msk.bf16.mxu1 %vm2361_vm5, %v5141_v47  ;;  %v5154_v47 = vrot.slane %v3684_v56, 9  ;;  %v5842_v56 = vld [vmem:[#allocation3 + $0x20] ss:$8 sps:$4 sm:$0xff]   ;;  %v3980_v20 = vrot.slane %v3979_v52, 4  ;;  %v4012_v52 = vrot.slane %v4010_v2, 5 }
 0x589   : > { %v3722_v61 = vsel %vm7031_vm3, %v5153_v3, %v3721_v11  ;;  %v3994_v3 = vrot.slane %v3993_v4, 4  ;;  %v4049_v43 = vor.u32 %v4048_v36, %v4045_v49  ;;  %v4212_v36 = vrot.slane %v7605_v63, 5 }
 0x58a   : > { %v3726_v37 = vsel %vm7031_vm3, %v5154_v47, %v3725_v9 }
 0x58b   : > { %v5159_v21 = vcombine.low %v3722_v61, %v3726_v37  ;;  %v3968_v61 = vld [vmem:[#allocation3 + $0x40] sm:$0xf]  ;;  %v4071_v37 = vshrl.u32 %v3970_v12, 16 }
 0x58c   : > { %v4057_v54 = vshrl.u32 %v3968_v61, 16  ;;  %v4060_v57 = vshll.u32 %v3968_v61, 16 }
 0x58e   : > { %v4062_v45 = vrot.slane %v4060_v57, 5 }
 0x58f   : > { %5456 = vmatmul.mubr.msk.bf16.vlgmr.msra.gmra.mrb[4].mxu1 %vm2361_vm5, %v5142_v39  ;;  %v3960_v39 = vld [vmem:[#allocation3 + $0x20] sm:$0xf] }
 0x590   : > { %5464 = vmatpush3.bf16.msra.mxu1 %v3762_v44  ;;  %5459 = vmatprep.mubr.msk.bf16.mxu1 %vm2361_vm5, %v5143_v13  ;;  %v3962_v44 = vld [vmem:[#allocation3 + $0x28] sm:$0xf]  ;;  %v3964_v13 = vld [vmem:[#allocation3 + $0x30] sm:$0xf]  ;;  %v4001_v26 = vshrl.u32 %v3960_v39, 16 }
 0x591   : > { %5656 = vmatprep.subr.msk.bf16.mxu1 %vm3004_vm7, %v3847_v1  ;;  %v4004_v1 = vshll.u32 %v3960_v39, 16  ;;  %v4015_v60 = vshrl.u32 %v3962_v44, 16  ;;  %v4018_v29 = vshll.u32 %v3962_v44, 16  ;;  %v4029_v8 = vshrl.u32 %v3964_v13, 16 }
 0x592   : > { %v4032_v16 = vshll.u32 %v3964_v13, 16  ;;  %v4059_v13 = vrot.slane %v4057_v54, 4  ;;  %v4190_v54 = vld [vmem:[#allocation3 + $0x30] sm:$0xe] }
 0x593   : > { %v4006_v28 = vrot.slane %v4004_v1, 5  ;;  %v4017_v11 = vrot.slane %v4015_v60, 4  ;;  %v4020_v47 = vrot.slane %v4018_v29, 5  ;;  %v4031_v9 = vrot.slane %v4029_v8, 4  ;;  %v3969_v8 = vld [vmem:[#allocation3 + $0x44] sm:$0x1] }
 0x594   : > { %v4034_v53 = vrot.slane %v4032_v16, 5  ;;  %v4050_v1 = vrot.slane %v4049_v43, 4  ;;  %v4040_v60 = vrot.slane %v4038_v27, 5  ;;  %v4054_v29 = vrot.slane %v4052_v41, 5  ;;  %v3971_v16 = vld [vmem:[#allocation3 + $0x4c] sm:$0x1] }
 0x595   : > { %v4021_v23 = vor.u32 %v4020_v47, %v4017_v11  ;;  %v4063_v12 = vor.u32 %v4062_v45, %v4059_v13  ;;  %v5185_v30 = vrot.slane %v4190_v54, 9  ;;  %v4236_v13 = vrot.slane %v3969_v8, 5 }
 0x596   : > { %v4035_v24 = vor.u32 %v4034_v53, %v4031_v9  ;;  %v4240_v45 = vrot.slane %v3971_v16, 5 }
 0x597   : > { %5460 = vmatmul.mubr.msk.bf16.gmra.mrb[8].mxu1 %vm2361_vm5, %v5144_v48  ;;  %v3982_v48 = vshll.u32 %v7605_v63, 16  ;;  %v4022_v44 = vrot.slane %v4021_v23, 4  ;;  %v4064_v47 = vrot.slane %v4063_v12, 4  ;;  %v4189_v23 = vld [vmem:[#allocation3 + $0x28] sm:$0xe] }
 0x598   : > { %5465 = vmatprep.mubr.msk.bf16.mxu1 %vm2361_vm5, %v5157_v35  ;;  %v4003_v35 = vrot.slane %v4001_v26, 4  ;;  %v4036_v26 = vrot.slane %v4035_v24, 4  ;;  %v4220_v24 = vrot.slane %v7618_v10, 5  ;;  %v5184_v43 = vrot.slane %v4189_v23, 9  ;;  %v4193_v10 = vld [vmem:[#allocation3 + $0x48] sm:$0xe] }
 0x59f   : > { %5466 = vmatmul.mubr.msk.bf16.vlgmr.msra.gmra.mrb[4].mxu1 %vm2361_vm5, %v5158_v42  ;;  %v3984_v42 = vrot.slane %v3982_v48, 5  ;;  %v4041_v48 = vsel %vm6936_vm15, %v4036_v26, %v4040_v60  ;;  %v5197_v60 = vld [vmem:[#allocation15] ss:$0 sm:$0xff] }
 0x5a0   : > { %5474 = vmatpush3.bf16.msra.mxu1 %v3881_v62  ;;  %5469 = vmatprep.mubr.msk.bf16.mxu1 %vm2361_vm5, %v5159_v21  ;;  %v3998_v62 = vrot.slane %v3996_v50, 5  ;;  %v4007_v21 = vor.u32 %v4006_v28, %v4003_v35  ;;  %v4055_v50 = vsel %vm6936_vm15, %v4050_v1, %v4054_v29  ;;  %v4066_v35 = vshll.u32 %v3969_v8, 16  ;;  %v4186_v28 = vld [vmem:[#allocation3 + $0x10] sm:$0xe] }
 0x5a1   : > { %5657 = vmatprep.subr.msk.bf16.mxu1 %vm3004_vm7, %v4085_v22  ;;  %v7620_v22 = vld [vmem:[#allocation3 + $0x2c] sm:$0x1]  ;;  %v3985_v46 = vsel %vm6936_vm15, %v3980_v20, %v3984_v42  ;;  %v5175_v11 = vcombine.low %v4041_v48, %v4055_v50  ;;  %v5181_v49 = vrot.slane %v4186_v28, 9 }
 0x5a2   : > { %v3999_v40 = vsel %vm6936_vm15, %v3994_v3, %v3998_v62  ;;  %v4024_v32 = vshll.u32 %v7620_v22, 16  ;;  %v4008_v33 = vrot.slane %v4007_v21, 4  ;;  %v4269_v3 = vsel %vm3004_vm7, %v7610_v38, 0  ;;  %v4188_v62 = vld [vmem:[#allocation3 + $0x20] sm:$0xe] }
 0x5a3   : > { %v5173_v39 = vcombine.low %v3985_v46, %v3999_v40  ;;  %v4068_v7 = vrot.slane %v4066_v35, 5  ;;  %v4213_v21 = vsel %vm7031_vm3, %v5181_v49, %v4212_v36  ;;  %v5183_v46 = vrot.slane %v4188_v62, 9 }
 0x5a4   : > { %v4026_v4 = vrot.slane %v4024_v32, 5  ;;  %v4013_v31 = vsel %vm6936_vm15, %v4008_v33, %v4012_v52  ;;  %v4224_v2 = vrot.slane %v7620_v22, 5  ;;  %v4228_v32 = vrot.slane %v7622_v6, 5 }
 0x5a5   : > { %v4069_v42 = vsel %vm6936_vm15, %v4064_v47, %v4068_v7  ;;  %v4221_v33 = vsel %vm7031_vm3, %v5183_v46, %v4220_v24 }
 0x5a6   : > { %v4225_v27 = vsel %vm7031_vm3, %v5184_v43, %v4224_v2  ;;  %v4229_v22 = vsel %vm7031_vm3, %v5185_v30, %v4228_v32 }
 0x5a7   : > { %5470 = vmatmul.mubr.msk.bf16.gmra.mrb[8].mxu1 %vm2361_vm5, %v5160_v15  ;;  %v4073_v15 = vrot.slane %v4071_v37, 4  ;;  %v4216_v37 = vrot.slane %v7607_v19, 5  ;;  %v4191_v19 = vld [vmem:[#allocation3 + $0x38] sm:$0xe]  ;;  %v5190_v6 = vcombine.low %v4221_v33, %v4225_v27 }
 0x5a8   : > { %5475 = vmatprep.mubr.msk.bf16.mxu1 %vm2361_vm5, %v5841_v0  ;;  %v5844_v0 = vld [vmem:[#allocation3 + $0x40] ss:$8 sps:$4 sm:$0xff]  }
 0x5a9   : > { %v4077_v14 = vor.u32 %v4076_v51, %v4073_v15  ;;  %v5186_v15 = vrot.slane %v4191_v19, 9  ;;  %v4192_v51 = vld [vmem:[#allocation3 + $0x40] sm:$0xe] }
 0x5ab   : > { %v4078_v9 = vrot.slane %v4077_v14, 4 }
 0x5af   : > { %5476 = vmatmul.mubr.msk.bf16.vlgmr.msra.gmra.mrb[4].mxu1 %vm2361_vm5, %v5842_v56  ;;  %v4080_v56 = vshll.u32 %v3971_v16, 16 }
 0x5b0   : > { %5484 = vmatpush3.bf16.msra.mxu1 %v4111_v18  ;;  %5479 = vmatprep.mubr.msk.bf16.mxu1 %vm2361_vm5, %v5843_v25  ;;  %v4027_v18 = vsel %vm6936_vm15, %v4022_v44, %v4026_v4  ;;  %v4187_v25 = vld [vmem:[#allocation3 + $0x18] sm:$0xe] }
 0x5b1   : > { %5658 = vmatprep.subr.msk.bf16.mxu1 %vm3004_vm7, %v7610_v38  ;;  %v5174_v20 = vcombine.low %v4013_v31, %v4027_v18  ;;  %v4082_v53 = vrot.slane %v4080_v56, 5  ;;  %v5182_v61 = vrot.slane %v4187_v25, 9  ;;  %v4411_v4 = vld [vmem:[#allocation19] sm:$0xff] }
 0x5b2   : > { %5504 = vmatpush3.msra.mxu0 %v4411_v4 }
 0x5b3   : > { %v4083_v38 = vsel %vm6936_vm15, %v4078_v9, %v4082_v53  ;;  %v4217_v63 = vsel %vm7031_vm3, %v5182_v61, %v4216_v37  ;;  %5508 = vmatprep.subr.mxu0 %v6264_v58  ;;  %vm4770_vm15 = vcmask 130048  }
 0x5b4   : > { %v5176_v57 = vcombine.low %v4069_v42, %v4083_v38  ;;  %v5189_v40 = vcombine.low %v4213_v21, %v4217_v63 }
 0x5b7   : > { %5480 = vmatmul.mubr.msk.bf16.gmra.mrb[8].mxu1 %vm2361_vm5, %v5844_v0  ;;  %v4232_v0 = vrot.slane %v7624_v55, 5  ;;  %v5187_v55 = vrot.slane %v4192_v51, 9 }
 0x5b8   : > { %5485 = vmatprep.mubr.msk.bf16.mxu1 %vm2361_vm5, %v5173_v39  ;;  %v5188_v39 = vrot.slane %v4193_v10, 9 }
 0x5b9   : > { %v4233_v41 = vsel %vm7031_vm3, %v5186_v15, %v4232_v0  ;;  %v4237_v26 = vsel %vm7031_vm3, %v5187_v55, %v4236_v13 }
 0x5ba   : > { %v5191_v44 = vcombine.low %v4229_v22, %v4233_v41  ;;  %v4241_v1 = vsel %vm7031_vm3, %v5188_v39, %v4240_v45  ;;  %vm4778_vm3 = vcmask 392192  }
 0x5bb   : > { %v5192_v52 = vcombine.low %v4237_v26, %v4241_v1 }
 0x5bf   : > { %5486 = vmatmul.mubr.msk.bf16.vlgmr.msra.gmra.mrb[4].mxu1 %vm2361_vm5, %v5174_v20 }
 0x5c0   : > { %5494 = vmatpush3.bf16.msra.mxu1 %v4269_v3  ;;  %5489 = vmatprep.mubr.msk.bf16.mxu1 %vm2361_vm5, %v5175_v11 }
 0x5c7   : > { %5490 = vmatmul.mubr.msk.bf16.gmra.mrb[8].mxu1 %vm2361_vm5, %v5176_v57 }
 0x5c8   : > { %5495 = vmatprep.mubr.msk.bf16.mxu1 %vm2361_vm5, %v5189_v40 }
 0x5cf   : > { %5496 = vmatmul.mubr.msk.bf16.vlgmr.msra.gmra.mrb[4].mxu1 %vm2361_vm5, %v5190_v6 }
 0x5d0   : > { %5499 = vmatprep.mubr.msk.bf16.mxu1 %vm2361_vm5, %v5191_v44 }
 0x5d7   : > { %5500 = vmatmul.mubr.msk.bf16.gmra.mrb[8].mxu1 %vm2361_vm5, %v5192_v52 }
 0x6a2   : > { %v5497_v29 = vpop.f32.mrb[4].mxu1 }
 0x6a3   : > { %v4305_v8 = vpop.f32.mrb[5].mxu1  ;;  %v7680_v16 = vadd.f32 %v5497_v29, %v5197_v60 }
 0x6a4   : > { %v7682_v14 = vadd.f32 %v5197_v60, %v4305_v8  ;;  %v5498_v31 = vpop.f32.mrb[6].mxu1 }
 0x6a5   : > { %v4308_v18 = vpop.f32.mrb[7].mxu1  ;;  %v7686_v12 = vadd.f32 %v5498_v31, %v5197_v60  ;;  %v4383_v48 = vmul.f32 %v7680_v16, %v7680_v16  ;;  %v4363_v20 = vsel %vm2361_vm5, %v7680_v16, 0.0 }
 0x6a6   : > { %v4381_v17 = vmul.f32 %v7682_v14, %v7682_v14  ;;  %v7688_v56 = vadd.f32 %v5197_v60, %v4308_v18  ;;  %v4360_v50 = vsel %vm2361_vm5, %v7682_v14, 0.0 }
 0x6a7   : > { %v4384_v11 = vmul.f32 %v7686_v12, %v7686_v12  ;;  %v4392_v61 = vsel %vm2361_vm5, %v4383_v48, 0.0  ;;  %v4365_v37 = vsel %vm2361_vm5, %v7686_v12, 0.0 }
 0x6a8   : > { %v4361_v35 = vsel %vm2361_vm5, %v7688_v56, 0.0  ;;  %v4382_v28 = vmul.f32 %v7688_v56, %v7688_v56  ;;  %v4389_v3 = vsel %vm2361_vm5, %v4381_v17, 0.0 }
 0x6a9   : > { %v4362_v25 = vadd.f32 %v4361_v35, %v4360_v50  ;;  %v4394_v23 = vsel %vm2361_vm5, %v4384_v11, 0.0  ;;  %v4485_v50 = vld [vmem:[#allocation21] sm:$0xff] }
 0x6aa   : > { %v4390_v47 = vsel %vm2361_vm5, %v4382_v28, 0.0  ;;  %v5501_v9 = vpop.f32.mrb[8].mxu1 }
 0x6ab   : > { %v4364_v53 = vadd.f32 %v4363_v20, %v4362_v25  ;;  %v4391_v49 = vadd.f32 %v4390_v47, %v4389_v3  ;;  %v4321_v36 = vpop.f32.mrb[9].mxu1  ;;  %v7709_v62 = vadd.f32 %v5501_v9, %v5197_v60 }
 0x6ac   : > { %v7707_v7 = vadd.f32 %v5197_v60, %v4321_v36  ;;  %v5502_v42 = vpop.f32.mrb[10].mxu1  ;;  %v5200_v36 = vld [vmem:[#allocation16] ss:$0 sm:$0xff] }
 0x6ad   : > { %v4393_v38 = vadd.f32 %v4392_v61, %v4391_v49  ;;  %v4366_v21 = vadd.f32 %v4365_v37, %v4364_v53  ;;  %v4324_v63 = vpop.f32.mrb[11].mxu1  ;;  %v7718_v24 = vadd.f32 %v5502_v42, %v5197_v60  ;;  %v4387_v30 = vmul.f32 %v7709_v62, %v7709_v62 }
 0x6ae   : > { %v4367_v54 = vsel %vm2361_vm5, %v7707_v7, 0.0  ;;  %v4385_v19 = vmul.f32 %v7707_v7, %v7707_v7  ;;  %v7716_v57 = vadd.f32 %v5197_v60, %v4324_v63  ;;  %v4371_v33 = vsel %vm2361_vm5, %v7709_v62, 0.0 }
 0x6af   : > { %v4368_v46 = vadd.f32 %v4367_v54, %v4366_v21  ;;  %v4395_v40 = vadd.f32 %v4394_v23, %v4393_v38  ;;  %v4388_v27 = vmul.f32 %v7718_v24, %v7718_v24  ;;  %v4373_v41 = vsel %vm2361_vm5, %v7718_v24, 0.0  ;;  %v5201_v54 = vld [vmem:[#allocation18] ss:$0 sm:$0xff] }
 0x6b0   : > { %v4396_v43 = vsel %vm2361_vm5, %v4385_v19, 0.0  ;;  %v4369_v2 = vsel %vm2361_vm5, %v7716_v57, 0.0  ;;  %v4386_v0 = vmul.f32 %v7716_v57, %v7716_v57  ;;  %v4400_v6 = vsel %vm2361_vm5, %v4387_v30, 0.0 }
 0x6b1   : > { %v4397_v32 = vadd.f32 %v4396_v43, %v4395_v40  ;;  %v4370_v15 = vadd.f32 %v4369_v2, %v4368_v46  ;;  %v4402_v55 = vsel %vm2361_vm5, %v4388_v27, 0.0 }
 0x6b2   : > { %v4398_v22 = vsel %vm2361_vm5, %v4386_v0, 0.0 }
 0x6b3   : > { %v4372_v10 = vadd.f32 %v4371_v33, %v4370_v15  ;;  %v4399_v51 = vadd.f32 %v4398_v22, %v4397_v32 }
 0x6b5   : > { %v4374_v39 = vadd.f32 %v4373_v41, %v4372_v10  ;;  %v4401_v44 = vadd.f32 %v4400_v6, %v4399_v51 }
 0x6b7   : > { %v4375_v13 = vrot.slane %v4374_v39, 4  ;;  %v4403_v45 = vadd.f32 %v4402_v55, %v4401_v44 }
 0x6b9   : > { %v4376_v26 = vadd.f32 %v4375_v13, %v4374_v39  ;;  %v4404_v1 = vrot.slane %v4403_v45, 4 }
 0x6bb   : > { %v4377_v52 = vrot.slane %v4376_v26, 2  ;;  %v4405_v4 = vadd.f32 %v4404_v1, %v4403_v45 }
 0x6bd   : > { %v4378_v60 = vadd.f32 %v4377_v52, %v4376_v26  ;;  %v4406_v29 = vrot.slane %v4405_v4, 2 }
 0x6bf   : > { %v4379_v8 = vrot.slane %v4378_v60, 1  ;;  %v4407_v31 = vadd.f32 %v4406_v29, %v4405_v4 }
 0x6c1   : > { %v4408_v18 = vrot.slane %v4407_v31, 1  ;;  %v4380_v17 = vadd.f32 %v4379_v8, %v4378_v60 }
 0x6c3   : > { %v4409_v48 = vadd.f32 %v4408_v18, %v4407_v31 }
 0x6c5   : > { %v4410_v35 = vsel %vm2412_vm6, %v4380_v17, %v4409_v48 }
 0x6c6   : > { %5506 = vmatmul.mubr.msk.f32.vlgmr.msra.gmra.mrb[8].mxu0 %vm2361_vm5, %v4410_v35 }
 0x6c7   : > { %5509 = vmatpush3.msra.mxu0 %v4485_v50  ;;  %5510 = vmatprep.mubr.msk.f32.mxu0 %vm6265_vm4, %v6264_v58  ;;  %vm4780_vm4 = vcmask 457728  }
 0x799   : > { %v4481_v28 = vpop.f32.mrb[8].mxu0 }
 0x79a   : > { %v5507_v25 = vpop.f32.mrb[9].mxu0  ;;  %5511 = vmatmul.mubr.msk.f32.vlgmr.msra.gmra.mrb[10].mxu0 %vm2361_vm5, %v4481_v28 }
 0x86d   : > { %v4555_v20 = vpop.f32.mrb[10].mxu0 }
 0x86e   : > { %v4559_v3 = vmul.f32 %v4555_v20, %v4555_v20  ;;  %v5512_v11 = vpop.f32.mrb[11].mxu0  ;;  %v4570_v61 = vrot.slane %v4555_v20, %v2572_v59 }
 0x870   : > { %v4561_v47 = vrot.slane %v4559_v3, 7  ;;  %v4571_v58 = vsub.f32 %v7682_v14, %v4570_v61  ;;  %v4572_v38 = vsub.f32 %v7688_v56, %v4570_v61  ;;  %v4573_v21 = vsub.f32 %v7680_v16, %v4570_v61 }
 0x871   : > { %v4574_v63 = vsub.f32 %v7686_v12, %v4570_v61  ;;  %v4575_v19 = vsub.f32 %v7707_v7, %v4570_v61  ;;  %v4576_v59 = vsub.f32 %v7716_v57, %v4570_v61  ;;  %v4577_v46 = vsub.f32 %v7709_v62, %v4570_v61 }
 0x872   : > { %v4563_v9 = vsub.f32 %v4555_v20, %v4561_v47  ;;  %v4578_v14 = vsub.f32 %v7718_v24, %v4570_v61 }
 0x874   : > { %v4564_v53 = vmax.f32 %v4563_v9, 0.0 }
 0x876   : > { %v4565_v49 = vadd.f32 1e-05, %v4564_v53 }
 0x878   : > { %5847 = vrsqrt.f32 %v4565_v49 }
 0x882   : > { %v5848_v37 = vpop.eup %5847 }
 0x883   : > { %v4585_v42 = vmul.f32 %v5848_v37, %v5200_v36 }
 0x885   : > { %v4589_v23 = vrot.slane %v4585_v42, %v2591_v34 }
 0x887   : > { %v4590_v40 = vmul.f32 %v4589_v23, %v4571_v58  ;;  %v4591_v56 = vmul.f32 %v4589_v23, %v4572_v38  ;;  %v4592_v43 = vmul.f32 %v4589_v23, %v4573_v21  ;;  %v4593_v16 = vmul.f32 %v4589_v23, %v4574_v63 }
 0x888   : > { %v4594_v12 = vmul.f32 %v4589_v23, %v4575_v19  ;;  %v4595_v2 = vmul.f32 %v4589_v23, %v4576_v59  ;;  %v4596_v5 = vmul.f32 %v4589_v23, %v4577_v46  ;;  %v4597_v34 = vmul.f32 %v4589_v23, %v4578_v14 }
 0x889   : > { %v4604_v30 = vadd.f32 %v5201_v54, %v4590_v40  ;;  %v4605_v32 = vadd.f32 %v5201_v54, %v4591_v56  ;;  %v4606_v7 = vadd.f32 %v5201_v54, %v4592_v43  ;;  %v4607_v15 = vadd.f32 %v5201_v54, %v4593_v16 }
 0x88a   : > { %v4608_v57 = vadd.f32 %v5201_v54, %v4594_v12  ;;  %v4609_v62 = vadd.f32 %v5201_v54, %v4595_v2  ;;  %v4610_v0 = vadd.f32 %v5201_v54, %v4596_v5  ;;  %v4611_v24 = vadd.f32 %v5201_v54, %v4597_v34 }
 0x88b   : > { %v7753_v33 = vmax.f32 %v4604_v30, 0.0  ;;  %v7755_v27 = vmax.f32 %v4605_v32, 0.0  ;;  %v7757_v10 = vmax.f32 %v4606_v7, 0.0  ;;  %v7759_v22 = vmax.f32 %v4607_v15, 0.0 }
 0x88c   : > { %v7761_v41 = vmax.f32 %v4608_v57, 0.0  ;;  %v7763_v51 = vmax.f32 %v4609_v62, 0.0  ;;  %v7765_v6 = vmax.f32 %v4610_v0, 0.0  ;;  %v7767_v39 = vmax.f32 %v4611_v24, 0.0 }
 0x88d   : > { %v4667_v44 = vrot.slane %v7753_v33, 2  ;;  %v4668_v55 = vrot.slane %v7755_v27, 1  ;;  %v4650_v13 = vrot.slane %v7753_v33, 1  ;;  %v4671_v45 = vrot.slane %v7759_v22, 7 }
 0x88e   : > { %v4673_v26 = vrot.slane %v7761_v41, 6  ;;  %v4675_v1 = vrot.slane %v7763_v51, 5  ;;  %v4677_v52 = vrot.slane %v7765_v6, 4  ;;  %v4679_v60 = vrot.slane %v7767_v39, 3 }
 0x88f   : > { %v4669_v4 = vsel %vm4629_vm8, %v4668_v55, %v4667_v44  ;;  %v4651_v29 = vsel %vm4629_vm8, %v7755_v27, %v4650_v13  ;;  %v4652_v8 = vrot.slane %v7757_v10, 7  ;;  %v4654_v18 = vrot.slane %v7759_v22, 6 }
 0x890   : > { %v4670_v31 = vsel %vm4632_vm9, %v7757_v10, %v4669_v4  ;;  %v4656_v17 = vrot.slane %v7761_v41, 5  ;;  %v4658_v48 = vrot.slane %v7763_v51, 4  ;;  %v4660_v28 = vrot.slane %v7765_v6, 3 }
 0x891   : > { %v4672_v50 = vsel %vm4635_vm10, %v4671_v45, %v4670_v31  ;;  %v4653_v35 = vsel %vm4632_vm9, %v4652_v8, %v4651_v29  ;;  %v4701_v25 = vrot.slane %v7753_v33, 4  ;;  %v4702_v11 = vrot.slane %v7755_v27, 3 }
 0x892   : > { %v4674_v20 = vsel %vm4638_vm11, %v4673_v26, %v4672_v50  ;;  %v4655_v3 = vsel %vm4635_vm10, %v4654_v18, %v4653_v35  ;;  %v4704_v47 = vrot.slane %v7757_v10, 2  ;;  %v4662_v49 = vrot.slane %v7767_v39, 2 }
 0x893   : > { %v4676_v9 = vsel %vm4641_vm12, %v4675_v1, %v4674_v20  ;;  %v4657_v53 = vsel %vm4638_vm11, %v4656_v17, %v4655_v3  ;;  %v4706_v36 = vrot.slane %v7759_v22, 1  ;;  %v4703_v42 = vsel %vm4629_vm8, %v4702_v11, %v4701_v25 }
 0x894   : > { %v4678_v61 = vsel %vm4644_vm13, %v4677_v52, %v4676_v9  ;;  %v4659_v37 = vsel %vm4641_vm12, %v4658_v48, %v4657_v53  ;;  %v4709_v58 = vrot.slane %v7763_v51, 7  ;;  %v4705_v63 = vsel %vm4632_vm9, %v4704_v47, %v4703_v42 }
 0x895   : > { %v4680_v38 = vsel %vm4647_vm14, %v4679_v60, %v4678_v61  ;;  %v4661_v21 = vsel %vm4644_vm13, %v4660_v28, %v4659_v37  ;;  %v4711_v23 = vrot.slane %v7765_v6, 6  ;;  %v4707_v19 = vsel %vm4635_vm10, %v4706_v36, %v4705_v63 }
 0x896   : > { %4681 = vrot.lane.b32.xlu1 %v4680_v38, %s6266_s22  ;;  %v4663_v54 = vsel %vm4647_vm14, %v4662_v49, %v4661_v21  ;;  %v4684_v59 = vrot.slane %v7753_v33, 3  ;;  %v4685_v46 = vrot.slane %v7755_v27, 2  ;;  %v4708_v14 = vsel %vm4638_vm11, %v7761_v41, %v4707_v19 }
 0x897   : > { %4664 = vrot.lane.b32.xlu0 %v4663_v54, %s6267_s29  ;;  %v4713_v40 = vrot.slane %v7767_v39, 5  ;;  %v4687_v56 = vrot.slane %v7757_v10, 1  ;;  %v4690_v43 = vrot.slane %v7761_v41, 7  ;;  %v4710_v16 = vsel %vm4641_vm12, %v4709_v58, %v4708_v14  ;;  %s8004_s29 = sld [smem:[#allocation34_spill]] }
 0x898   : > { %v4686_v12 = vsel %vm4629_vm8, %v4685_v46, %v4684_v59  ;;  %v4692_v2 = vrot.slane %v7763_v51, 6  ;;  %v4694_v5 = vrot.slane %v7765_v6, 5  ;;  %v4712_v34 = vsel %vm4644_vm13, %v4711_v23, %v4710_v16 }
 0x899   : > { %v4688_v30 = vsel %vm4632_vm9, %v4687_v56, %v4686_v12  ;;  %v4735_v32 = vrot.slane %v7753_v33, 6  ;;  %v4736_v7 = vrot.slane %v7755_v27, 5  ;;  %v4714_v15 = vsel %vm4647_vm14, %v4713_v40, %v4712_v34 }
 0x89a   : > { %v4689_v57 = vsel %vm4635_vm10, %v7759_v22, %v4688_v30  ;;  %v4696_v62 = vrot.slane %v7767_v39, 4  ;;  %v4738_v0 = vrot.slane %v7757_v10, 4  ;;  %4715 = vrot.lane.b32.xlu1 %v4714_v15, %s6268_s11  ;;  %v4740_v55 = vrot.slane %v7759_v22, 3 }
 0x89b   : > { %v4691_v24 = vsel %vm4638_vm11, %v4690_v43, %v4689_v57  ;;  %v4737_v44 = vsel %vm4629_vm8, %v4736_v7, %v4735_v32  ;;  %v4742_v13 = vrot.slane %v7761_v41, 2  ;;  %v4744_v1 = vrot.slane %v7763_v51, 1 }
 0x89c   : > { %v4693_v45 = vsel %vm4641_vm12, %v4692_v2, %v4691_v24  ;;  %v4739_v26 = vsel %vm4632_vm9, %v4738_v0, %v4737_v44  ;;  %v4718_v52 = vrot.slane %v7753_v33, 5  ;;  %v4719_v29 = vrot.slane %v7755_v27, 4 }
 0x89d   : > { %v4695_v4 = vsel %vm4644_vm13, %v4694_v5, %v4693_v45  ;;  %v4741_v60 = vsel %vm4635_vm10, %v4740_v55, %v4739_v26  ;;  %v4721_v8 = vrot.slane %v7757_v10, 3  ;;  %v4747_v17 = vrot.slane %v7767_v39, 7  ;;  %s7895_s11 = scalar_lea.hbm %s8004_s29, %s5203_s12 }
 0x89e   : > { %v4697_v31 = vsel %vm4647_vm14, %v4696_v62, %v4695_v4  ;;  %v4743_v18 = vsel %vm4638_vm11, %v4742_v13, %v4741_v60  ;;  %v4720_v50 = vsel %vm4629_vm8, %v4719_v29, %v4718_v52  ;;  %v4723_v35 = vrot.slane %v7759_v22, 2 }
 0x89f   : > { %4698 = vrot.lane.b32.xlu0 %v4697_v31, %s6269_s1  ;;  %v4745_v48 = vsel %vm4641_vm12, %v4744_v1, %v4743_v18  ;;  %v4725_v28 = vrot.slane %v7761_v41, 1  ;;  %v4722_v20 = vsel %vm4632_vm9, %v4721_v8, %v4720_v50  ;;  %v4752_v3 = vrot.slane %v7753_v33, 7  ;;  %s4785_s1 = scalar_lea.sflag [#allocation6], %s6668_s16 }
 0x8a0   : > { %v4746_v25 = vsel %vm4644_vm13, %v7765_v6, %v4745_v48  ;;  %v4753_v11 = vrot.slane %v7755_v27, 6  ;;  %v4724_v9 = vsel %vm4635_vm10, %v4723_v35, %v4722_v20  ;;  %v4728_v53 = vrot.slane %v7765_v6, 7 }
 0x8a1   : > { %v4748_v47 = vsel %vm4647_vm14, %v4747_v17, %v4746_v25  ;;  %v4755_v49 = vrot.slane %v7757_v10, 5  ;;  %v4726_v36 = vsel %vm4638_vm11, %v4725_v28, %v4724_v9  ;;  %v4730_v61 = vrot.slane %v7767_v39, 6 }
 0x8a2   : > { %4749 = vrot.lane.b32.xlu1 %v4748_v47, %s6270_s13  ;;  %v4754_v37 = vsel %vm4629_vm8, %v4753_v11, %v4752_v3  ;;  %v4757_v42 = vrot.slane %v7759_v22, 4  ;;  %v4727_v58 = vsel %vm4641_vm12, %v7763_v51, %v4726_v36  ;;  %v4759_v21 = vrot.slane %v7761_v41, 3  ;;  %s6273_s13 = smov [#allocation22]  }
 0x8a3   : > { %v4756_v38 = vsel %vm4632_vm9, %v4755_v49, %v4754_v37  ;;  %v4628_v63 = vrot.slane %v7755_v27, 7  ;;  %v4729_v23 = vsel %vm4644_vm13, %v4728_v53, %v4727_v58  ;;  %v4761_v19 = vrot.slane %v7763_v51, 2 }
 0x8a4   : > { %v4758_v54 = vsel %vm4635_vm10, %v4757_v42, %v4756_v38  ;;  %v4631_v59 = vrot.slane %v7757_v10, 6  ;;  %v4731_v46 = vsel %vm4647_vm14, %v4730_v61, %v4729_v23  ;;  %v4763_v40 = vrot.slane %v7765_v6, 1 }
 0x8a5   : > { %v4760_v14 = vsel %vm4638_vm11, %v4759_v21, %v4758_v54  ;;  %4732 = vrot.lane.b32.xlu0 %v4731_v46, %s6271_s3  ;;  %v4634_v27 = vrot.slane %v7759_v22, 5  ;;  %v4630_v43 = vsel %vm4629_vm8, %v4628_v63, %v7753_v33  ;;  %v4637_v12 = vrot.slane %v7761_v41, 4  ;;  %s6163_s3 = sshll.u32 %s6273_s13, 4  ;;  %s6164_s3 = int_to_ptr.vmem [resolvable:$false] %s6163_s3 }
 0x8a6   : > { %v4762_v56 = vsel %vm4641_vm12, %v4761_v19, %v4760_v14  ;;  %v4633_v10 = vsel %vm4632_vm9, %v4631_v59, %v4630_v43  ;;  %v4640_v2 = vrot.slane %v7763_v51, 3  ;;  %v4643_v30 = vrot.slane %v7765_v6, 2  ;;  %p6166_p4 = scmp.lt.s32.totalorder %s7897_s25, %s6164_s3 }
 0x8a7   : > { %v4764_v16 = vsel %vm4644_vm13, %v4763_v40, %v4762_v56  ;;  %v4636_v5 = vsel %vm4635_vm10, %v4634_v27, %v4633_v10  ;;  %v4646_v33 = vrot.slane %v7767_v39, 1 }
 0x8a8   : > { %v4765_v34 = vsel %vm4647_vm14, %v7767_v39, %v4764_v16  ;;  %v4639_v22 = vsel %vm4638_vm11, %v4637_v12, %v4636_v5 }
 0x8a9   : > { %4766 = vrot.lane.b32.xlu0 %v4765_v34, %s6272_s26  ;;  %v4642_v41 = vsel %vm4641_vm12, %v4640_v2, %v4639_v22  ;;  %s6165_s26 = scalar_lea.vmem %s6164_s3, 256 }
 0x8aa   : > { %v4645_v32 = vsel %vm4644_vm13, %v4643_v30, %v4642_v41  ;;  %p6167_p10 = scmp.lt.s32.totalorder %s6165_s26, %s6159_s23 }
 0x8ab   : > { %v4648_v51 = vsel %vm4647_vm14, %v4646_v33, %v4645_v32 }
 0x8ac   : > { %p6168_p11 = por %p6167_p10, %p6166_p4 }
 0x8ae   : > { %p6169_p0 = pnand %p6168_p11, %p6162_p8 }
 0x908   : > { %v4682_v15 = vpop.permute.xlu1 %4681 }
 0x909   : > { %v4665_v7 = vpop.permute.xlu0 %4664 }
 0x90a   : > { %v4769_v57 = vsel %vm2361_vm5, %v4648_v51, %v4665_v7  ;;  %vm4782_vm5 = vcmask 523264  }
 0x90b   : > { %v4771_v0 = vsel %vm4770_vm15, %v4769_v57, %v4682_v15 }
 0x90c   : > { %v4716_v62 = vpop.permute.xlu1 %4715 }
 0x911   : > { %v4699_v6 = vpop.permute.xlu0 %4698 }
 0x912   : > { %v4773_v24 = vsel %vm4772_vm0, %v4771_v0, %v4699_v6 }
 0x913   : > { %v4775_v44 = vsel %vm4774_vm1, %v4773_v24, %v4716_v62 }
 0x914   : > { %v4750_v55 = vpop.permute.xlu1 %4749 }
 0x917   : > { %v4733_v39 = vpop.permute.xlu0 %4732 }
 0x918   : > { %v4777_v13 = vsel %vm4776_vm2, %v4775_v44, %v4733_v39 }
 0x919   : > { %v4779_v26 = vsel %vm4778_vm3, %v4777_v13, %v4750_v55 }
 0x91b   : > { %v4767_v45 = vpop.permute.xlu0 %4766 }
 0x91c   : > { %v4781_v1 = vsel %vm4780_vm4, %v4779_v26, %v4767_v45 }
 0x91d   : > { %4783 = vst.msk [vmem:[%s533_s21] sm:$0xff] %vm4782_vm5, %v4781_v1 }
 0x91e   : > { %6172 = shalt.err (!%p6169_p0)
}
 0x91f   : > { %s6173_s16 = scalar_lea.hbm %s7895_s11, 128  ;;  %s6177_s21 = scalar_lea.hbm %s8004_s29, 256 }
 0x920   : > { %p6174_p5 = scmp.ne.s32.totalorder %s7895_s11, %s6173_s16  ;;  %p6178_p9 = scmp.lt.u32.totalorder %s7895_s11, %s8004_s29 }
 0x921   : > { %p6179_p12 = scmp.lt.u32.totalorder %s6177_s21, %s6173_s16  ;;  %p6181_p1 = scmp.lt.u32.totalorder %s6173_s16, %s7895_s11 }
 0x922   : > { %p6175_p7 = pnand %p6174_p5, %p8005_p3 }
 0x923   : > { %p6180_p13 = por %p6179_p12, %p6178_p9 }
 0x924   : > { %p6176_p6 = pneg %p6175_p7 }
 0x925   : > { %p6182_p2 = por %p6181_p1, %p6180_p13 }
 0x927   : > { %p6183_p8 = pnand %p6182_p2, %p6176_p6 }
 0x929   : > { %6186 = shalt.err (!%p6183_p8)
}
 0x92a   : > { %5701 = dma.vmem_to_hbm [thread:$0]  (%p8005_p3), %s7897_s25, 128, %s7895_s11, %s4785_s1  }
 0x92b PF: > { %s4810_s23 = sand.u32 1, %s6233_s17   ;;  %p8006_p4 = scmp.ne.s32.totalorder %s7972_s15, 0 }
 0x92c   : > { %p8007_p10 = scmp.ge.s32.totalorder %s6245_s20, 2  ;;  %s4811_s13 = scalar_lea.sflag [#allocation6], %s4810_s23 }
 0x92e   : > { %p5739_p11 = pnand %p8007_p10, %p8006_p4 }
 0x930   : > { %6228 = dma.done.wait (!%p5739_p11), %s4811_s13, 128  }
 0x931   : > { %6230 = vsyncadd (!%p5739_p11), %s4811_s13, 4294967168  ;;  %p29_p0 = scmp.ge.s32.totalorder %s6586_s27, 4   ;;  %s8008_s17 = smov %s6237_s18 }
 0x932   : > { %s8009_s18 = smov %s6241_s19  ;;  %s8010_s19 = smov %s6597_s30 }
 0x933   : > { %s8011_s20 = smov %s6586_s27  ;;  %31 = sbr.rel (!%p29_p0) target bundleno = 15 (0xf), region = 171 }
 0x93a   :  { %4816 = vsyncpa [#allocation5], 1 }
 0x93b   :  { %4818 = vsyncpa [#allocation5 + $0x1], 1 }
 0x93c   :  { %4819 = vsyncpa [#allocation8], 1 }
 0x93d   :  { %4820 = vsyncpa [#allocation11], 1 }
 0x93e   :  { %4821 = vsyncpa [#allocation14], 1 }
 0x93f   :  { %4822 = vsyncpa [#allocation17], 1 }
 0x940   :  { %4823 = vsyncpa [#allocation20], 1 }
 0x941   :  { %4824 = vsyncpa [#allocation6], 1 }
 0x942   :  { %4826 = vsyncpa [#allocation6 + $0x1], 1 }

</bundles_post_ra>
